<compile_context>
chip_gen: v7x
topology: tpu7x:2x2x1
jax: 0.10.0
libtpu: 0.0.40
codegen_flags: <defaults>
</compile_context>

<pallas_src>
import functools

import jax
import jax.numpy as jnp
from jax.experimental import pallas as pl
from jax.experimental.pallas import tpu as pltpu


def _round_up(n, m):
    return ((n + m - 1) // m) * m


def _cdiv(a, b):
    return (a + b - 1) // b


def _choose_batch_tile(batch, max_tile=512, min_tile=16):
    """Largest power-of-two tile <= max_tile (multiple of 16 for bf16 sublane
    packing) that still keeps >= 2 grid steps when the batch allows it, so the
    "parallel" batch axis can shard across the 2 TensorCores on v7x."""
    if batch <= min_tile:
        return min_tile
    tb = min_tile
    while tb * 2 <= max_tile and _cdiv(batch, tb * 2) >= 2:
        tb *= 2
    return tb


def _fcn_kernel(x_ref, w1_ref, b1_ref, w2_ref, b2_ref, o_ref, *, num_classes):
    # Layer 1: [tb, 784] @ [784, Hp] -> [tb, Hp].  Operands in the weight
    # dtype (bf16 fast path / f32 exact path), f32 MXU accumulation.
    x = x_ref[...].astype(w1_ref.dtype)
    h = jnp.dot(x, w1_ref[...], preferred_element_type=jnp.float32)
    h = jnp.maximum(h + b1_ref[...], 0.0)          # bias + relu in f32 (VPU)

    # Layer 2: [tb, Hp] @ [Hp, Cp] -> [tb, Cp]; padded hidden units have zero
    # weights/bias so relu(0)=0 contributes nothing.
    logits = jnp.dot(h.astype(w2_ref.dtype), w2_ref[...],
                     preferred_element_type=jnp.float32)
    logits = logits + b2_ref[...]

    # Masked log_softmax: padded class lanes (>= num_classes) are excluded
    # from the max / sum so they cannot perturb the valid lanes.
    lane = jax.lax.broadcasted_iota(jnp.int32, logits.shape, 1)
    masked = jnp.where(lane < num_classes, logits, jnp.float32(-1e30))
    m = jnp.max(masked, axis=-1, keepdims=True)
    s = jnp.sum(jnp.exp(masked - m), axis=-1, keepdims=True)
    o_ref[...] = (logits - (m + jnp.log(s))).astype(o_ref.dtype)


def prepare_fcn_params(w1, b1, w2, b2, *, param_dtype=jnp.bfloat16):
    """One-time (load-time) parameter prep: transpose, zero-pad to lane-dense
    shapes (hidden 500->512, classes 10->128) and cast the matmul operands to
    `param_dtype` (bf16 by default: native MXU rate, half the weight DMA and
    resident VMEM).  Biases stay f32 — they are added after f32 accumulation.

    w1: [hidden, in_dim], b1: [hidden], w2: [classes, hidden], b2: [classes]
    Returns w1_t [in_dim, Hp], b1_p [1, Hp], w2_t [Hp, Cp], b2_p [1, Cp].
    """
    hidden, in_dim = w1.shape
    classes = w2.shape[0]
    hp = _round_up(hidden, 128)     # 500 -> 512
    cp = _round_up(classes, 128)    # 10  -> 128

    w1_t = jnp.zeros((in_dim, hp), param_dtype).at[:, :hidden].set(
        w1.T.astype(param_dtype))
    b1_p = jnp.zeros((1, hp), jnp.float32).at[0, :hidden].set(
        b1.astype(jnp.float32))
    w2_t = jnp.zeros((hp, cp), param_dtype).at[:hidden, :classes].set(
        w2.T.astype(param_dtype))
    b2_p = jnp.zeros((1, cp), jnp.float32).at[0, :classes].set(
        b2.astype(jnp.float32))
    return w1_t, b1_p, w2_t, b2_p


def _build_call(batch_p, in_dim, hp, cp, tb, num_classes, out_dtype,
                single_buffer_weights):
    if single_buffer_weights:
        # Grid-invariant operands: one VMEM copy, no redundant per-step DMA.
        resident = dict(pipeline_mode=pl.Buffered(1))
    else:
        resident = {}
    in_specs = [
        pl.BlockSpec((tb, in_dim), lambda i: (i, 0)),                # x: pipelined
        pl.BlockSpec((in_dim, hp), lambda i: (0, 0), **resident),    # w1: resident
        pl.BlockSpec((1, hp), lambda i: (0, 0), **resident),         # b1: resident
        pl.BlockSpec((hp, cp), lambda i: (0, 0), **resident),        # w2: resident
        pl.BlockSpec((1, cp), lambda i: (0, 0), **resident),         # b2: resident
    ]
    return pl.pallas_call(
        functools.partial(_fcn_kernel, num_classes=num_classes),
        out_shape=jax.ShapeDtypeStruct((batch_p, cp), out_dtype),
        grid=(batch_p // tb,),
        in_specs=in_specs,
        out_specs=pl.BlockSpec((tb, cp), lambda i: (i, 0)),          # lane-dense store
        compiler_params=pltpu.CompilerParams(
            dimension_semantics=("parallel",),
            vmem_limit_bytes=32 * 1024 * 1024,
        ),
    )


def fcn_forward(x, w1_t, b1_p, w2_t, b2_p, *, num_classes, input_pixels,
                max_batch_tile=512, slice_classes=True):
    """Forward pass: x.view(-1, 784) -> fc1 -> relu -> fc2 -> log_softmax."""
    x2 = x.reshape(-1, input_pixels)
    batch, in_dim = x2.shape
    hp = w1_t.shape[1]
    cp = w2_t.shape[1]

    tb = _choose_batch_tile(batch, max_tile=max_batch_tile)
    batch_p = _round_up(batch, tb)
    if batch_p != batch:
        # Zero-pad the batch so arbitrary batch sizes still get a large tile;
        # padded rows are sliced off below (rows are independent).
        x2 = jnp.pad(x2, ((0, batch_p - batch), (0, 0)))

    try:
        call = _build_call(batch_p, in_dim, hp, cp, tb, num_classes,
                           x2.dtype, single_buffer_weights=True)
        out_padded = call(x2, w1_t, b1_p, w2_t, b2_p)
    except Exception:
        # pl.Buffered(1) not supported by this jax version: fall back to the
        # default double-buffered (still grid-invariant) weight specs.
        call = _build_call(batch_p, in_dim, hp, cp, tb, num_classes,
                           x2.dtype, single_buffer_weights=False)
        out_padded = call(x2, w1_t, b1_p, w2_t, b2_p)

    out = out_padded[:batch]
    if slice_classes:
        # Matches the module's [B, num_classes] output.  For a fused consumer
        # (loss / argmax kernel) pass slice_classes=False and read only the
        # first num_classes lanes to avoid this extra HBM pass.
        out = out[:, :num_classes]
    return out


if __name__ == "__main__":
    # Shapes fixed by the module: 784 -> 500 -> 10.  Small, non-tile-aligned
    # batch to exercise padding and the 2-step parallel grid.
    batch = 96
    input_pixels = 28 * 28
    hidden = 500
    num_classes = 10

    key = jax.random.PRNGKey(0)
    kx, kw1, kb1, kw2, kb2 = jax.random.split(key, 5)

    # PyTorch-style nn.Linear init: U(-1/sqrt(fan_in), 1/sqrt(fan_in)).
    bound1 = 1.0 / jnp.sqrt(jnp.float32(input_pixels))
    w1 = jax.random.uniform(kw1, (hidden, input_pixels), jnp.float32,
                            minval=-bound1, maxval=bound1)
    b1 = jax.random.uniform(kb1, (hidden,), jnp.float32,
                            minval=-bound1, maxval=bound1)
    bound2 = 1.0 / jnp.sqrt(jnp.float32(hidden))
    w2 = jax.random.uniform(kw2, (num_classes, hidden), jnp.float32,
                            minval=-bound2, maxval=bound2)
    b2 = jax.random.uniform(kb2, (num_classes,), jnp.float32,
                            minval=-bound2, maxval=bound2)

    # Image-like input; forward flattens it exactly like x.view(-1, 784).
    x = jax.random.normal(kx, (batch, 1, 28, 28), jnp.float32)

    # Pure-JAX f32 reference (matches the module's math at f32 precision).
    with jax.default_matmul_precision("float32"):
        x2 = x.reshape(-1, input_pixels)
        ref = jax.nn.log_softmax(
            jnp.maximum(x2 @ w1.T + b1, 0.0) @ w2.T + b2, axis=-1)

    # 1) Exact path (f32 operands) — tight tolerance.
    p32 = prepare_fcn_params(w1, b1, w2, b2, param_dtype=jnp.float32)
    out32 = jax.block_until_ready(
        fcn_forward(x, *p32, num_classes=num_classes,
                    input_pixels=input_pixels))
    assert out32.shape == (batch, num_classes)
    assert jnp.allclose(out32, ref, atol=1e-3, rtol=1e-3), (
        float(jnp.max(jnp.abs(out32 - ref))))

    # 2) Fast path (bf16 matmul operands, f32 accumulation) — relaxed
    #    tolerance; log_softmax over 10 classes is well-conditioned.
    pbf = prepare_fcn_params(w1, b1, w2, b2, param_dtype=jnp.bfloat16)
    outbf = jax.block_until_ready(
        fcn_forward(x, *pbf, num_classes=num_classes,
                    input_pixels=input_pixels))
    assert outbf.shape == (batch, num_classes)
    assert jnp.allclose(outbf, ref, atol=5e-2, rtol=5e-2), (
        float(jnp.max(jnp.abs(outbf - ref))))

    print("KERNEL_OK")
</pallas_src>

<mosaic_0001>
module attributes {stable_mosaic.version = 11 : i64} {
  func.func @_fcn_kernel(%arg0: i32, %arg1: memref<64x784xf32, #tpu.memory_space<vmem>>, %arg2: memref<784x512xf32, #tpu.memory_space<vmem>>, %arg3: memref<1x512xf32, #tpu.memory_space<vmem>>, %arg4: memref<512x128xf32, #tpu.memory_space<vmem>>, %arg5: memref<1x128xf32, #tpu.memory_space<vmem>>, %arg6: memref<64x128xf32, #tpu.memory_space<vmem>>) attributes {dimension_semantics = [#tpu.dimension_semantics<parallel>], iteration_bounds = array<i64: 2>, scalar_prefetch = 0 : i64, scratch_operands = 0 : i64, tpu.core_type = #tpu.core_type<tc>, window_params = [{transform_indices = @transform_0, window_bounds = array<i64: 64, 784>}, {pipeline_mode = #tpu.pipeline_mode<synchronous>, transform_indices = @transform_1, window_bounds = array<i64: 784, 512>}, {pipeline_mode = #tpu.pipeline_mode<synchronous>, transform_indices = @transform_2, window_bounds = array<i64: 1, 512>}, {pipeline_mode = #tpu.pipeline_mode<synchronous>, transform_indices = @transform_3, window_bounds = array<i64: 512, 128>}, {pipeline_mode = #tpu.pipeline_mode<synchronous>, transform_indices = @transform_4, window_bounds = array<i64: 1, 128>}, {transform_indices = @transform_5, window_bounds = array<i64: 64, 128>}]} {
    %c0 = arith.constant 0 : index
    %c0_0 = arith.constant 0 : index
    %0 = vector.load %arg1[%c0, %c0_0] : memref<64x784xf32, #tpu.memory_space<vmem>>, vector<64x784xf32>
    %c0_1 = arith.constant 0 : index
    %c0_2 = arith.constant 0 : index
    %1 = vector.load %arg2[%c0_1, %c0_2] : memref<784x512xf32, #tpu.memory_space<vmem>>, vector<784x512xf32>
    %cst = arith.constant dense<0.000000e+00> : vector<64x512xf32>
    %2 = tpu.matmul %0, %1, %cst {dimension_numbers = #tpu.dot_dimension_numbers<[1], [0], [0], [1], [0, 0, 1, 1], [], []>} : vector<64x784xf32>, vector<784x512xf32>, vector<64x512xf32> -> vector<64x512xf32>
    %c0_3 = arith.constant 0 : index
    %c0_4 = arith.constant 0 : index
    %3 = vector.load %arg3[%c0_3, %c0_4] : memref<1x512xf32, #tpu.memory_space<vmem>>, vector<1x512xf32>
    %4 = vector.broadcast %3 : vector<1x512xf32> to vector<64x512xf32>
    %5 = arith.addf %2, %4 : vector<64x512xf32>
    %cst_5 = arith.constant 0.000000e+00 : f32
    %6 = vector.broadcast %cst_5 : f32 to vector<64x512xf32>
    %7 = arith.maximumf %5, %6 : vector<64x512xf32>
    %c0_6 = arith.constant 0 : index
    %c0_7 = arith.constant 0 : index
    %8 = vector.load %arg4[%c0_6, %c0_7] : memref<512x128xf32, #tpu.memory_space<vmem>>, vector<512x128xf32>
    %cst_8 = arith.constant dense<0.000000e+00> : vector<64x128xf32>
    %9 = tpu.matmul %7, %8, %cst_8 {dimension_numbers = #tpu.dot_dimension_numbers<[1], [0], [0], [1], [0, 0, 1, 1], [], []>} : vector<64x512xf32>, vector<512x128xf32>, vector<64x128xf32> -> vector<64x128xf32>
    %c0_9 = arith.constant 0 : index
    %c0_10 = arith.constant 0 : index
    %10 = vector.load %arg5[%c0_9, %c0_10] : memref<1x128xf32, #tpu.memory_space<vmem>>, vector<1x128xf32>
    %11 = vector.broadcast %10 : vector<1x128xf32> to vector<64x128xf32>
    %12 = arith.addf %9, %11 : vector<64x128xf32>
    %13 = tpu.iota {dimensions = array<i32: 1>} : vector<64x128xi32>
    %c10_i32 = arith.constant 10 : i32
    %14 = vector.broadcast %c10_i32 : i32 to vector<64x128xi32>
    %15 = arith.cmpi slt, %13, %14 : vector<64x128xi32>
    %cst_11 = arith.constant -1.000000e+30 : f32
    %16 = vector.broadcast %cst_11 : f32 to vector<64x128xf32>
    %17 = arith.select %15, %12, %16 : vector<64x128xi1>, vector<64x128xf32>
    %cst_12 = arith.constant dense<0xFF800000> : vector<64xf32>
    %18 = vector.multi_reduction <maximumf>, %17, %cst_12 [1] : vector<64x128xf32> to vector<64xf32>
    %19 = vector.shape_cast %18 : vector<64xf32> to vector<64x1xf32>
    %20 = vector.broadcast %19 : vector<64x1xf32> to vector<64x128xf32>
    %21 = arith.subf %17, %20 : vector<64x128xf32>
    %22 = math.exp %21 : vector<64x128xf32>
    %cst_13 = arith.constant dense<0.000000e+00> : vector<64xf32>
    %23 = vector.multi_reduction <add>, %22, %cst_13 [1] : vector<64x128xf32> to vector<64xf32>
    %24 = vector.shape_cast %23 : vector<64xf32> to vector<64x1xf32>
    %25 = math.log %24 : vector<64x1xf32>
    %26 = arith.addf %19, %25 : vector<64x1xf32>
    %27 = vector.broadcast %26 : vector<64x1xf32> to vector<64x128xf32>
    %28 = arith.subf %12, %27 : vector<64x128xf32>
    %c0_14 = arith.constant 0 : index
    %c0_15 = arith.constant 0 : index
    %29 = vector.load %arg6[%c0_14, %c0_15] : memref<64x128xf32, #tpu.memory_space<vmem>>, vector<64x128xf32>
    tpu.vector_store %arg6[%c0_14, %c0_15], %28 {strides = array<i32>} : memref<64x128xf32, #tpu.memory_space<vmem>>, vector<64x128xf32>,
    return
  }
  func.func @transform_0(%arg0: i32) -> (i32, i32) {
    %c0_i32 = arith.constant 0 : i32
    %c0_i32_0 = arith.constant 0 : i32
    return %arg0, %c0_i32 : i32, i32
  }
  func.func @transform_1(%arg0: i32) -> (i32, i32) {
    %c0_i32 = arith.constant 0 : i32
    %c0_i32_0 = arith.constant 0 : i32
    %c0_i32_1 = arith.constant 0 : i32
    return %c0_i32, %c0_i32_0 : i32, i32
  }
  func.func @transform_2(%arg0: i32) -> (i32, i32) {
    %c0_i32 = arith.constant 0 : i32
    %c0_i32_0 = arith.constant 0 : i32
    %c0_i32_1 = arith.constant 0 : i32
    return %c0_i32, %c0_i32_0 : i32, i32
  }
  func.func @transform_3(%arg0: i32) -> (i32, i32) {
    %c0_i32 = arith.constant 0 : i32
    %c0_i32_0 = arith.constant 0 : i32
    %c0_i32_1 = arith.constant 0 : i32
    return %c0_i32, %c0_i32_0 : i32, i32
  }
  func.func @transform_4(%arg0: i32) -> (i32, i32) {
    %c0_i32 = arith.constant 0 : i32
    %c0_i32_0 = arith.constant 0 : i32
    %c0_i32_1 = arith.constant 0 : i32
    return %c0_i32, %c0_i32_0 : i32, i32
  }
  func.func @transform_5(%arg0: i32) -> (i32, i32) {
    %c0_i32 = arith.constant 0 : i32
    %c0_i32_0 = arith.constant 0 : i32
    return %arg0, %c0_i32 : i32, i32
  }
}

module attributes {stable_mosaic.version = 11 : i64} {
  func.func @_fcn_kernel(%arg0: i32, %arg1: memref<64x784xf32, #tpu.memory_space<vmem>>, %arg2: memref<784x512xf32, #tpu.memory_space<vmem>>, %arg3: memref<1x512xf32, #tpu.memory_space<vmem>>, %arg4: memref<512x128xf32, #tpu.memory_space<vmem>>, %arg5: memref<1x128xf32, #tpu.memory_space<vmem>>, %arg6: memref<64x128xf32, #tpu.memory_space<vmem>>) attributes {dimension_semantics = [#tpu.dimension_semantics<parallel>], iteration_bounds = array<i64: 2>, scalar_prefetch = 0 : i64, scratch_operands = 0 : i64, tpu.core_type = #tpu.core_type<tc>, window_params = [{transform_indices = @transform_0, window_bounds = array<i64: 64, 784>}, {pipeline_mode = #tpu.pipeline_mode<synchronous>, transform_indices = @transform_1, window_bounds = array<i64: 784, 512>}, {pipeline_mode = #tpu.pipeline_mode<synchronous>, transform_indices = @transform_2, window_bounds = array<i64: 1, 512>}, {pipeline_mode = #tpu.pipeline_mode<synchronous>, transform_indices = @transform_3, window_bounds = array<i64: 512, 128>}, {pipeline_mode = #tpu.pipeline_mode<synchronous>, transform_indices = @transform_4, window_bounds = array<i64: 1, 128>}, {transform_indices = @transform_5, window_bounds = array<i64: 64, 128>}]} {
    %c0 = arith.constant 0 : index
    %c0_0 = arith.constant 0 : index
    %0 = vector.load %arg1[%c0, %c0_0] : memref<64x784xf32, #tpu.memory_space<vmem>>, vector<64x784xf32>
    %c0_1 = arith.constant 0 : index
    %c0_2 = arith.constant 0 : index
    %1 = vector.load %arg2[%c0_1, %c0_2] : memref<784x512xf32, #tpu.memory_space<vmem>>, vector<784x512xf32>
    %cst = arith.constant dense<0.000000e+00> : vector<64x512xf32>
    %2 = tpu.matmul %0, %1, %cst {dimension_numbers = #tpu.dot_dimension_numbers<[1], [0], [0], [1], [0, 0, 1, 1], [], []>} : vector<64x784xf32>, vector<784x512xf32>, vector<64x512xf32> -> vector<64x512xf32>
    %c0_3 = arith.constant 0 : index
    %c0_4 = arith.constant 0 : index
    %3 = vector.load %arg3[%c0_3, %c0_4] : memref<1x512xf32, #tpu.memory_space<vmem>>, vector<1x512xf32>
    %4 = vector.broadcast %3 : vector<1x512xf32> to vector<64x512xf32>
    %5 = arith.addf %2, %4 : vector<64x512xf32>
    %cst_5 = arith.constant 0.000000e+00 : f32
    %6 = vector.broadcast %cst_5 : f32 to vector<64x512xf32>
    %7 = arith.maximumf %5, %6 : vector<64x512xf32>
    %c0_6 = arith.constant 0 : index
    %c0_7 = arith.constant 0 : index
    %8 = vector.load %arg4[%c0_6, %c0_7] : memref<512x128xf32, #tpu.memory_space<vmem>>, vector<512x128xf32>
    %cst_8 = arith.constant dense<0.000000e+00> : vector<64x128xf32>
    %9 = tpu.matmul %7, %8, %cst_8 {dimension_numbers = #tpu.dot_dimension_numbers<[1], [0], [0], [1], [0, 0, 1, 1], [], []>} : vector<64x512xf32>, vector<512x128xf32>, vector<64x128xf32> -> vector<64x128xf32>
    %c0_9 = arith.constant 0 : index
    %c0_10 = arith.constant 0 : index
    %10 = vector.load %arg5[%c0_9, %c0_10] : memref<1x128xf32, #tpu.memory_space<vmem>>, vector<1x128xf32>
    %11 = vector.broadcast %10 : vector<1x128xf32> to vector<64x128xf32>
    %12 = arith.addf %9, %11 : vector<64x128xf32>
    %13 = tpu.iota {dimensions = array<i32: 1>} : vector<64x128xi32>
    %c10_i32 = arith.constant 10 : i32
    %14 = vector.broadcast %c10_i32 : i32 to vector<64x128xi32>
    %15 = arith.cmpi slt, %13, %14 : vector<64x128xi32>
    %cst_11 = arith.constant -1.000000e+30 : f32
    %16 = vector.broadcast %cst_11 : f32 to vector<64x128xf32>
    %17 = arith.select %15, %12, %16 : vector<64x128xi1>, vector<64x128xf32>
    %cst_12 = arith.constant dense<0xFF800000> : vector<64xf32>
    %18 = vector.multi_reduction <maximumf>, %17, %cst_12 [1] : vector<64x128xf32> to vector<64xf32>
    %19 = vector.shape_cast %18 : vector<64xf32> to vector<64x1xf32>
    %20 = vector.broadcast %19 : vector<64x1xf32> to vector<64x128xf32>
    %21 = arith.subf %17, %20 : vector<64x128xf32>
    %22 = math.exp %21 : vector<64x128xf32>
    %cst_13 = arith.constant dense<0.000000e+00> : vector<64xf32>
    %23 = vector.multi_reduction <add>, %22, %cst_13 [1] : vector<64x128xf32> to vector<64xf32>
    %24 = vector.shape_cast %23 : vector<64xf32> to vector<64x1xf32>
    %25 = math.log %24 : vector<64x1xf32>
    %26 = arith.addf %19, %25 : vector<64x1xf32>
    %27 = vector.broadcast %26 : vector<64x1xf32> to vector<64x128xf32>
    %28 = arith.subf %12, %27 : vector<64x128xf32>
    %c0_14 = arith.constant 0 : index
    %c0_15 = arith.constant 0 : index
    %29 = vector.load %arg6[%c0_14, %c0_15] : memref<64x128xf32, #tpu.memory_space<vmem>>, vector<64x128xf32>
    tpu.vector_store %arg6[%c0_14, %c0_15], %28 {strides = array<i32>} : memref<64x128xf32, #tpu.memory_space<vmem>>, vector<64x128xf32>,
    return
  }
  func.func @transform_0(%arg0: i32) -> (i32, i32) {
    %c0_i32 = arith.constant 0 : i32
    %c0_i32_0 = arith.constant 0 : i32
    return %arg0, %c0_i32 : i32, i32
  }
  func.func @transform_1(%arg0: i32) -> (i32, i32) {
    %c0_i32 = arith.constant 0 : i32
    %c0_i32_0 = arith.constant 0 : i32
    %c0_i32_1 = arith.constant 0 : i32
    return %c0_i32, %c0_i32_0 : i32, i32
  }
  func.func @transform_2(%arg0: i32) -> (i32, i32) {
    %c0_i32 = arith.constant 0 : i32
    %c0_i32_0 = arith.constant 0 : i32
    %c0_i32_1 = arith.constant 0 : i32
    return %c0_i32, %c0_i32_0 : i32, i32
  }
  func.func @transform_3(%arg0: i32) -> (i32, i32) {
    %c0_i32 = arith.constant 0 : i32
    %c0_i32_0 = arith.constant 0 : i32
    %c0_i32_1 = arith.constant 0 : i32
    return %c0_i32, %c0_i32_0 : i32, i32
  }
  func.func @transform_4(%arg0: i32) -> (i32, i32) {
    %c0_i32 = arith.constant 0 : i32
    %c0_i32_0 = arith.constant 0 : i32
    %c0_i32_1 = arith.constant 0 : i32
    return %c0_i32, %c0_i32_0 : i32, i32
  }
  func.func @transform_5(%arg0: i32) -> (i32, i32) {
    %c0_i32 = arith.constant 0 : i32
    %c0_i32_0 = arith.constant 0 : i32
    return %arg0, %c0_i32 : i32, i32
  }
}

</mosaic_0001>

<bundles_post_ra>
// kernel: tpu_custom_call.1
= control target key start
LH: loop header
LB: loop body
LE: loop exit
PB: predicated region body
PF: predicated region fallthrough
CT: control target
= control target key end

     0   :  { %s3774_s0 = inlined_call_operand.vmem [shape: f32[128,784], index: 0, kind: input, shape index: {}]   ;;  %s3775_s1 = inlined_call_operand.hbm [shape: f32[784,512], index: 1, kind: input, shape index: {}]   ;;  %s3776_s2 = inlined_call_operand.hbm [shape: f32[1,512], index: 2, kind: input, shape index: {}]   ;;  %s3777_s3 = inlined_call_operand.hbm [shape: f32[512,128], index: 3, kind: input, shape index: {}]   ;;  %s3778_s4 = inlined_call_operand.hbm [shape: f32[1,128], index: 4, kind: input, shape index: {}]   ;;  %s3779_s5 = inlined_call_operand.hbm [shape: f32[128,128], index: 5, kind: output, shape index: {}]  }
   0x1   :  { %3783 = sst [smem:[#allocation15_spill]] %s3775_s1 }
   0x2   :  { %10 = vsyncpa [#allocation3], 0 }
   0x3   :  { %11 = vsyncpa [#allocation6], 0 }
   0x4   :  { %12 = vsyncpa [#allocation9], 0 }
   0x5   :  { %13 = vsyncpa [#allocation4], 0 }
   0x6   :  { %15 = vsyncpa [#allocation4 + $0x1], 0  ;;  %s3304_s18 = smov 0   ;;  %s3306_s19 = smov 0  }
   0x7   :  { %s3308_s20 = smov 0   ;;  %s3310_s21 = smov 0  }
   0x8 LB: > { %s3325_s22 = sadd.s32 4294967295, %s3260_s21   ;;  %s2220_s23 = sadd.s32 4294967294, %s3260_s21   ;;  %s3260_s21 = sphi %s3310_s21, %s3803_s21   ;;  %s3256_s20 = sphi %s3308_s20, %s3802_s20   ;;  %s3252_s19 = sphi %s3306_s19, %s3801_s19   ;;  %s3248_s18 = sphi %s3304_s18, %s3800_s18  }
   0x9   : > { %s3329_s24 = sadd.s32 1, %s3260_s21   ;;  %s138_s25 = sadd.s32 1, %s3256_s20 }
   0xa   : > { %s135_s26 = ssub.s32 %s3260_s21, %s3329_s24  ;;  %p148_p0 = scmp.ne.s32.totalorder %s3256_s20, %s3252_s19 }
   0xb   : > { %p136_p1 = scmp.eq.s32.totalorder %s135_s26, 0  ;;  %p149_p2 = scmp.eq.s32.totalorder %s3325_s22, 1 }
   0xc   : > { %p154_p3 = scmp.ne.s32.totalorder %s3252_s19, %s3248_s18  ;;  %p155_p4 = scmp.eq.s32.totalorder %s2220_s23, 1 }
   0xd   : > { %s3340_s27 = scalar_select %p136_p1, %s3256_s20, %s138_s25  }
   0xe   : > { %p3342_p5 = por %p149_p2, %p148_p0  ;;  %p3346_p6 = por %p155_p4, %p154_p3 }
   0xf   : > { %p2221_p7 = scmp.ge.s32.totalorder %s3260_s21, 1  ;;  %p162_p8 = scmp.lt.s32.totalorder %s3260_s21, 3 }
  0x10   : > { %s3784_s28 = scalar_select %p3342_p5, 1, 0 }
  0x11   : > { %s3785_s29 = scalar_select %p3346_p6, 1, 0 }
  0x12   : > { %p3780_p9 = scmp.eq.s32.totalorder %s3325_s22, 0  ;;  %p3353_p10 = pnand %p2221_p7, %p162_p8 }
  0x13   : > { %s3262_s6 = smov [#allocation5]   ;;  %s3263_s8 = smov [#allocation2]  }
  0x14   : > { %s3786_s30 = scalar_select %p3353_p10, 1, 0 }
  0x15   : > { %s188_s7 = sshll.u32 %s3262_s6, 4  ;;  %p2973_p11 = pneg %p3353_p10  ;;  %s189_s7 = int_to_ptr.vmem [resolvable:$true] %s188_s7 }
  0x16   : > { %s174_s9 = sshll.u32 %s3263_s8, 4  ;;  %s3264_s11 = smov [#allocation7]   ;;  %s3365_s9 = int_to_ptr.vmem [resolvable:$true] %s174_s9 }
  0x17   : > { %p3361_p12 = pnand %p3780_p9, %p2973_p11  ;;  %s3367_s12 = sshll.u32 %s3264_s11, 4  ;;  %s199_s12 = int_to_ptr.vmem [resolvable:$true] %s3367_s12 }
  0x18   : > { %s3074_s15 = scalar_lea.hbm %s3776_s2, 64 }
  0x19   : > { %p3075_p13 = scmp.ne.s32.totalorder %s3776_s2, %s3074_s15  ;;  %p3377_p0 = pneg %p3361_p12 }
  0x1a   : > { %p3081_p3 = scmp.lt.u32.totalorder %s3074_s15, %s3776_s2 }
  0x1b   : > { %p3077_p1 = pnand %p3377_p0, %p3075_p13 }
  0x1d   : > { %p3078_p2 = pneg %p3077_p1 }
  0x1f   : > { %p3083_p4 = pnand %p3081_p3, %p3078_p2 }
  0x21   : > { %3086 = shalt.err (!%p3083_p4)
}
  0x22   : > { %s3087_s6 = scalar_lea.vmem %s189_s7, 64  ;;  %p3095_p9 = scmp.lt.s32.totalorder %s189_s7, %s189_s7 }
  0x23   : > { %p3088_p7 = scmp.ne.s32.totalorder %s189_s7, %s3087_s6  ;;  %p3096_p6 = scmp.lt.s32.totalorder %s3087_s6, %s3087_s6 }
  0x25   : > { %p3090_p8 = pnand %p3088_p7, %p3377_p0  ;;  %p3097_p5 = por %p3096_p6, %p3095_p9 }
  0x27   : > { %p3091_p11 = pneg %p3090_p8 }
  0x29   : > { %p3098_p10 = pnand %p3097_p5, %p3091_p11 }
  0x2b   : > { %3101 = shalt.err (!%p3098_p10)
}
  0x2c   : > { %2979 = dma.hbm_to_vmem [thread:$0]  (!%p3361_p12), %s3776_s2, 64, %s189_s7, [#allocation6]  }
  0x2d   : > { %s3789_s1 = sld [smem:[#allocation15_spill]] }
  0x33   : > { %s3102_s15 = scalar_lea.hbm %s3789_s1, 50176 }
  0x34   : > { %p3103_p13 = scmp.ne.s32.totalorder %s3789_s1, %s3102_s15  ;;  %p3109_p5 = scmp.lt.u32.totalorder %s3102_s15, %s3789_s1 }
  0x36   : > { %p3105_p1 = pnand %p3103_p13, %p3377_p0 }
  0x38   : > { %p3106_p6 = pneg %p3105_p1 }
  0x3a   : > { %p3111_p9 = pnand %p3109_p5, %p3106_p6 }
  0x3c   : > { %3114 = shalt.err (!%p3111_p9)
}
  0x3d   : > { %s3115_s7 = scalar_lea.vmem %s3365_s9, 50176  ;;  %p3123_p4 = scmp.lt.s32.totalorder %s3365_s9, %s3365_s9 }
  0x3e   : > { %p3116_p10 = scmp.ne.s32.totalorder %s3365_s9, %s3115_s7  ;;  %p3124_p7 = scmp.lt.s32.totalorder %s3115_s7, %s3115_s7 }
  0x40   : > { %p3118_p2 = pnand %p3116_p10, %p3377_p0  ;;  %p3125_p8 = por %p3124_p7, %p3123_p4 }
  0x42   : > { %p3119_p3 = pneg %p3118_p2 }
  0x44   : > { %p3126_p11 = pnand %p3125_p8, %p3119_p3 }
  0x46   : > { %3129 = shalt.err (!%p3126_p11)
}
  0x47   : > { %s3265_s6 = smov 512   ;;  %s3266_s8 = smov 32  }
  0x48   : > { %2976 = dma.hbm_to_vmem [thread:$0]  (!%p3361_p12), %s3789_s1, 50176, %s3365_s9, [#allocation3], %s3265_s6, %s3265_s6, %s3266_s8  }
  0x49   : > { %s3130_s16 = scalar_lea.hbm %s3777_s3, 8192 }
  0x4a   : > { %p3131_p13 = scmp.ne.s32.totalorder %s3777_s3, %s3130_s16  ;;  %p3137_p5 = scmp.lt.u32.totalorder %s3130_s16, %s3777_s3 }
  0x4c   : > { %p3133_p1 = pnand %p3131_p13, %p3377_p0 }
  0x4e   : > { %p3134_p6 = pneg %p3133_p1 }
  0x50   : > { %p3139_p9 = pnand %p3137_p5, %p3134_p6 }
  0x52   : > { %3142 = shalt.err (!%p3139_p9)
}
  0x53   : > { %s3143_s11 = scalar_lea.vmem %s199_s12, 8192  ;;  %p3151_p4 = scmp.lt.s32.totalorder %s199_s12, %s199_s12 }
  0x54   : > { %p3144_p10 = scmp.ne.s32.totalorder %s199_s12, %s3143_s11  ;;  %p3152_p7 = scmp.lt.s32.totalorder %s3143_s11, %s3143_s11 }
  0x56   : > { %p3146_p2 = pnand %p3144_p10, %p3377_p0  ;;  %p3153_p8 = por %p3152_p7, %p3151_p4 }
  0x58   : > { %p3147_p3 = pneg %p3146_p2 }
  0x5a   : > { %p3154_p11 = pnand %p3153_p8, %p3147_p3 }
  0x5c   : > { %3157 = shalt.err (!%p3154_p11)
}
  0x5d   : > { %s3267_s9 = smov 128   ;;  %s3268_s6 = smov 8  }
  0x5e   : > { %2982 = dma.hbm_to_vmem [thread:$0]  (!%p3361_p12), %s3777_s3, 8192, %s199_s12, [#allocation6], %s3267_s9, %s3267_s9, %s3268_s6  }
  0x5f   : > { %s3269_s14 = smov [#allocation8]   ;;  %s3158_s25 = scalar_lea.hbm %s3778_s4, 16 }
  0x60   : > { %s212_s15 = sshll.u32 %s3269_s14, 4  ;;  %p3159_p13 = scmp.ne.s32.totalorder %s3778_s4, %s3158_s25  ;;  %s213_s15 = int_to_ptr.vmem [resolvable:$true] %s212_s15 }
  0x61   : > { %p3165_p5 = scmp.lt.u32.totalorder %s3158_s25, %s3778_s4 }
  0x62   : > { %p3161_p1 = pnand %p3159_p13, %p3377_p0 }
  0x64   : > { %p3162_p6 = pneg %p3161_p1 }
  0x66   : > { %p3167_p9 = pnand %p3165_p5, %p3162_p6 }
  0x68   : > { %3170 = shalt.err (!%p3167_p9)
}
  0x69   : > { %s3171_s12 = scalar_lea.vmem %s213_s15, 16  ;;  %s3178_s9 = scalar_lea.vmem %s213_s15, 32 }
  0x6a   : > { %p3172_p10 = scmp.ne.s32.totalorder %s213_s15, %s3171_s12  ;;  %p3179_p4 = scmp.lt.s32.totalorder %s213_s15, %s213_s15 }
  0x6b   : > { %p3180_p7 = scmp.lt.s32.totalorder %s3178_s9, %s3171_s12 }
  0x6c   : > { %p3174_p2 = pnand %p3172_p10, %p3377_p0 }
  0x6d   : > { %p3181_p8 = por %p3180_p7, %p3179_p4 }
  0x6e   : > { %p3175_p3 = pneg %p3174_p2 }
  0x70   : > { %p3182_p11 = pnand %p3181_p8, %p3175_p3 }
  0x72   : > { %3185 = shalt.err (!%p3182_p11)
}
  0x73   : > { %2985 = dma.hbm_to_vmem [thread:$0]  (!%p3361_p12), %s3778_s4, 16, %s213_s15, [#allocation9]  }
  0x74   : > { %p3790_p13 = scmp.ne.s32.totalorder %s3786_s30, 0 }
  0x75   : > { %p3791_p1 = scmp.eq.s32.totalorder (!%p3790_p13), %s3325_s22, 0 }
  0x76   : > { %235 = sbr.rel (%p3790_p13) target bundleno = 1158 (0x486), region = 40 }
  0x7d   : > { %3231 = dma.done.wait (%p3791_p1), [#allocation3], 50176   ;;  %p3792_p0 = pmov %p3791_p1 }
  0x7f   : > { %3233 = vsyncadd (%p3792_p0), [#allocation3], 4294917120  ;;  %p3793_p6 = pmov %p3792_p0 }
  0x80   : > { %p3794_p5 = pmov %p3792_p0 }
  0x81   : > { %3235 = dma.done.wait (%p3793_p6), [#allocation6], 8256  }
  0x82   : > { %3237 = vsyncadd (%p3794_p5), [#allocation6], 4294959040  ;;  %p3795_p9 = pmov %p3792_p0 }
  0x83   : > { %p3796_p12 = pmov %p3792_p0 }
  0x84   : > { %3239 = dma.done.wait (%p3795_p9), [#allocation9], 16  }
  0x85   : > { %3241 = vsyncadd (%p3796_p12), [#allocation9], 4294967280  ;;  %v341_v0 = vld [vmem:[#allocation2 + $0x8] sm:$0xff]  ;;  %v343_v2 = vld [vmem:[#allocation2 + $0x18] sm:$0xff]  ;;  %s2233_s1 = sshll.u32 %s3325_s22, 3  ;;  %vm754_vm0 = vcmask 130048  }
  0x86   : > { %v345_v1 = vld [vmem:[#allocation2 + $0x28] sm:$0xff]  ;;  %v347_v4 = vld [vmem:[#allocation2 + $0x38] sm:$0xff]  ;;  %v340_v5 = vld [vmem:[#allocation2] sm:$0xff]  ;;  %p3470_p10 = scmp.lt.s32.totalorder %s2233_s1, 15  ;;  %s273_s15 = sand.u32 1, %s3252_s19  }
  0x87   : > { %v2370_v3 = vpack.c.bf16 %v345_v1, %v341_v0  ;;  %v344_v6 = vld [vmem:[#allocation2 + $0x20] sm:$0xff]  ;;  %v2566_v7 = vpack.c.bf16 %v347_v4, %v343_v2  ;;  %v342_v9 = vld [vmem:[#allocation2 + $0x10] sm:$0xff]  ;;  %v349_v11 = vld [vmem:[#allocation2 + $0x48] sm:$0xff]  ;;  %s2232_s16 = sshll.u32 %s273_s15, 6  ;;  %s2257_s25 = sshll.u32 %s3325_s22, 10 }
  0x88   : > { %v2372_v8 = vpack.c.bf16 %v344_v6, %v340_v5  ;;  %v346_v10 = vld [vmem:[#allocation2 + $0x30] sm:$0xff]  ;;  %v353_v13 = vld [vmem:[#allocation2 + $0x68] sm:$0xff]  ;;  %v351_v14 = vld [vmem:[#allocation2 + $0x58] sm:$0xff]  ;;  %s3805_s1 = smov (!%p3470_p10, %s2233_s1), 15  ;;  %s3698_s17 = scalar_lea.vmem [#allocation10], %s2232_s16 }
  0x89   : > { %2371 = vmatprep.subr.bf16.mxu0 %v2370_v3  ;;  %v2568_v12 = vpack.c.bf16 %v346_v10, %v342_v9  ;;  %v355_v15 = vld [vmem:[#allocation2 + $0x78] sm:$0xff]  ;;  %2567 = vmatprep.subr.bf16.mxu1 %v2566_v7  ;;  %v2374_v16 = vpack.c.bf16 %v353_v13, %v349_v11  ;;  %v348_v18 = vld [vmem:[#allocation2 + $0x40] sm:$0xff]  ;;  %v350_v20 = vld [vmem:[#allocation2 + $0x50] sm:$0xff]  ;;  %s2954_s10 = smul.u32 56, %s3805_s1  ;;  %s2117_s26 = sshll.u32 %s3698_s17, 4  ;;  %s3727_s26 = int_to_ptr.vmem [resolvable:$true] %s2117_s26 }
  0x8a   : > { %2373 = vmatpush1.bf16.msra.mxu0 %v2372_v8  ;;  %v2570_v17 = vpack.c.bf16 %v355_v15, %v351_v14  ;;  %v352_v19 = vld [vmem:[#allocation2 + $0x60] sm:$0xff]  ;;  %v354_v22 = vld [vmem:[#allocation2 + $0x70] sm:$0xff]  ;;  %v357_v23 = vld [vmem:[#allocation2 + $0x88] sm:$0xff]  ;;  %s3725_s12 = scalar_lea.hbm %s3779_s5, %s2257_s25  ;;  %s3733_s9 = scalar_lea.sflag [#allocation4], %s273_s15 }
  0x8b   : > { %2569 = vmatpush1.bf16.msra.mxu1 %v2568_v12  ;;  %v2376_v21 = vpack.c.bf16 %v352_v19, %v348_v18  ;;  %v361_v24 = vld [vmem:[#allocation2 + $0xa8] sm:$0xff]  ;;  %2375 = vmatprep.subr.bf16.mxu0 %v2374_v16  ;;  %v2572_v25 = vpack.c.bf16 %v354_v22, %v350_v20  ;;  %v359_v27 = vld [vmem:[#allocation2 + $0x98] sm:$0xff]  ;;  %v356_v29 = vld [vmem:[#allocation2 + $0x80] sm:$0xff]  ;;  %s3484_s14 = scalar_lea.vmem %s3774_s0, %s2954_s10  ;;  %s3186_s22 = scalar_lea.vmem %s3727_s26, 1024 }
  0x8c   : > { %2571 = vmatprep.subr.bf16.mxu1 %v2570_v17  ;;  %v2378_v26 = vpack.c.bf16 %v361_v24, %v357_v23  ;;  %v363_v28 = vld [vmem:[#allocation2 + $0xb8] sm:$0xff]  ;;  %v360_v31 = vld [vmem:[#allocation2 + $0xa0] sm:$0xff]  ;;  %v358_v32 = vld [vmem:[#allocation2 + $0x90] sm:$0xff]  ;;  %p3187_p2 = scmp.ne.s32.totalorder %s3727_s26, %s3186_s22  ;;  %p3798_p3 = scmp.ne.s32.totalorder %s3784_s28, 0 }
  0x8d   : > { %v2574_v30 = vpack.c.bf16 %v363_v28, %v359_v27  ;;  %v362_v33 = vld [vmem:[#allocation2 + $0xb0] sm:$0xff]  ;;  %v2380_v34 = vpack.c.bf16 %v360_v31, %v356_v29  ;;  %v365_v35 = vld [vmem:[#allocation2 + $0xc8] sm:$0xff]  ;;  %v367_v37 = vld [vmem:[#allocation2 + $0xd8] sm:$0xff]  ;;  %s3271_s6 = smov [#allocation10]  }
  0x8e   : > { %2377 = vmatpush1.bf16.msra.mxu0 %v2376_v21  ;;  %v369_v36 = vld [vmem:[#allocation2 + $0xe8] sm:$0xff]  ;;  %v2576_v38 = vpack.c.bf16 %v362_v33, %v358_v32  ;;  %v371_v40 = vld [vmem:[#allocation2 + $0xf8] sm:$0xff]  ;;  %v364_v41 = vld [vmem:[#allocation2 + $0xc0] sm:$0xff]  ;;  %p3188_p4 = pnand %p3187_p2, %p3798_p3  ;;  %s3190_s8 = sshll.u32 %s3271_s6, 4  ;;  %s3191_s8 = int_to_ptr.vmem [resolvable:$false] %s3190_s8 }
  0x8f   : > { %2573 = vmatpush1.bf16.msra.mxu1 %v2572_v25  ;;  %2379 = vmatprep.subr.bf16.mxu0 %v2378_v26  ;;  %v2382_v39 = vpack.c.bf16 %v369_v36, %v365_v35  ;;  %v368_v42 = vld [vmem:[#allocation2 + $0xe0] sm:$0xff]  ;;  %v2578_v43 = vpack.c.bf16 %v371_v40, %v367_v37  ;;  %v366_v44 = vld [vmem:[#allocation2 + $0xd0] sm:$0xff]  ;;  %v373_v46 = vld [vmem:[#allocation2 + $0x108] sm:$0xff]  ;;  %s3192_s1 = scalar_lea.vmem %s3191_s8, 2048  ;;  %p3193_p8 = scmp.lt.s32.totalorder %s3727_s26, %s3191_s8 }
  0x90   : > { %2575 = vmatprep.subr.bf16.mxu1 %v2574_v30  ;;  %v370_v45 = vld [vmem:[#allocation2 + $0xf0] sm:$0xff]  ;;  %v377_v47 = vld [vmem:[#allocation2 + $0x128] sm:$0xff]  ;;  %v375_v48 = vld [vmem:[#allocation2 + $0x118] sm:$0xff]  ;;  %v2384_v50 = vpack.c.bf16 %v368_v42, %v364_v41  ;;  %p3189_p7 = pneg %p3188_p4  ;;  %p3194_p11 = scmp.lt.s32.totalorder %s3192_s1, %s3186_s22 }
  0x91   : > { %v379_v49 = vld [vmem:[#allocation2 + $0x138] sm:$0xff]  ;;  %v2580_v51 = vpack.c.bf16 %v370_v45, %v366_v44  ;;  %v2386_v52 = vpack.c.bf16 %v377_v47, %v373_v46  ;;  %v372_v53 = vld [vmem:[#allocation2 + $0x100] sm:$0xff]  ;;  %v374_v55 = vld [vmem:[#allocation2 + $0x110] sm:$0xff] }
  0x92   : > { %2381 = vmatpush1.bf16.msra.mxu0 %v2380_v34  ;;  %v376_v54 = vld [vmem:[#allocation2 + $0x120] sm:$0xff]  ;;  %v2582_v56 = vpack.c.bf16 %v379_v49, %v375_v48  ;;  %v378_v57 = vld [vmem:[#allocation2 + $0x130] sm:$0xff]  ;;  %v381_v58 = vld [vmem:[#allocation2 + $0x148] sm:$0xff]  ;;  %p3195_p13 = por %p3194_p11, %p3193_p8 }
  0x93   : > { %2577 = vmatpush1.bf16.msra.mxu1 %v2576_v38  ;;  %2383 = vmatprep.subr.bf16.mxu0 %v2382_v39  ;;  %v385_v59 = vld [vmem:[#allocation2 + $0x168] sm:$0xff]  ;;  %v383_v60 = vld [vmem:[#allocation2 + $0x158] sm:$0xff]  ;;  %v2388_v62 = vpack.c.bf16 %v376_v54, %v372_v53  ;;  %v2584_v63 = vpack.c.bf16 %v378_v57, %v374_v55  ;;  %v380_v1 = vld [vmem:[#allocation2 + $0x140] sm:$0xff] }
  0x94   : > { %2579 = vmatprep.subr.bf16.mxu1 %v2578_v43  ;;  %v387_v61 = vld [vmem:[#allocation2 + $0x178] sm:$0xff]  ;;  %v2390_v0 = vpack.c.bf16 %v385_v59, %v381_v58  ;;  %v384_v2 = vld [vmem:[#allocation2 + $0x160] sm:$0xff]  ;;  %v382_v3 = vld [vmem:[#allocation2 + $0x150] sm:$0xff]  ;;  %p3196_p1 = pnand %p3195_p13, %p3189_p7 }
  0x95   : > { %v2586_v4 = vpack.c.bf16 %v387_v61, %v383_v60  ;;  %v386_v5 = vld [vmem:[#allocation2 + $0x170] sm:$0xff]  ;;  %v389_v6 = vld [vmem:[#allocation2 + $0x188] sm:$0xff]  ;;  %v391_v8 = vld [vmem:[#allocation2 + $0x198] sm:$0xff]  ;;  %v2392_v10 = vpack.c.bf16 %v384_v2, %v380_v1 }
  0x96   : > { %2385 = vmatpush1.bf16.msra.mxu0 %v2384_v50  ;;  %v393_v7 = vld [vmem:[#allocation2 + $0x1a8] sm:$0xff]  ;;  %v395_v9 = vld [vmem:[#allocation2 + $0x1b8] sm:$0xff]  ;;  %v2588_v11 = vpack.c.bf16 %v386_v5, %v382_v3  ;;  %v388_v13 = vld [vmem:[#allocation2 + $0x180] sm:$0xff] }
  0x97   : > { %2581 = vmatpush1.bf16.msra.mxu1 %v2580_v51  ;;  %2387 = vmatprep.subr.bf16.mxu0 %v2386_v52  ;;  %v2394_v12 = vpack.c.bf16 %v393_v7, %v389_v6  ;;  %v392_v14 = vld [vmem:[#allocation2 + $0x1a0] sm:$0xff]  ;;  %v390_v15 = vld [vmem:[#allocation2 + $0x190] sm:$0xff]  ;;  %v2590_v16 = vpack.c.bf16 %v395_v9, %v391_v8  ;;  %v397_v18 = vld [vmem:[#allocation2 + $0x1c8] sm:$0xff] }
  0x98   : > { %2583 = vmatprep.subr.bf16.mxu1 %v2582_v56  ;;  %v394_v17 = vld [vmem:[#allocation2 + $0x1b0] sm:$0xff]  ;;  %v401_v19 = vld [vmem:[#allocation2 + $0x1e8] sm:$0xff]  ;;  %v399_v20 = vld [vmem:[#allocation2 + $0x1d8] sm:$0xff]  ;;  %v2396_v22 = vpack.c.bf16 %v392_v14, %v388_v13 }
  0x99   : > { %v403_v21 = vld [vmem:[#allocation2 + $0x1f8] sm:$0xff]  ;;  %v2592_v23 = vpack.c.bf16 %v394_v17, %v390_v15  ;;  %v2398_v24 = vpack.c.bf16 %v401_v19, %v397_v18  ;;  %v396_v25 = vld [vmem:[#allocation2 + $0x1c0] sm:$0xff]  ;;  %v398_v27 = vld [vmem:[#allocation2 + $0x1d0] sm:$0xff] }
  0x9a   : > { %2389 = vmatpush1.bf16.msra.mxu0 %v2388_v62  ;;  %v400_v26 = vld [vmem:[#allocation2 + $0x1e0] sm:$0xff]  ;;  %v2594_v28 = vpack.c.bf16 %v403_v21, %v399_v20  ;;  %v402_v29 = vld [vmem:[#allocation2 + $0x1f0] sm:$0xff]  ;;  %v405_v30 = vld [vmem:[#allocation2 + $0x208] sm:$0xff] }
  0x9b   : > { %2585 = vmatpush1.bf16.msra.mxu1 %v2584_v63  ;;  %2391 = vmatprep.subr.bf16.mxu0 %v2390_v0  ;;  %v409_v31 = vld [vmem:[#allocation2 + $0x228] sm:$0xff]  ;;  %v407_v32 = vld [vmem:[#allocation2 + $0x218] sm:$0xff]  ;;  %v2400_v34 = vpack.c.bf16 %v400_v26, %v396_v25  ;;  %v2596_v35 = vpack.c.bf16 %v402_v29, %v398_v27  ;;  %v404_v37 = vld [vmem:[#allocation2 + $0x200] sm:$0xff] }
  0x9c   : > { %2587 = vmatprep.subr.bf16.mxu1 %v2586_v4  ;;  %v411_v33 = vld [vmem:[#allocation2 + $0x238] sm:$0xff]  ;;  %v2402_v36 = vpack.c.bf16 %v409_v31, %v405_v30  ;;  %v408_v38 = vld [vmem:[#allocation2 + $0x220] sm:$0xff]  ;;  %v406_v39 = vld [vmem:[#allocation2 + $0x210] sm:$0xff] }
  0x9d   : > { %v2598_v40 = vpack.c.bf16 %v411_v33, %v407_v32  ;;  %v410_v41 = vld [vmem:[#allocation2 + $0x230] sm:$0xff]  ;;  %v413_v42 = vld [vmem:[#allocation2 + $0x248] sm:$0xff]  ;;  %v415_v44 = vld [vmem:[#allocation2 + $0x258] sm:$0xff]  ;;  %v2404_v46 = vpack.c.bf16 %v408_v38, %v404_v37 }
  0x9e   : > { %2393 = vmatpush1.bf16.msra.mxu0 %v2392_v10  ;;  %v417_v43 = vld [vmem:[#allocation2 + $0x268] sm:$0xff]  ;;  %v419_v45 = vld [vmem:[#allocation2 + $0x278] sm:$0xff]  ;;  %v2600_v47 = vpack.c.bf16 %v410_v41, %v406_v39  ;;  %v412_v49 = vld [vmem:[#allocation2 + $0x240] sm:$0xff] }
  0x9f   : > { %2589 = vmatpush1.bf16.msra.mxu1 %v2588_v11  ;;  %2395 = vmatprep.subr.bf16.mxu0 %v2394_v12  ;;  %v2406_v48 = vpack.c.bf16 %v417_v43, %v413_v42  ;;  %v416_v50 = vld [vmem:[#allocation2 + $0x260] sm:$0xff]  ;;  %v414_v51 = vld [vmem:[#allocation2 + $0x250] sm:$0xff]  ;;  %v2602_v52 = vpack.c.bf16 %v419_v45, %v415_v44  ;;  %v421_v54 = vld [vmem:[#allocation2 + $0x288] sm:$0xff] }
  0xa0   : > { %2591 = vmatprep.subr.bf16.mxu1 %v2590_v16  ;;  %v418_v53 = vld [vmem:[#allocation2 + $0x270] sm:$0xff]  ;;  %v425_v55 = vld [vmem:[#allocation2 + $0x2a8] sm:$0xff]  ;;  %v423_v56 = vld [vmem:[#allocation2 + $0x298] sm:$0xff]  ;;  %v2408_v58 = vpack.c.bf16 %v416_v50, %v412_v49 }
  0xa1   : > { %v427_v57 = vld [vmem:[#allocation2 + $0x2b8] sm:$0xff]  ;;  %v2604_v59 = vpack.c.bf16 %v418_v53, %v414_v51  ;;  %v2410_v60 = vpack.c.bf16 %v425_v55, %v421_v54  ;;  %v420_v61 = vld [vmem:[#allocation2 + $0x280] sm:$0xff]  ;;  %v422_v63 = vld [vmem:[#allocation2 + $0x290] sm:$0xff] }
  0xa2   : > { %2397 = vmatpush1.bf16.msra.mxu0 %v2396_v22  ;;  %v424_v62 = vld [vmem:[#allocation2 + $0x2a0] sm:$0xff]  ;;  %v2606_v0 = vpack.c.bf16 %v427_v57, %v423_v56  ;;  %v426_v1 = vld [vmem:[#allocation2 + $0x2b0] sm:$0xff]  ;;  %v429_v2 = vld [vmem:[#allocation2 + $0x2c8] sm:$0xff] }
  0xa3   : > { %2593 = vmatpush1.bf16.msra.mxu1 %v2592_v23  ;;  %2399 = vmatprep.subr.bf16.mxu0 %v2398_v24  ;;  %v433_v3 = vld [vmem:[#allocation2 + $0x2e8] sm:$0xff]  ;;  %v431_v4 = vld [vmem:[#allocation2 + $0x2d8] sm:$0xff]  ;;  %v2412_v6 = vpack.c.bf16 %v424_v62, %v420_v61  ;;  %v428_v7 = vld [vmem:[#allocation2 + $0x2c0] sm:$0xff]  ;;  %v2608_v8 = vpack.c.bf16 %v426_v1, %v422_v63 }
  0xa4   : > { %2595 = vmatprep.subr.bf16.mxu1 %v2594_v28  ;;  %v435_v5 = vld [vmem:[#allocation2 + $0x2f8] sm:$0xff]  ;;  %v2414_v9 = vpack.c.bf16 %v433_v3, %v429_v2  ;;  %v432_v10 = vld [vmem:[#allocation2 + $0x2e0] sm:$0xff]  ;;  %v430_v11 = vld [vmem:[#allocation2 + $0x2d0] sm:$0xff] }
  0xa5   : > { %v434_v12 = vld [vmem:[#allocation2 + $0x2f0] sm:$0xff]  ;;  %v2610_v13 = vpack.c.bf16 %v435_v5, %v431_v4  ;;  %v437_v14 = vld [vmem:[#allocation2 + $0x308] sm:$0xff]  ;;  %v439_v17 = vld [vmem:[#allocation2 + $0x318] sm:$0xff]  ;;  %v2416_v19 = vpack.c.bf16 %v432_v10, %v428_v7 }
  0xa6   : > { %2401 = vmatpush1.bf16.msra.mxu0 %v2400_v34  ;;  %v441_v15 = vld [vmem:[#allocation2 + $0x328] sm:$0xff]  ;;  %v443_v18 = vld [vmem:[#allocation2 + $0x338] sm:$0xff]  ;;  %v2612_v20 = vpack.c.bf16 %v434_v12, %v430_v11  ;;  %v436_v22 = vld [vmem:[#allocation2 + $0x300] sm:$0xff] }
  0xa7   : > { %2597 = vmatpush1.bf16.msra.mxu1 %v2596_v35  ;;  %2403 = vmatprep.subr.bf16.mxu0 %v2402_v36  ;;  %v285_v16 = vld [vmem:[%s3484_s14 + $0x8] sm:$0xff]  ;;  %v2418_v21 = vpack.c.bf16 %v441_v15, %v437_v14  ;;  %v440_v23 = vld [vmem:[#allocation2 + $0x320] sm:$0xff]  ;;  %v438_v24 = vld [vmem:[#allocation2 + $0x310] sm:$0xff]  ;;  %v2614_v25 = vpack.c.bf16 %v443_v18, %v439_v17 }
  0xa8   : > { %2599 = vmatprep.subr.bf16.mxu1 %v2598_v40  ;;  %843 = vmatprep.mubr.f32.mxu0 %v285_v16  ;;  %v442_v26 = vld [vmem:[#allocation2 + $0x330] sm:$0xff]  ;;  %v445_v27 = vld [vmem:[#allocation2 + $0x348] sm:$0xff]  ;;  %v447_v29 = vld [vmem:[#allocation2 + $0x358] sm:$0xff]  ;;  %v2420_v31 = vpack.c.bf16 %v440_v23, %v436_v22 }
  0xa9   : > { %1295 = vmatprep.mubr.f32.mxu1 %v285_v16  ;;  %v449_v28 = vld [vmem:[#allocation2 + $0x368] sm:$0xff]  ;;  %v451_v30 = vld [vmem:[#allocation2 + $0x378] sm:$0xff]  ;;  %v2616_v32 = vpack.c.bf16 %v442_v26, %v438_v24  ;;  %v444_v34 = vld [vmem:[#allocation2 + $0x340] sm:$0xff] }
  0xaa   : > { %2405 = vmatpush1.bf16.msra.mxu0 %v2404_v46  ;;  %v2422_v33 = vpack.c.bf16 %v449_v28, %v445_v27  ;;  %v448_v35 = vld [vmem:[#allocation2 + $0x360] sm:$0xff]  ;;  %v446_v36 = vld [vmem:[#allocation2 + $0x350] sm:$0xff]  ;;  %v2618_v37 = vpack.c.bf16 %v451_v30, %v447_v29  ;;  %v453_v39 = vld [vmem:[#allocation2 + $0x388] sm:$0xff] }
  0xab   : > { %2601 = vmatpush1.bf16.msra.mxu1 %v2600_v47  ;;  %2407 = vmatprep.subr.bf16.mxu0 %v2406_v48  ;;  %v450_v38 = vld [vmem:[#allocation2 + $0x370] sm:$0xff]  ;;  %v457_v40 = vld [vmem:[#allocation2 + $0x3a8] sm:$0xff]  ;;  %v455_v41 = vld [vmem:[#allocation2 + $0x398] sm:$0xff]  ;;  %v2424_v43 = vpack.c.bf16 %v448_v35, %v444_v34 }
  0xac   : > { %2603 = vmatprep.subr.bf16.mxu1 %v2602_v52  ;;  %v459_v42 = vld [vmem:[#allocation2 + $0x3b8] sm:$0xff]  ;;  %v2620_v44 = vpack.c.bf16 %v450_v38, %v446_v36  ;;  %v2426_v45 = vpack.c.bf16 %v457_v40, %v453_v39  ;;  %v452_v46 = vld [vmem:[#allocation2 + $0x380] sm:$0xff]  ;;  %v454_v48 = vld [vmem:[#allocation2 + $0x390] sm:$0xff] }
  0xad   : > { %v456_v47 = vld [vmem:[#allocation2 + $0x3a0] sm:$0xff]  ;;  %v2622_v49 = vpack.c.bf16 %v459_v42, %v455_v41  ;;  %v458_v50 = vld [vmem:[#allocation2 + $0x3b0] sm:$0xff]  ;;  %v461_v51 = vld [vmem:[#allocation2 + $0x3c8] sm:$0xff] }
  0xae   : > { %2409 = vmatpush1.bf16.msra.mxu0 %v2408_v58  ;;  %v465_v52 = vld [vmem:[#allocation2 + $0x3e8] sm:$0xff]  ;;  %v463_v53 = vld [vmem:[#allocation2 + $0x3d8] sm:$0xff]  ;;  %v2428_v55 = vpack.c.bf16 %v456_v47, %v452_v46  ;;  %v2624_v56 = vpack.c.bf16 %v458_v50, %v454_v48  ;;  %v460_v58 = vld [vmem:[#allocation2 + $0x3c0] sm:$0xff] }
  0xaf   : > { %2605 = vmatpush1.bf16.msra.mxu1 %v2604_v59  ;;  %2411 = vmatprep.subr.bf16.mxu0 %v2410_v60  ;;  %v467_v54 = vld [vmem:[#allocation2 + $0x3f8] sm:$0xff]  ;;  %v2430_v57 = vpack.c.bf16 %v465_v52, %v461_v51  ;;  %v464_v59 = vld [vmem:[#allocation2 + $0x3e0] sm:$0xff]  ;;  %v462_v60 = vld [vmem:[#allocation2 + $0x3d0] sm:$0xff] }
  0xb0   : > { %2607 = vmatprep.subr.bf16.mxu1 %v2606_v0  ;;  %v2626_v61 = vpack.c.bf16 %v467_v54, %v463_v53  ;;  %v466_v62 = vld [vmem:[#allocation2 + $0x3f0] sm:$0xff]  ;;  %v469_v63 = vld [vmem:[#allocation2 + $0x408] sm:$0xff]  ;;  %v471_v1 = vld [vmem:[#allocation2 + $0x418] sm:$0xff]  ;;  %v2432_v3 = vpack.c.bf16 %v464_v59, %v460_v58 }
  0xb1   : > { %v473_v0 = vld [vmem:[#allocation2 + $0x428] sm:$0xff]  ;;  %v475_v2 = vld [vmem:[#allocation2 + $0x438] sm:$0xff]  ;;  %v2628_v4 = vpack.c.bf16 %v466_v62, %v462_v60  ;;  %v472_v7 = vld [vmem:[#allocation2 + $0x420] sm:$0xff] }
  0xb2   : > { %2413 = vmatpush1.bf16.msra.mxu0 %v2412_v6  ;;  %v2434_v5 = vpack.c.bf16 %v473_v0, %v469_v63  ;;  %v468_v6 = vld [vmem:[#allocation2 + $0x400] sm:$0xff]  ;;  %v474_v10 = vld [vmem:[#allocation2 + $0x430] sm:$0xff]  ;;  %v477_v11 = vld [vmem:[#allocation2 + $0x448] sm:$0xff] }
  0xb3   : > { %2609 = vmatpush1.bf16.msra.mxu1 %v2608_v8  ;;  %2415 = vmatprep.subr.bf16.mxu0 %v2414_v9  ;;  %v470_v8 = vld [vmem:[#allocation2 + $0x410] sm:$0xff]  ;;  %v2630_v9 = vpack.c.bf16 %v475_v2, %v471_v1  ;;  %v481_v12 = vld [vmem:[#allocation2 + $0x468] sm:$0xff]  ;;  %v483_v14 = vld [vmem:[#allocation2 + $0x478] sm:$0xff]  ;;  %v2436_v16 = vpack.c.bf16 %v472_v7, %v468_v6 }
  0xb4   : > { %2611 = vmatprep.subr.bf16.mxu1 %v2610_v13  ;;  %v479_v13 = vld [vmem:[#allocation2 + $0x458] sm:$0xff]  ;;  %v284_v15 = vld [vmem:[%s3484_s14] sm:$0xff]  ;;  %v2632_v17 = vpack.c.bf16 %v474_v10, %v470_v8  ;;  %v2438_v18 = vpack.c.bf16 %v481_v12, %v477_v11  ;;  %v482_v23 = vld [vmem:[#allocation2 + $0x470] sm:$0xff] }
  0xb5   : > { %v2634_v22 = vpack.c.bf16 %v483_v14, %v479_v13  ;;  %v485_v24 = vld [vmem:[#allocation2 + $0x488] sm:$0xff]  ;;  %v487_v26 = vld [vmem:[#allocation2 + $0x498] sm:$0xff]  ;;  %v292_v28 = vld [vmem:[%s3484_s14 + $0x40] sm:$0xff] }
  0xb6   : > { %2417 = vmatpush1.bf16.msra.mxu0 %v2416_v19  ;;  %v476_v19 = vld [vmem:[#allocation2 + $0x440] sm:$0xff]  ;;  %v491_v27 = vld [vmem:[#allocation2 + $0x4b8] sm:$0xff]  ;;  %v486_v34 = vld [vmem:[#allocation2 + $0x490] sm:$0xff] }
  0xb7   : > { %2613 = vmatpush1.bf16.msra.mxu1 %v2612_v20  ;;  %2419 = vmatprep.subr.bf16.mxu0 %v2418_v21  ;;  %v480_v20 = vld [vmem:[#allocation2 + $0x460] sm:$0xff]  ;;  %v478_v21 = vld [vmem:[#allocation2 + $0x450] sm:$0xff]  ;;  %v291_v35 = vld [vmem:[%s3484_s14 + $0x38] sm:$0xff]  ;;  %v2638_v36 = vpack.c.bf16 %v491_v27, %v487_v26 }
  0xb8   : > { %2615 = vmatprep.subr.bf16.mxu1 %v2614_v25  ;;  %v489_v25 = vld [vmem:[#allocation2 + $0x4a8] sm:$0xff]  ;;  %v2440_v29 = vpack.c.bf16 %v480_v20, %v476_v19  ;;  %v484_v30 = vld [vmem:[#allocation2 + $0x480] sm:$0xff]  ;;  %v495_v40 = vld [vmem:[#allocation2 + $0x4d8] sm:$0xff] }
  0xb9   : > { %v493_v38 = vld [vmem:[#allocation2 + $0x4c8] sm:$0xff]  ;;  %v499_v41 = vld [vmem:[#allocation2 + $0x4f8] sm:$0xff]  ;;  %v492_v47 = vld [vmem:[#allocation2 + $0x4c0] sm:$0xff] }
  0xba   : > { %2421 = vmatpush1.bf16.msra.mxu0 %v2420_v31  ;;  %v2636_v31 = vpack.c.bf16 %v482_v23, %v478_v21  ;;  %v497_v39 = vld [vmem:[#allocation2 + $0x4e8] sm:$0xff]  ;;  %v299_v42 = vld [vmem:[%s3484_s14 + $0x78] sm:$0xff]  ;;  %v496_v48 = vld [vmem:[#allocation2 + $0x4e0] sm:$0xff]  ;;  %v2642_v50 = vpack.c.bf16 %v499_v41, %v495_v40 }
  0xbb   : > { %2617 = vmatpush1.bf16.msra.mxu1 %v2616_v32  ;;  %2423 = vmatprep.subr.bf16.mxu0 %v2422_v33  ;;  %v2442_v32 = vpack.c.bf16 %v489_v25, %v485_v24  ;;  %v488_v33 = vld [vmem:[#allocation2 + $0x4a0] sm:$0xff]  ;;  %v2446_v46 = vpack.c.bf16 %v497_v39, %v493_v38  ;;  %v498_v51 = vld [vmem:[#allocation2 + $0x4f0] sm:$0xff]  ;;  %v501_v52 = vld [vmem:[#allocation2 + $0x508] sm:$0xff] }
  0xbc   : > { %2619 = vmatprep.subr.bf16.mxu1 %v2618_v37  ;;  %v490_v37 = vld [vmem:[#allocation2 + $0x4b0] sm:$0xff]  ;;  %v505_v53 = vld [vmem:[#allocation2 + $0x528] sm:$0xff]  ;;  %v503_v54 = vld [vmem:[#allocation2 + $0x518] sm:$0xff] }
  0xbd   : > { %v305_v58 = vld [vmem:[%s3484_s14 + $0xa8] sm:$0xff]  ;;  %v2450_v60 = vpack.c.bf16 %v505_v53, %v501_v52  ;;  %v504_v62 = vld [vmem:[#allocation2 + $0x520] sm:$0xff]  ;;  %v502_v63 = vld [vmem:[#allocation2 + $0x510] sm:$0xff] }
  0xbe   : > { %2425 = vmatpush1.bf16.msra.mxu0 %v2424_v43  ;;  %v2444_v43 = vpack.c.bf16 %v488_v33, %v484_v30  ;;  %v506_v1 = vld [vmem:[#allocation2 + $0x530] sm:$0xff]  ;;  %v509_v2 = vld [vmem:[#allocation2 + $0x548] sm:$0xff]  ;;  %v312_v8 = vld [vmem:[%s3484_s14 + $0xe0] sm:$0xff] }
  0xbf   : > { %2621 = vmatpush1.bf16.msra.mxu1 %v2620_v44  ;;  %2427 = vmatprep.subr.bf16.mxu0 %v2426_v45  ;;  %v298_v44 = vld [vmem:[%s3484_s14 + $0x70] sm:$0xff]  ;;  %v2640_v45 = vpack.c.bf16 %v490_v37, %v486_v34  ;;  %v313_v6 = vld [vmem:[%s3484_s14 + $0xe8] sm:$0xff]  ;;  %v508_v11 = vld [vmem:[#allocation2 + $0x540] sm:$0xff] }
  0xc0   : > { %2623 = vmatprep.subr.bf16.mxu1 %v2622_v49  ;;  %v494_v49 = vld [vmem:[#allocation2 + $0x4d0] sm:$0xff]  ;;  %v512_v12 = vld [vmem:[#allocation2 + $0x560] sm:$0xff]  ;;  %v523_v19 = vld [vmem:[#allocation2 + $0x5b8] sm:$0xff] }
  0xc1   : > { %v2644_v59 = vpack.c.bf16 %v498_v51, %v494_v49  ;;  %v510_v13 = vld [vmem:[#allocation2 + $0x550] sm:$0xff]  ;;  %v320_v20 = vld [vmem:[%s3484_s14 + $0x120] sm:$0xff]  ;;  %v2456_v21 = vpack.c.bf16 %v512_v12, %v508_v11  ;;  %v525_v30 = vld [vmem:[#allocation2 + $0x5c8] sm:$0xff] }
  0xc2   : > { %2429 = vmatpush1.bf16.msra.mxu0 %v2428_v55  ;;  %v507_v55 = vld [vmem:[#allocation2 + $0x538] sm:$0xff]  ;;  %v516_v25 = vld [vmem:[#allocation2 + $0x580] sm:$0xff]  ;;  %v518_v27 = vld [vmem:[#allocation2 + $0x590] sm:$0xff] }
  0xc3   : > { %2625 = vmatpush1.bf16.msra.mxu1 %v2624_v56  ;;  %2431 = vmatprep.subr.bf16.mxu0 %v2430_v57  ;;  %v306_v56 = vld [vmem:[%s3484_s14 + $0xb0] sm:$0xff]  ;;  %v2448_v57 = vpack.c.bf16 %v496_v48, %v492_v47  ;;  %v2646_v0 = vpack.c.bf16 %v507_v55, %v503_v54  ;;  %v520_v26 = vld [vmem:[#allocation2 + $0x5a0] sm:$0xff]  ;;  %v531_v33 = vld [vmem:[#allocation2 + $0x5f8] sm:$0xff] }
  0xc4   : > { %2627 = vmatprep.subr.bf16.mxu1 %v2626_v61  ;;  %v500_v61 = vld [vmem:[#allocation2 + $0x500] sm:$0xff]  ;;  %v327_v34 = vld [vmem:[%s3484_s14 + $0x158] sm:$0xff]  ;;  %v526_v41 = vld [vmem:[#allocation2 + $0x5d0] sm:$0xff] }
  0xc5   : > { %v2452_v7 = vpack.c.bf16 %v504_v62, %v500_v61  ;;  %v524_v39 = vld [vmem:[#allocation2 + $0x5c0] sm:$0xff]  ;;  %v539_v47 = vld [vmem:[#allocation2 + $0x638] sm:$0xff]  ;;  %v334_v48 = vld [vmem:[%s3484_s14 + $0x190] sm:$0xff] }
  0xc6   : > { %2433 = vmatpush1.bf16.msra.mxu0 %v2432_v3  ;;  %v513_v3 = vld [vmem:[#allocation2 + $0x568] sm:$0xff]  ;;  %v528_v40 = vld [vmem:[#allocation2 + $0x5e0] sm:$0xff]  ;;  %v534_v55 = vld [vmem:[#allocation2 + $0x610] sm:$0xff] }
  0xc7   : > { %2629 = vmatpush1.bf16.msra.mxu1 %v2628_v4  ;;  %2435 = vmatprep.subr.bf16.mxu0 %v2434_v5  ;;  %v511_v4 = vld [vmem:[#allocation2 + $0x558] sm:$0xff]  ;;  %v2454_v10 = vpack.c.bf16 %v513_v3, %v509_v2  ;;  %v2464_v49 = vpack.c.bf16 %v528_v40, %v524_v39  ;;  %v532_v53 = vld [vmem:[#allocation2 + $0x600] sm:$0xff]  ;;  %v566_v40 = vld [vmem:[#allocation2 + $0x710] sm:$0xff] }
  0xc8   : > { %2631 = vmatprep.subr.bf16.mxu1 %v2630_v9  ;;  %v515_v5 = vld [vmem:[#allocation2 + $0x578] sm:$0xff]  ;;  %v2648_v9 = vpack.c.bf16 %v506_v1, %v502_v63  ;;  %v536_v54 = vld [vmem:[#allocation2 + $0x620] sm:$0xff] }
  0xc9   : > { %844 = vmatmul.mubr.f32.vlgmr.msra.gmra.mrb[0].mxu0 %v284_v15  ;;  %v2650_v14 = vpack.c.bf16 %v515_v5, %v511_v4  ;;  %v547_v61 = vld [vmem:[#allocation2 + $0x678] sm:$0xff]  ;;  %v2468_v63 = vpack.c.bf16 %v536_v54, %v532_v53  ;;  %v540_v2 = vld [vmem:[#allocation2 + $0x640] sm:$0xff]  ;;  %v542_v4 = vld [vmem:[#allocation2 + $0x650] sm:$0xff] }
  0xca   : > { %2437 = vmatpush1.bf16.msra.mxu0 %v2436_v16  ;;  %1296 = vmatmul.mubr.f32.vlgmr.msra.gmra.mrb[0].mxu1 %v284_v15  ;;  %v514_v15 = vld [vmem:[#allocation2 + $0x570] sm:$0xff]  ;;  %v517_v16 = vld [vmem:[#allocation2 + $0x588] sm:$0xff]  ;;  %v287_v62 = vld [vmem:[%s3484_s14 + $0x18] sm:$0xff] }
  0xcb   : > { %2633 = vmatpush1.bf16.msra.mxu1 %v2632_v17  ;;  %2439 = vmatprep.subr.bf16.mxu0 %v2438_v18  ;;  %v521_v17 = vld [vmem:[#allocation2 + $0x5a8] sm:$0xff]  ;;  %v519_v18 = vld [vmem:[#allocation2 + $0x598] sm:$0xff]  ;;  %v2652_v23 = vpack.c.bf16 %v514_v15, %v510_v13  ;;  %v544_v3 = vld [vmem:[#allocation2 + $0x660] sm:$0xff] }
  0xcc   : > { %2635 = vmatprep.subr.bf16.mxu1 %v2634_v22  ;;  %849 = vmatprep.mubr.f32.mxu0 %v292_v28  ;;  %v319_v22 = vld [vmem:[%s3484_s14 + $0x118] sm:$0xff]  ;;  %v2458_v24 = vpack.c.bf16 %v521_v17, %v517_v16  ;;  %v2472_v11 = vpack.c.bf16 %v544_v3, %v540_v2  ;;  %v552_v15 = vld [vmem:[#allocation2 + $0x6a0] sm:$0xff]  ;;  %v550_v16 = vld [vmem:[#allocation2 + $0x690] sm:$0xff] }
  0xcd   : > { %1301 = vmatprep.mubr.f32.mxu1 %v292_v28  ;;  %850 = vmatmul.mubr.f32.gmra.mrb[2].mxu0 %v291_v35  ;;  %v2654_v28 = vpack.c.bf16 %v523_v19, %v519_v18  ;;  %v554_v18 = vld [vmem:[#allocation2 + $0x6b0] sm:$0xff]  ;;  %v557_v19 = vld [vmem:[#allocation2 + $0x6c8] sm:$0xff]  ;;  %v568_v39 = vld [vmem:[#allocation2 + $0x720] sm:$0xff] }
  0xce   : > { %2441 = vmatpush1.bf16.msra.mxu0 %v2440_v29  ;;  %1302 = vmatmul.mubr.f32.gmra.mrb[2].mxu1 %v291_v35  ;;  %v522_v29 = vld [vmem:[#allocation2 + $0x5b0] sm:$0xff]  ;;  %v2460_v35 = vpack.c.bf16 %v520_v26, %v516_v25  ;;  %v556_v26 = vld [vmem:[#allocation2 + $0x6c0] sm:$0xff]  ;;  %v589_v3 = vld [vmem:[#allocation2 + $0x7c8] sm:$0xff] }
  0xcf   : > { %2637 = vmatpush1.bf16.msra.mxu1 %v2636_v31  ;;  %2443 = vmatprep.subr.bf16.mxu0 %v2442_v32  ;;  %v529_v31 = vld [vmem:[#allocation2 + $0x5e8] sm:$0xff]  ;;  %v527_v32 = vld [vmem:[#allocation2 + $0x5d8] sm:$0xff]  ;;  %v2656_v37 = vpack.c.bf16 %v522_v29, %v518_v27  ;;  %v560_v27 = vld [vmem:[#allocation2 + $0x6e0] sm:$0xff] }
  0xd0   : > { %2639 = vmatprep.subr.bf16.mxu1 %v2638_v36  ;;  %855 = vmatprep.mubr.f32.mxu0 %v299_v42  ;;  %v326_v36 = vld [vmem:[%s3484_s14 + $0x150] sm:$0xff]  ;;  %v2462_v38 = vpack.c.bf16 %v529_v31, %v525_v30  ;;  %v565_v31 = vld [vmem:[#allocation2 + $0x708] sm:$0xff] }
  0xd1   : > { %1307 = vmatprep.mubr.f32.mxu1 %v299_v42  ;;  %856 = vmatmul.mubr.f32.gmra.mrb[4].mxu0 %v298_v44  ;;  %v2658_v42 = vpack.c.bf16 %v531_v33, %v527_v32  ;;  %v562_v30 = vld [vmem:[#allocation2 + $0x6f0] sm:$0xff]  ;;  %v569_v32 = vld [vmem:[#allocation2 + $0x728] sm:$0xff]  ;;  %v567_v33 = vld [vmem:[#allocation2 + $0x718] sm:$0xff] }
  0xd2   : > { %2445 = vmatpush1.bf16.msra.mxu0 %v2444_v43  ;;  %1308 = vmatmul.mubr.f32.gmra.mrb[4].mxu1 %v298_v44  ;;  %v530_v43 = vld [vmem:[#allocation2 + $0x5f0] sm:$0xff]  ;;  %v533_v44 = vld [vmem:[#allocation2 + $0x608] sm:$0xff] }
  0xd3   : > { %2641 = vmatpush1.bf16.msra.mxu1 %v2640_v45  ;;  %2447 = vmatprep.subr.bf16.mxu0 %v2446_v46  ;;  %v537_v45 = vld [vmem:[#allocation2 + $0x628] sm:$0xff]  ;;  %v535_v46 = vld [vmem:[#allocation2 + $0x618] sm:$0xff]  ;;  %v2660_v51 = vpack.c.bf16 %v530_v43, %v526_v41  ;;  %v578_v54 = vld [vmem:[#allocation2 + $0x770] sm:$0xff] }
  0xd4   : > { %2643 = vmatprep.subr.bf16.mxu1 %v2642_v50  ;;  %861 = vmatprep.mubr.f32.mxu0 %v306_v56  ;;  %v333_v50 = vld [vmem:[%s3484_s14 + $0x188] sm:$0xff]  ;;  %v2466_v52 = vpack.c.bf16 %v537_v45, %v533_v44  ;;  %v575_v45 = vld [vmem:[#allocation2 + $0x758] sm:$0xff]  ;;  %v586_v2 = vld [vmem:[#allocation2 + $0x7b0] sm:$0xff] }
  0xd5   : > { %1313 = vmatprep.mubr.f32.mxu1 %v306_v56  ;;  %862 = vmatmul.mubr.f32.gmra.mrb[6].mxu0 %v305_v58  ;;  %v2662_v56 = vpack.c.bf16 %v539_v47, %v535_v46  ;;  %v573_v43 = vld [vmem:[#allocation2 + $0x748] sm:$0xff]  ;;  %v579_v46 = vld [vmem:[#allocation2 + $0x778] sm:$0xff] }
  0xd6   : > { %2449 = vmatpush1.bf16.msra.mxu0 %v2448_v57  ;;  %1314 = vmatmul.mubr.f32.gmra.mrb[6].mxu1 %v305_v58  ;;  %v538_v57 = vld [vmem:[#allocation2 + $0x630] sm:$0xff]  ;;  %v541_v58 = vld [vmem:[#allocation2 + $0x648] sm:$0xff]  ;;  %v2682_v53 = vpack.c.bf16 %v579_v46, %v575_v45 }
  0xd7   : > { %2645 = vmatpush1.bf16.msra.mxu1 %v2644_v59  ;;  %2451 = vmatprep.subr.bf16.mxu0 %v2450_v60  ;;  %v545_v59 = vld [vmem:[#allocation2 + $0x668] sm:$0xff]  ;;  %v543_v60 = vld [vmem:[#allocation2 + $0x658] sm:$0xff] }
  0xd8   : > { %2647 = vmatprep.subr.bf16.mxu1 %v2646_v0  ;;  %867 = vmatprep.mubr.f32.mxu0 %v313_v6  ;;  %v2664_v0 = vpack.c.bf16 %v538_v57, %v534_v55  ;;  %v2470_v1 = vpack.c.bf16 %v545_v59, %v541_v58  ;;  %v2666_v5 = vpack.c.bf16 %v547_v61, %v543_v60  ;;  %v577_v44 = vld [vmem:[#allocation2 + $0x768] sm:$0xff]  ;;  %v583_v57 = vld [vmem:[#allocation2 + $0x798] sm:$0xff] }
  0xd9   : > { %1319 = vmatprep.mubr.f32.mxu1 %v313_v6  ;;  %868 = vmatmul.mubr.f32.gmra.mrb[8].mxu0 %v312_v8  ;;  %v546_v6 = vld [vmem:[#allocation2 + $0x670] sm:$0xff]  ;;  %v581_v55 = vld [vmem:[#allocation2 + $0x788] sm:$0xff]  ;;  %v587_v58 = vld [vmem:[#allocation2 + $0x7b8] sm:$0xff] }
  0xda   : > { %2453 = vmatpush1.bf16.msra.mxu0 %v2452_v7  ;;  %1320 = vmatmul.mubr.f32.gmra.mrb[8].mxu1 %v312_v8  ;;  %v549_v7 = vld [vmem:[#allocation2 + $0x688] sm:$0xff]  ;;  %v2668_v12 = vpack.c.bf16 %v546_v6, %v542_v4  ;;  %v595_v6 = vld [vmem:[#allocation2 + $0x7f8] sm:$0xff] }
  0xdb   : > { %2649 = vmatpush1.bf16.msra.mxu1 %v2648_v9  ;;  %2455 = vmatprep.subr.bf16.mxu0 %v2454_v10  ;;  %v553_v8 = vld [vmem:[#allocation2 + $0x6a8] sm:$0xff]  ;;  %v551_v9 = vld [vmem:[#allocation2 + $0x698] sm:$0xff] }
  0xdc   : > { %2651 = vmatprep.subr.bf16.mxu1 %v2650_v14  ;;  %873 = vmatprep.mubr.f32.mxu0 %v320_v20  ;;  %v555_v10 = vld [vmem:[#allocation2 + $0x6b8] sm:$0xff]  ;;  %v2474_v13 = vpack.c.bf16 %v553_v8, %v549_v7  ;;  %v548_v14 = vld [vmem:[#allocation2 + $0x680] sm:$0xff]  ;;  %v593_v4 = vld [vmem:[#allocation2 + $0x7e8] sm:$0xff] }
  0xdd   : > { %1325 = vmatprep.mubr.f32.mxu1 %v320_v20  ;;  %874 = vmatmul.mubr.f32.gmra.mrb[10].mxu0 %v319_v22  ;;  %v2670_v17 = vpack.c.bf16 %v555_v10, %v551_v9  ;;  %v561_v20 = vld [vmem:[#allocation2 + $0x6e8] sm:$0xff]  ;;  %v2494_v9 = vpack.c.bf16 %v593_v4, %v589_v3  ;;  %v588_v10 = vld [vmem:[#allocation2 + $0x7c0] sm:$0xff]  ;;  %v626_v3 = vld [vmem:[#allocation2 + $0x8f0] sm:$0xff] }
  0xde   : > { %2457 = vmatpush1.bf16.msra.mxu0 %v2456_v21  ;;  %1326 = vmatmul.mubr.f32.gmra.mrb[10].mxu1 %v319_v22  ;;  %v559_v21 = vld [vmem:[#allocation2 + $0x6d8] sm:$0xff]  ;;  %v2478_v25 = vpack.c.bf16 %v561_v20, %v557_v19  ;;  %v293_v46 = vld [vmem:[%s3484_s14 + $0x48] sm:$0xff] }
  0xdf   : > { %2653 = vmatpush1.bf16.msra.mxu1 %v2652_v23  ;;  %2459 = vmatprep.subr.bf16.mxu0 %v2458_v24  ;;  %v563_v22 = vld [vmem:[#allocation2 + $0x6f8] sm:$0xff]  ;;  %v2476_v23 = vpack.c.bf16 %v552_v15, %v548_v14  ;;  %v2672_v24 = vpack.c.bf16 %v554_v18, %v550_v16  ;;  %v594_v14 = vld [vmem:[#allocation2 + $0x7f0] sm:$0xff]  ;;  %v597_v15 = vld [vmem:[#allocation2 + $0x808] sm:$0xff] }
  0xe0   : > { %2655 = vmatprep.subr.bf16.mxu1 %v2654_v28  ;;  %879 = vmatprep.mubr.f32.mxu0 %v327_v34  ;;  %v558_v28 = vld [vmem:[#allocation2 + $0x6d0] sm:$0xff]  ;;  %v2674_v29 = vpack.c.bf16 %v563_v22, %v559_v21  ;;  %v601_v16 = vld [vmem:[#allocation2 + $0x828] sm:$0xff]  ;;  %v603_v18 = vld [vmem:[#allocation2 + $0x838] sm:$0xff] }
  0xe1   : > { %1331 = vmatprep.mubr.f32.mxu1 %v327_v34  ;;  %880 = vmatmul.mubr.f32.gmra.mrb[12].mxu0 %v326_v36  ;;  %v571_v34 = vld [vmem:[#allocation2 + $0x738] sm:$0xff]  ;;  %v2498_v21 = vpack.c.bf16 %v601_v16, %v597_v15  ;;  %v596_v22 = vld [vmem:[#allocation2 + $0x800] sm:$0xff]  ;;  %v629_v4 = vld [vmem:[#allocation2 + $0x908] sm:$0xff] }
  0xe2   : > { %2461 = vmatpush1.bf16.msra.mxu0 %v2460_v35  ;;  %1332 = vmatmul.mubr.f32.gmra.mrb[12].mxu1 %v326_v36  ;;  %v2480_v35 = vpack.c.bf16 %v560_v27, %v556_v26  ;;  %v2676_v36 = vpack.c.bf16 %v562_v30, %v558_v28  ;;  %v2678_v41 = vpack.c.bf16 %v571_v34, %v567_v33  ;;  %v602_v26 = vld [vmem:[#allocation2 + $0x830] sm:$0xff]  ;;  %v605_v27 = vld [vmem:[#allocation2 + $0x848] sm:$0xff]  ;;  %v611_v30 = vld [vmem:[#allocation2 + $0x878] sm:$0xff] }
  0xe3   : > { %2657 = vmatpush1.bf16.msra.mxu1 %v2656_v37  ;;  %2463 = vmatprep.subr.bf16.mxu0 %v2462_v38  ;;  %v2482_v37 = vpack.c.bf16 %v569_v32, %v565_v31  ;;  %v564_v38 = vld [vmem:[#allocation2 + $0x700] sm:$0xff]  ;;  %v609_v28 = vld [vmem:[#allocation2 + $0x868] sm:$0xff]  ;;  %v286_v31 = vld [vmem:[%s3484_s14 + $0x10] sm:$0xff] }
  0xe4   : > { %2659 = vmatprep.subr.bf16.mxu1 %v2658_v42  ;;  %885 = vmatprep.mubr.f32.mxu0 %v334_v48  ;;  %v570_v42 = vld [vmem:[#allocation2 + $0x730] sm:$0xff]  ;;  %v2484_v47 = vpack.c.bf16 %v568_v39, %v564_v38  ;;  %v2502_v34 = vpack.c.bf16 %v609_v28, %v605_v27  ;;  %v636_v27 = vld [vmem:[#allocation2 + $0x940] sm:$0xff] }
  0xe5   : > { %1337 = vmatprep.mubr.f32.mxu1 %v334_v48  ;;  %886 = vmatmul.mubr.f32.gmra.mrb[14].mxu0 %v333_v50  ;;  %v2680_v48 = vpack.c.bf16 %v570_v42, %v566_v40  ;;  %v610_v39 = vld [vmem:[#allocation2 + $0x870] sm:$0xff]  ;;  %v613_v40 = vld [vmem:[#allocation2 + $0x888] sm:$0xff]  ;;  %v615_v42 = vld [vmem:[#allocation2 + $0x898] sm:$0xff] }
  0xe6   : > { %2465 = vmatpush1.bf16.msra.mxu0 %v2464_v49  ;;  %1338 = vmatmul.mubr.f32.gmra.mrb[14].mxu1 %v333_v50  ;;  %v2486_v49 = vpack.c.bf16 %v577_v44, %v573_v43  ;;  %v572_v50 = vld [vmem:[#allocation2 + $0x740] sm:$0xff]  ;;  %v619_v43 = vld [vmem:[#allocation2 + $0x8b8] sm:$0xff]  ;;  %v294_v44 = vld [vmem:[%s3484_s14 + $0x50] sm:$0xff] }
  0xe7   : > { %2661 = vmatpush1.bf16.msra.mxu1 %v2660_v51  ;;  %2467 = vmatprep.subr.bf16.mxu0 %v2466_v52  ;;  %v576_v51 = vld [vmem:[#allocation2 + $0x760] sm:$0xff]  ;;  %v574_v52 = vld [vmem:[#allocation2 + $0x750] sm:$0xff] }
  0xe8   : > { %2663 = vmatprep.subr.bf16.mxu1 %v2662_v56  ;;  %956 = vmatprep.mubr.f32.mxu0 %v287_v62  ;;  %v585_v56 = vld [vmem:[#allocation2 + $0x7a8] sm:$0xff]  ;;  %v2488_v59 = vpack.c.bf16 %v576_v51, %v572_v50  ;;  %v2684_v60 = vpack.c.bf16 %v578_v54, %v574_v52  ;;  %v616_v50 = vld [vmem:[#allocation2 + $0x8a0] sm:$0xff]  ;;  %v614_v51 = vld [vmem:[#allocation2 + $0x890] sm:$0xff]  ;;  %v2702_v52 = vpack.c.bf16 %v619_v43, %v615_v42 }
  0xe9   : > { %1408 = vmatprep.mubr.f32.mxu1 %v287_v62  ;;  %v2490_v61 = vpack.c.bf16 %v585_v56, %v581_v55  ;;  %v580_v62 = vld [vmem:[#allocation2 + $0x780] sm:$0xff]  ;;  %v621_v54 = vld [vmem:[#allocation2 + $0x8c8] sm:$0xff]  ;;  %v623_v56 = vld [vmem:[#allocation2 + $0x8d8] sm:$0xff] }
  0xea   : > { %2469 = vmatpush1.bf16.msra.mxu0 %v2468_v63  ;;  %v584_v63 = vld [vmem:[#allocation2 + $0x7a0] sm:$0xff]  ;;  %v625_v55 = vld [vmem:[#allocation2 + $0x8e8] sm:$0xff]  ;;  %v630_v15 = vld [vmem:[#allocation2 + $0x910] sm:$0xff] }
  0xeb   : > { %2665 = vmatpush1.bf16.msra.mxu1 %v2664_v0  ;;  %2471 = vmatprep.subr.bf16.mxu0 %v2470_v1  ;;  %v582_v0 = vld [vmem:[#allocation2 + $0x790] sm:$0xff]  ;;  %v2686_v1 = vpack.c.bf16 %v587_v58, %v583_v57  ;;  %v2492_v7 = vpack.c.bf16 %v584_v63, %v580_v62  ;;  %v627_v57 = vld [vmem:[#allocation2 + $0x8f8] sm:$0xff]  ;;  %v301_v58 = vld [vmem:[%s3484_s14 + $0x88] sm:$0xff]  ;;  %v2510_v62 = vpack.c.bf16 %v625_v55, %v621_v54 }
  0xec   : > { %2667 = vmatprep.subr.bf16.mxu1 %v2666_v5  ;;  %v591_v5 = vld [vmem:[#allocation2 + $0x7d8] sm:$0xff]  ;;  %v2688_v8 = vpack.c.bf16 %v586_v2, %v582_v0  ;;  %v620_v63 = vld [vmem:[#allocation2 + $0x8c0] sm:$0xff]  ;;  %v2706_v2 = vpack.c.bf16 %v627_v57, %v623_v56  ;;  %v646_v43 = vld [vmem:[#allocation2 + $0x990] sm:$0xff] }
  0xed   : > { %v624_v0 = vld [vmem:[#allocation2 + $0x8e0] sm:$0xff]  ;;  %v654_v57 = vld [vmem:[#allocation2 + $0x9d0] sm:$0xff] }
  0xee   : > { %2473 = vmatpush1.bf16.msra.mxu0 %v2472_v11  ;;  %v592_v11 = vld [vmem:[#allocation2 + $0x7e0] sm:$0xff] }
  0xef   : > { %2669 = vmatpush1.bf16.msra.mxu1 %v2668_v12  ;;  %2475 = vmatprep.subr.bf16.mxu0 %v2474_v13  ;;  %v590_v12 = vld [vmem:[#allocation2 + $0x7d0] sm:$0xff]  ;;  %v2690_v13 = vpack.c.bf16 %v595_v6, %v591_v5  ;;  %v2496_v19 = vpack.c.bf16 %v592_v11, %v588_v10  ;;  %v633_v5 = vld [vmem:[#allocation2 + $0x928] sm:$0xff]  ;;  %v631_v6 = vld [vmem:[#allocation2 + $0x918] sm:$0xff] }
  0xf0   : > { %2671 = vmatprep.subr.bf16.mxu1 %v2670_v17  ;;  %v599_v17 = vld [vmem:[#allocation2 + $0x818] sm:$0xff]  ;;  %v2692_v20 = vpack.c.bf16 %v594_v14, %v590_v12  ;;  %v2514_v12 = vpack.c.bf16 %v633_v5, %v629_v4  ;;  %v632_v14 = vld [vmem:[#allocation2 + $0x920] sm:$0xff] }
  0xf1   : > { %v307_v10 = vld [vmem:[%s3484_s14 + $0xb8] sm:$0xff]  ;;  %v640_v28 = vld [vmem:[#allocation2 + $0x960] sm:$0xff] }
  0xf2   : > { %2477 = vmatpush1.bf16.msra.mxu0 %v2476_v23  ;;  %v600_v23 = vld [vmem:[#allocation2 + $0x820] sm:$0xff] }
  0xf3   : > { %2673 = vmatpush1.bf16.msra.mxu1 %v2672_v24  ;;  %2479 = vmatprep.subr.bf16.mxu0 %v2478_v25  ;;  %v598_v24 = vld [vmem:[#allocation2 + $0x810] sm:$0xff]  ;;  %v2694_v25 = vpack.c.bf16 %v603_v18, %v599_v17  ;;  %v2500_v32 = vpack.c.bf16 %v600_v23, %v596_v22  ;;  %v637_v18 = vld [vmem:[#allocation2 + $0x948] sm:$0xff]  ;;  %v315_v22 = vld [vmem:[%s3484_s14 + $0xf8] sm:$0xff] }
  0xf4   : > { %2675 = vmatprep.subr.bf16.mxu1 %v2674_v29  ;;  %v607_v29 = vld [vmem:[#allocation2 + $0x858] sm:$0xff]  ;;  %v2696_v33 = vpack.c.bf16 %v602_v26, %v598_v24  ;;  %v634_v17 = vld [vmem:[#allocation2 + $0x930] sm:$0xff]  ;;  %v648_v42 = vld [vmem:[#allocation2 + $0x9a0] sm:$0xff] }
  0xf5   : > { %v2698_v38 = vpack.c.bf16 %v611_v30, %v607_v29  ;;  %v314_v24 = vld [vmem:[%s3484_s14 + $0xf0] sm:$0xff]  ;;  %v652_v55 = vld [vmem:[#allocation2 + $0x9c0] sm:$0xff] }
  0xf6   : > { %2481 = vmatpush1.bf16.msra.mxu0 %v2480_v35  ;;  %v604_v35 = vld [vmem:[#allocation2 + $0x840] sm:$0xff]  ;;  %v638_v29 = vld [vmem:[#allocation2 + $0x950] sm:$0xff] }
  0xf7   : > { %2677 = vmatpush1.bf16.msra.mxu1 %v2676_v36  ;;  %2483 = vmatprep.subr.bf16.mxu0 %v2482_v37  ;;  %v608_v36 = vld [vmem:[#allocation2 + $0x860] sm:$0xff]  ;;  %v606_v37 = vld [vmem:[#allocation2 + $0x850] sm:$0xff] }
  0xf8   : > { %2679 = vmatprep.subr.bf16.mxu1 %v2678_v41  ;;  %v617_v41 = vld [vmem:[#allocation2 + $0x8a8] sm:$0xff]  ;;  %v2504_v45 = vpack.c.bf16 %v608_v36, %v604_v35  ;;  %v651_v35 = vld [vmem:[#allocation2 + $0x9b8] sm:$0xff]  ;;  %v322_v36 = vld [vmem:[%s3484_s14 + $0x130] sm:$0xff] }
  0xf9   : > { %v656_v56 = vld [vmem:[#allocation2 + $0x9e0] sm:$0xff] }
  0xfa   : > { %2485 = vmatpush1.bf16.msra.mxu0 %v2484_v47  ;;  %v2700_v47 = vpack.c.bf16 %v610_v39, %v606_v37  ;;  %v2520_v37 = vpack.c.bf16 %v640_v28, %v636_v27  ;;  %v660_v5 = vld [vmem:[#allocation2 + $0xa00] sm:$0xff] }
  0xfb   : > { %2681 = vmatpush1.bf16.msra.mxu1 %v2680_v48  ;;  %2487 = vmatprep.subr.bf16.mxu0 %v2486_v49  ;;  %v2506_v48 = vpack.c.bf16 %v617_v41, %v613_v40  ;;  %v612_v49 = vld [vmem:[#allocation2 + $0x880] sm:$0xff] }
  0xfc   : > { %2683 = vmatprep.subr.bf16.mxu1 %v2682_v53  ;;  %v618_v53 = vld [vmem:[#allocation2 + $0x8b0] sm:$0xff]  ;;  %v644_v41 = vld [vmem:[#allocation2 + $0x980] sm:$0xff] }
  0xfe   : > { %2489 = vmatpush1.bf16.msra.mxu0 %v2488_v59  ;;  %v2508_v59 = vpack.c.bf16 %v616_v50, %v612_v49  ;;  %v659_v49 = vld [vmem:[#allocation2 + $0x9f8] sm:$0xff]  ;;  %v329_v50 = vld [vmem:[%s3484_s14 + $0x168] sm:$0xff] }
  0xff   : > { %2685 = vmatpush1.bf16.msra.mxu1 %v2684_v60  ;;  %2491 = vmatprep.subr.bf16.mxu0 %v2490_v61  ;;  %v300_v60 = vld [vmem:[%s3484_s14 + $0x80] sm:$0xff]  ;;  %v2704_v61 = vpack.c.bf16 %v618_v53, %v614_v51  ;;  %v2524_v51 = vpack.c.bf16 %v648_v42, %v644_v41 }
 0x100   : > { %2687 = vmatprep.subr.bf16.mxu1 %v2686_v1  ;;  %v622_v1 = vld [vmem:[#allocation2 + $0x8d0] sm:$0xff]  ;;  %v684_v42 = vld [vmem:[#allocation2 + $0xac0] sm:$0xff] }
 0x101   : > { %v2708_v11 = vpack.c.bf16 %v626_v3, %v622_v1  ;;  %v2528_v1 = vpack.c.bf16 %v656_v56, %v652_v55  ;;  %v696_v55 = vld [vmem:[#allocation2 + $0xb20] sm:$0xff]  ;;  %v694_v56 = vld [vmem:[#allocation2 + $0xb10] sm:$0xff] }
 0x102   : > { %2493 = vmatpush1.bf16.msra.mxu0 %v2492_v7  ;;  %v635_v7 = vld [vmem:[#allocation2 + $0x938] sm:$0xff] }
 0x103   : > { %2689 = vmatpush1.bf16.msra.mxu1 %v2688_v8  ;;  %2495 = vmatprep.subr.bf16.mxu0 %v2494_v9  ;;  %v308_v8 = vld [vmem:[%s3484_s14 + $0xc0] sm:$0xff]  ;;  %v2512_v9 = vpack.c.bf16 %v624_v0, %v620_v63  ;;  %v2710_v16 = vpack.c.bf16 %v635_v7, %v631_v6  ;;  %v667_v63 = vld [vmem:[#allocation2 + $0xa38] sm:$0xff]  ;;  %v662_v7 = vld [vmem:[#allocation2 + $0xa10] sm:$0xff] }
 0x104   : > { %2691 = vmatprep.subr.bf16.mxu1 %v2690_v13  ;;  %v628_v13 = vld [vmem:[#allocation2 + $0x900] sm:$0xff] }
 0x105   : > { %v2516_v23 = vpack.c.bf16 %v632_v14, %v628_v13  ;;  %v336_v0 = vld [vmem:[%s3484_s14 + $0x1a0] sm:$0xff]  ;;  %v675_v13 = vld [vmem:[#allocation2 + $0xa78] sm:$0xff]  ;;  %v289_v14 = vld [vmem:[%s3484_s14 + $0x28] sm:$0xff] }
 0x106   : > { %2497 = vmatpush1.bf16.msra.mxu0 %v2496_v19  ;;  %v641_v19 = vld [vmem:[#allocation2 + $0x968] sm:$0xff]  ;;  %v664_v6 = vld [vmem:[#allocation2 + $0xa20] sm:$0xff] }
 0x107   : > { %2693 = vmatpush1.bf16.msra.mxu1 %v2692_v20  ;;  %2499 = vmatprep.subr.bf16.mxu0 %v2498_v21  ;;  %v639_v20 = vld [vmem:[#allocation2 + $0x958] sm:$0xff]  ;;  %v2518_v26 = vpack.c.bf16 %v641_v19, %v637_v18  ;;  %v668_v18 = vld [vmem:[#allocation2 + $0xa40] sm:$0xff] }
 0x108   : > { %2695 = vmatprep.subr.bf16.mxu1 %v2694_v25  ;;  %v643_v21 = vld [vmem:[#allocation2 + $0x978] sm:$0xff]  ;;  %v2712_v25 = vpack.c.bf16 %v634_v17, %v630_v15  ;;  %v2532_v15 = vpack.c.bf16 %v664_v6, %v660_v5  ;;  %v672_v19 = vld [vmem:[#allocation2 + $0xa60] sm:$0xff]  ;;  %v706_v6 = vld [vmem:[#allocation2 + $0xb70] sm:$0xff] }
 0x109   : > { %957 = vmatmul.mubr.f32.vlgmr.msra.gmra.mrb[0].mxu0 %v286_v31  ;;  %v2714_v30 = vpack.c.bf16 %v643_v21, %v639_v20  ;;  %v670_v20 = vld [vmem:[#allocation2 + $0xa50] sm:$0xff]  ;;  %v2536_v27 = vpack.c.bf16 %v672_v19, %v668_v18  ;;  %v717_v19 = vld [vmem:[#allocation2 + $0xbc8] sm:$0xff] }
 0x10a   : > { %2501 = vmatpush1.bf16.msra.mxu0 %v2500_v32  ;;  %1409 = vmatmul.mubr.f32.vlgmr.msra.gmra.mrb[0].mxu1 %v286_v31  ;;  %v642_v31 = vld [vmem:[#allocation2 + $0x970] sm:$0xff]  ;;  %v645_v32 = vld [vmem:[#allocation2 + $0x988] sm:$0xff] }
 0x10b   : > { %2697 = vmatpush1.bf16.msra.mxu1 %v2696_v33  ;;  %2503 = vmatprep.subr.bf16.mxu0 %v2502_v34  ;;  %v649_v33 = vld [vmem:[#allocation2 + $0x9a8] sm:$0xff]  ;;  %v647_v34 = vld [vmem:[#allocation2 + $0x998] sm:$0xff]  ;;  %v2716_v39 = vpack.c.bf16 %v642_v31, %v638_v29  ;;  %v680_v31 = vld [vmem:[#allocation2 + $0xaa0] sm:$0xff] }
 0x10c   : > { %2699 = vmatprep.subr.bf16.mxu1 %v2698_v38  ;;  %962 = vmatprep.mubr.f32.mxu0 %v294_v44  ;;  %v321_v38 = vld [vmem:[%s3484_s14 + $0x128] sm:$0xff]  ;;  %v2522_v40 = vpack.c.bf16 %v649_v33, %v645_v32  ;;  %v678_v32 = vld [vmem:[#allocation2 + $0xa90] sm:$0xff] }
 0x10d   : > { %1414 = vmatprep.mubr.f32.mxu1 %v294_v44  ;;  %963 = vmatmul.mubr.f32.gmra.mrb[2].mxu0 %v293_v46  ;;  %v2718_v44 = vpack.c.bf16 %v651_v35, %v647_v34  ;;  %v682_v34 = vld [vmem:[#allocation2 + $0xab0] sm:$0xff]  ;;  %v685_v35 = vld [vmem:[#allocation2 + $0xac8] sm:$0xff] }
 0x10e   : > { %2505 = vmatpush1.bf16.msra.mxu0 %v2504_v45  ;;  %1415 = vmatmul.mubr.f32.gmra.mrb[2].mxu1 %v293_v46  ;;  %v650_v45 = vld [vmem:[#allocation2 + $0x9b0] sm:$0xff]  ;;  %v653_v46 = vld [vmem:[#allocation2 + $0x9c8] sm:$0xff] }
 0x10f   : > { %2701 = vmatpush1.bf16.msra.mxu1 %v2700_v47  ;;  %2507 = vmatprep.subr.bf16.mxu0 %v2506_v48  ;;  %v657_v47 = vld [vmem:[#allocation2 + $0x9e8] sm:$0xff]  ;;  %v655_v48 = vld [vmem:[#allocation2 + $0x9d8] sm:$0xff]  ;;  %v2720_v53 = vpack.c.bf16 %v650_v45, %v646_v43  ;;  %v688_v43 = vld [vmem:[#allocation2 + $0xae0] sm:$0xff] }
 0x110   : > { %2703 = vmatprep.subr.bf16.mxu1 %v2702_v52  ;;  %968 = vmatprep.mubr.f32.mxu0 %v301_v58  ;;  %v328_v52 = vld [vmem:[%s3484_s14 + $0x160] sm:$0xff]  ;;  %v2526_v54 = vpack.c.bf16 %v657_v47, %v653_v46  ;;  %v690_v46 = vld [vmem:[#allocation2 + $0xaf0] sm:$0xff]  ;;  %v693_v47 = vld [vmem:[#allocation2 + $0xb08] sm:$0xff] }
 0x111   : > { %1420 = vmatprep.mubr.f32.mxu1 %v301_v58  ;;  %969 = vmatmul.mubr.f32.gmra.mrb[4].mxu0 %v300_v60  ;;  %v2722_v58 = vpack.c.bf16 %v659_v49, %v655_v48  ;;  %v697_v48 = vld [vmem:[#allocation2 + $0xb28] sm:$0xff]  ;;  %v695_v49 = vld [vmem:[#allocation2 + $0xb18] sm:$0xff]  ;;  %v714_v18 = vld [vmem:[#allocation2 + $0xbb0] sm:$0xff] }
 0x112   : > { %2509 = vmatpush1.bf16.msra.mxu0 %v2508_v59  ;;  %1421 = vmatmul.mubr.f32.gmra.mrb[4].mxu1 %v300_v60  ;;  %v658_v59 = vld [vmem:[#allocation2 + $0x9f0] sm:$0xff]  ;;  %v661_v60 = vld [vmem:[#allocation2 + $0xa08] sm:$0xff] }
 0x113   : > { %2705 = vmatpush1.bf16.msra.mxu1 %v2704_v61  ;;  %2511 = vmatprep.subr.bf16.mxu0 %v2510_v62  ;;  %v665_v61 = vld [vmem:[#allocation2 + $0xa28] sm:$0xff]  ;;  %v663_v62 = vld [vmem:[#allocation2 + $0xa18] sm:$0xff]  ;;  %v2724_v3 = vpack.c.bf16 %v658_v59, %v654_v57 }
 0x114   : > { %2707 = vmatprep.subr.bf16.mxu1 %v2706_v2  ;;  %974 = vmatprep.mubr.f32.mxu0 %v308_v8  ;;  %v335_v2 = vld [vmem:[%s3484_s14 + $0x198] sm:$0xff]  ;;  %v2530_v4 = vpack.c.bf16 %v665_v61, %v661_v60  ;;  %v701_v59 = vld [vmem:[#allocation2 + $0xb48] sm:$0xff] }
 0x115   : > { %1426 = vmatprep.mubr.f32.mxu1 %v308_v8  ;;  %975 = vmatmul.mubr.f32.gmra.mrb[6].mxu0 %v307_v10  ;;  %v2726_v8 = vpack.c.bf16 %v667_v63, %v663_v62  ;;  %v705_v60 = vld [vmem:[#allocation2 + $0xb68] sm:$0xff]  ;;  %v703_v61 = vld [vmem:[#allocation2 + $0xb58] sm:$0xff] }
 0x116   : > { %2513 = vmatpush1.bf16.msra.mxu0 %v2512_v9  ;;  %1427 = vmatmul.mubr.f32.gmra.mrb[6].mxu1 %v307_v10  ;;  %v666_v9 = vld [vmem:[#allocation2 + $0xa30] sm:$0xff]  ;;  %v669_v10 = vld [vmem:[#allocation2 + $0xa48] sm:$0xff]  ;;  %v707_v62 = vld [vmem:[#allocation2 + $0xb78] sm:$0xff] }
 0x117   : > { %2709 = vmatpush1.bf16.msra.mxu1 %v2708_v11  ;;  %2515 = vmatprep.subr.bf16.mxu0 %v2514_v12  ;;  %v673_v11 = vld [vmem:[#allocation2 + $0xa68] sm:$0xff]  ;;  %v671_v12 = vld [vmem:[#allocation2 + $0xa58] sm:$0xff]  ;;  %v2746_v5 = vpack.c.bf16 %v707_v62, %v703_v61 }
 0x118   : > { %2711 = vmatprep.subr.bf16.mxu1 %v2710_v16  ;;  %980 = vmatprep.mubr.f32.mxu0 %v315_v22  ;;  %v2728_v16 = vpack.c.bf16 %v666_v9, %v662_v7  ;;  %v2534_v17 = vpack.c.bf16 %v673_v11, %v669_v10  ;;  %v2730_v21 = vpack.c.bf16 %v675_v13, %v671_v12  ;;  %v709_v7 = vld [vmem:[#allocation2 + $0xb88] sm:$0xff]  ;;  %v711_v9 = vld [vmem:[#allocation2 + $0xb98] sm:$0xff] }
 0x119   : > { %1432 = vmatprep.mubr.f32.mxu1 %v315_v22  ;;  %981 = vmatmul.mubr.f32.gmra.mrb[8].mxu0 %v314_v24  ;;  %v674_v22 = vld [vmem:[#allocation2 + $0xa70] sm:$0xff]  ;;  %v715_v10 = vld [vmem:[#allocation2 + $0xbb8] sm:$0xff] }
 0x11a   : > { %2517 = vmatpush1.bf16.msra.mxu0 %v2516_v23  ;;  %1433 = vmatmul.mubr.f32.gmra.mrb[8].mxu1 %v314_v24  ;;  %v677_v23 = vld [vmem:[#allocation2 + $0xa88] sm:$0xff]  ;;  %v2732_v28 = vpack.c.bf16 %v674_v22, %v670_v20  ;;  %v723_v22 = vld [vmem:[#allocation2 + $0xbf8] sm:$0xff] }
 0x11b   : > { %2713 = vmatpush1.bf16.msra.mxu1 %v2712_v25  ;;  %2519 = vmatprep.subr.bf16.mxu0 %v2518_v26  ;;  %v681_v24 = vld [vmem:[#allocation2 + $0xaa8] sm:$0xff]  ;;  %v679_v25 = vld [vmem:[#allocation2 + $0xa98] sm:$0xff] }
 0x11c   : > { %2715 = vmatprep.subr.bf16.mxu1 %v2714_v30  ;;  %986 = vmatprep.mubr.f32.mxu0 %v322_v36  ;;  %v683_v26 = vld [vmem:[#allocation2 + $0xab8] sm:$0xff]  ;;  %v2538_v29 = vpack.c.bf16 %v681_v24, %v677_v23  ;;  %v676_v30 = vld [vmem:[#allocation2 + $0xa80] sm:$0xff]  ;;  %v721_v20 = vld [vmem:[#allocation2 + $0xbe8] sm:$0xff] }
 0x11d   : > { %1438 = vmatprep.mubr.f32.mxu1 %v322_v36  ;;  %987 = vmatmul.mubr.f32.gmra.mrb[10].mxu0 %v321_v38  ;;  %v2734_v33 = vpack.c.bf16 %v683_v26, %v679_v25  ;;  %v689_v36 = vld [vmem:[#allocation2 + $0xae8] sm:$0xff]  ;;  %v2558_v25 = vpack.c.bf16 %v721_v20, %v717_v19  ;;  %v716_v26 = vld [vmem:[#allocation2 + $0xbc0] sm:$0xff]  ;;  %v323_v61 = vld [vmem:[%s3484_s14 + $0x138] sm:$0xff] }
 0x11e   : > { %2521 = vmatpush1.bf16.msra.mxu0 %v2520_v37  ;;  %1439 = vmatmul.mubr.f32.gmra.mrb[10].mxu1 %v321_v38  ;;  %v687_v37 = vld [vmem:[#allocation2 + $0xad8] sm:$0xff]  ;;  %v2542_v41 = vpack.c.bf16 %v689_v36, %v685_v35  ;;  %v1735_v20 = vld [vmem:[#allocation7 + $0xa0] sm:$0xff] }
 0x11f   : > { %2717 = vmatpush1.bf16.msra.mxu1 %v2716_v39  ;;  %2523 = vmatprep.subr.bf16.mxu0 %v2522_v40  ;;  %v691_v38 = vld [vmem:[#allocation2 + $0xaf8] sm:$0xff]  ;;  %v2540_v39 = vpack.c.bf16 %v680_v31, %v676_v30  ;;  %v2736_v40 = vpack.c.bf16 %v682_v34, %v678_v32  ;;  %v722_v30 = vld [vmem:[#allocation2 + $0xbf0] sm:$0xff]  ;;  %v725_v31 = vld [vmem:[#allocation2 + $0xc08] sm:$0xff] }
 0x120   : > { %2719 = vmatprep.subr.bf16.mxu1 %v2718_v44  ;;  %992 = vmatprep.mubr.f32.mxu0 %v329_v50  ;;  %v686_v44 = vld [vmem:[#allocation2 + $0xad0] sm:$0xff]  ;;  %v2738_v45 = vpack.c.bf16 %v691_v38, %v687_v37  ;;  %v729_v32 = vld [vmem:[#allocation2 + $0xc28] sm:$0xff]  ;;  %v731_v34 = vld [vmem:[#allocation2 + $0xc38] sm:$0xff] }
 0x121   : > { %1444 = vmatprep.mubr.f32.mxu1 %v329_v50  ;;  %993 = vmatmul.mubr.f32.gmra.mrb[12].mxu0 %v328_v52  ;;  %v699_v50 = vld [vmem:[#allocation2 + $0xb38] sm:$0xff]  ;;  %v2562_v37 = vpack.c.bf16 %v729_v32, %v725_v31  ;;  %v724_v38 = vld [vmem:[#allocation2 + $0xc00] sm:$0xff]  ;;  %v1752_v32 = vld [vmem:[#allocation7 + $0x128] sm:$0xff] }
 0x122   : > { %2525 = vmatpush1.bf16.msra.mxu0 %v2524_v51  ;;  %1445 = vmatmul.mubr.f32.gmra.mrb[12].mxu1 %v328_v52  ;;  %v2544_v51 = vpack.c.bf16 %v688_v43, %v684_v42  ;;  %v2740_v52 = vpack.c.bf16 %v690_v46, %v686_v44  ;;  %v2742_v57 = vpack.c.bf16 %v699_v50, %v695_v49  ;;  %v730_v42 = vld [vmem:[#allocation2 + $0xc30] sm:$0xff]  ;;  %v1731_v43 = vld [vmem:[#allocation7 + $0x80] sm:$0xff]  ;;  %v331_v62 = vld [vmem:[%s3484_s14 + $0x178] sm:$0xff] }
 0x123   : > { %2721 = vmatpush1.bf16.msra.mxu1 %v2720_v53  ;;  %2527 = vmatprep.subr.bf16.mxu0 %v2526_v54  ;;  %v2546_v53 = vpack.c.bf16 %v697_v48, %v693_v47  ;;  %v692_v54 = vld [vmem:[#allocation2 + $0xb00] sm:$0xff]  ;;  %v1732_v44 = vld [vmem:[#allocation7 + $0x88] sm:$0xff] }
 0x124   : > { %2723 = vmatprep.subr.bf16.mxu1 %v2722_v58  ;;  %998 = vmatprep.mubr.f32.mxu0 %v336_v0  ;;  %v698_v58 = vld [vmem:[#allocation2 + $0xb30] sm:$0xff]  ;;  %v2548_v63 = vpack.c.bf16 %v696_v55, %v692_v54  ;;  %v1763_v47 = vld [vmem:[#allocation7 + $0x180] sm:$0xff]  ;;  %v303_v54 = vld [vmem:[%s3484_s14 + $0x98] sm:$0xff] }
 0x125   : > { %1450 = vmatprep.mubr.f32.mxu1 %v336_v0  ;;  %999 = vmatmul.mubr.f32.gmra.mrb[14].mxu0 %v335_v2  ;;  %v2744_v0 = vpack.c.bf16 %v698_v58, %v694_v56  ;;  %v1764_v48 = vld [vmem:[#allocation7 + $0x188] sm:$0xff]  ;;  %v296_v49 = vld [vmem:[%s3484_s14 + $0x60] sm:$0xff] }
 0x126   : > { %2529 = vmatpush1.bf16.msra.mxu0 %v2528_v1  ;;  %1451 = vmatmul.mubr.f32.gmra.mrb[14].mxu1 %v335_v2  ;;  %v2550_v1 = vpack.c.bf16 %v705_v60, %v701_v59  ;;  %v700_v2 = vld [vmem:[#allocation2 + $0xb40] sm:$0xff]  ;;  %v302_v55 = vld [vmem:[%s3484_s14 + $0x90] sm:$0xff]  ;;  %v317_v58 = vld [vmem:[%s3484_s14 + $0x108] sm:$0xff] }
 0x127   : > { %2725 = vmatpush1.bf16.msra.mxu1 %v2724_v3  ;;  %2531 = vmatprep.subr.bf16.mxu0 %v2530_v4  ;;  %v704_v3 = vld [vmem:[#allocation2 + $0xb60] sm:$0xff]  ;;  %v702_v4 = vld [vmem:[#allocation2 + $0xb50] sm:$0xff] }
 0x128   : > { %2727 = vmatprep.subr.bf16.mxu1 %v2726_v8  ;;  %1069 = vmatprep.mubr.f32.mxu0 %v289_v14  ;;  %v713_v8 = vld [vmem:[#allocation2 + $0xba8] sm:$0xff]  ;;  %v2552_v11 = vpack.c.bf16 %v704_v3, %v700_v2  ;;  %v2748_v12 = vpack.c.bf16 %v706_v6, %v702_v4  ;;  %v310_v56 = vld [vmem:[%s3484_s14 + $0xd0] sm:$0xff]  ;;  %v316_v59 = vld [vmem:[%s3484_s14 + $0x100] sm:$0xff] }
 0x129   : > { %1521 = vmatprep.mubr.f32.mxu1 %v289_v14  ;;  %v2554_v13 = vpack.c.bf16 %v713_v8, %v709_v7  ;;  %v708_v14 = vld [vmem:[#allocation2 + $0xb80] sm:$0xff]  ;;  %v1716_v3 = vld [vmem:[#allocation7 + $0x8] sm:$0xff]  ;;  %v1733_v6 = vld [vmem:[#allocation7 + $0x90] sm:$0xff]  ;;  %v3270_v8 = vmov 0.0  }
 0x12a   : > { %2533 = vmatpush1.bf16.msra.mxu0 %v2532_v15  ;;  %v712_v15 = vld [vmem:[#allocation2 + $0xba0] sm:$0xff] }
 0x12b   : > { %2729 = vmatpush1.bf16.msra.mxu1 %v2728_v16  ;;  %2535 = vmatprep.subr.bf16.mxu0 %v2534_v17  ;;  %v710_v16 = vld [vmem:[#allocation2 + $0xb90] sm:$0xff]  ;;  %v2750_v17 = vpack.c.bf16 %v715_v10, %v711_v9  ;;  %v2556_v23 = vpack.c.bf16 %v712_v15, %v708_v14  ;;  %v324_v60 = vld [vmem:[%s3484_s14 + $0x140] sm:$0xff] }
 0x12c   : > { %2731 = vmatprep.subr.bf16.mxu1 %v2730_v21  ;;  %v719_v21 = vld [vmem:[#allocation2 + $0xbd8] sm:$0xff]  ;;  %v2752_v24 = vpack.c.bf16 %v714_v18, %v710_v16  ;;  %v1715_v2 = vld [vmem:[#allocation7] sm:$0xff]  ;;  %v290_v9 = vld [vmem:[%s3484_s14 + $0x30] sm:$0xff] }
 0x12d   : > { %v1747_v4 = vld [vmem:[#allocation7 + $0x100] sm:$0xff]  ;;  %v1734_v7 = vld [vmem:[#allocation7 + $0x98] sm:$0xff]  ;;  %v1765_v10 = vld [vmem:[#allocation7 + $0x190] sm:$0xff] }
 0x12e   : > { %2537 = vmatpush1.bf16.msra.mxu0 %v2536_v27  ;;  %v720_v27 = vld [vmem:[#allocation2 + $0xbe0] sm:$0xff]  ;;  %v2766_v14 = vpack.c.bf16 %v1734_v7, %v1733_v6  ;;  %v1717_v15 = vld [vmem:[#allocation7 + $0x10] sm:$0xff] }
 0x12f   : > { %2733 = vmatpush1.bf16.msra.mxu1 %v2732_v28  ;;  %2539 = vmatprep.subr.bf16.mxu0 %v2538_v29  ;;  %v718_v28 = vld [vmem:[#allocation2 + $0xbd0] sm:$0xff]  ;;  %v2754_v29 = vpack.c.bf16 %v723_v22, %v719_v21  ;;  %v2560_v35 = vpack.c.bf16 %v720_v27, %v716_v26  ;;  %v1718_v16 = vld [vmem:[#allocation7 + $0x18] sm:$0xff]  ;;  %v297_v22 = vld [vmem:[%s3484_s14 + $0x68] sm:$0xff] }
 0x130   : > { %2735 = vmatprep.subr.bf16.mxu1 %v2734_v33  ;;  %v727_v33 = vld [vmem:[#allocation2 + $0xc18] sm:$0xff]  ;;  %v2756_v36 = vpack.c.bf16 %v722_v30, %v718_v28  ;;  %v1736_v21 = vld [vmem:[#allocation7 + $0xa8] sm:$0xff]  ;;  %v1719_v28 = vld [vmem:[#allocation7 + $0x20] sm:$0xff] }
 0x131   : > { %v1750_v19 = vld [vmem:[#allocation7 + $0x118] sm:$0xff]  ;;  %v2770_v27 = vpack.c.bf16 %v1736_v21, %v1735_v20  ;;  %v1751_v30 = vld [vmem:[#allocation7 + $0x120] sm:$0xff]  ;;  %v1728_v21 = vld [vmem:[#allocation7 + $0x68] sm:$0xff] }
 0x132   : > { %2541 = vmatpush1.bf16.msra.mxu0 %v2540_v39  ;;  %v728_v39 = vld [vmem:[#allocation2 + $0xc20] sm:$0xff] }
 0x133   : > { %2737 = vmatpush1.bf16.msra.mxu1 %v2736_v40  ;;  %2543 = vmatprep.subr.bf16.mxu0 %v2542_v41  ;;  %v2758_v40 = vpack.c.bf16 %v731_v34, %v727_v33  ;;  %v726_v41 = vld [vmem:[#allocation2 + $0xc10] sm:$0xff]  ;;  %v2564_v46 = vpack.c.bf16 %v728_v39, %v724_v38  ;;  %v1738_v34 = vld [vmem:[#allocation7 + $0xb8] sm:$0xff]  ;;  %v2804_v39 = vpack.c.bf16 %v1752_v32, %v1751_v30  ;;  %v1727_v20 = vld [vmem:[#allocation7 + $0x60] sm:$0xff] }
 0x134   : > { %2739 = vmatprep.subr.bf16.mxu1 %v2738_v45  ;;  %v288_v45 = vld [vmem:[%s3484_s14 + $0x20] sm:$0xff]  ;;  %v2760_v50 = vpack.c.bf16 %v730_v42, %v726_v41  ;;  %v1737_v33 = vld [vmem:[#allocation7 + $0xb0] sm:$0xff] }
 0x135   : > { %v1721_v41 = vld [vmem:[#allocation7 + $0x30] sm:$0xff]  ;;  %v1722_v42 = vld [vmem:[#allocation7 + $0x38] sm:$0xff] }
 0x136   : > { %2545 = vmatpush1.bf16.msra.mxu0 %v2544_v51  ;;  %v2762_v51 = vpack.c.bf16 %v1732_v44, %v1731_v43  ;;  %v1753_v43 = vld [vmem:[#allocation7 + $0x130] sm:$0xff]  ;;  %v1758_v7 = vld [vmem:[#allocation7 + $0x158] sm:$0xff] }
 0x137   : > { %2741 = vmatpush1.bf16.msra.mxu1 %v2740_v52  ;;  %2547 = vmatprep.subr.bf16.mxu0 %v2546_v53  ;;  %v2794_v52 = vpack.c.bf16 %v1764_v48, %v1763_v47  ;;  %v295_v53 = vld [vmem:[%s3484_s14 + $0x58] sm:$0xff]  ;;  %v1740_v47 = vld [vmem:[#allocation7 + $0xc8] sm:$0xff] }
 0x138   : > { %2743 = vmatprep.subr.bf16.mxu1 %v2742_v57  ;;  %v309_v57 = vld [vmem:[%s3484_s14 + $0xc8] sm:$0xff]  ;;  %v311_v48 = vld [vmem:[%s3484_s14 + $0xd8] sm:$0xff] }
 0x139   : > { %v1778_v30 = vld [vmem:[#allocation7 + $0x1f8] sm:$0xff] }
 0x13a   : > { %2549 = vmatpush1.bf16.msra.mxu0 %v2548_v63  ;;  %v330_v63 = vld [vmem:[%s3484_s14 + $0x170] sm:$0xff]  ;;  %v1730_v32 = vld [vmem:[#allocation7 + $0x78] sm:$0xff] }
 0x13b   : > { %2745 = vmatpush1.bf16.msra.mxu1 %v2744_v0  ;;  %2551 = vmatprep.subr.bf16.mxu0 %v2550_v1  ;;  %v338_v0 = vld [vmem:[%s3484_s14 + $0x1b0] sm:$0xff]  ;;  %v337_v1 = vld [vmem:[%s3484_s14 + $0x1a8] sm:$0xff] }
 0x13c   : > { %2747 = vmatprep.subr.bf16.mxu1 %v2746_v5  ;;  %v1748_v5 = vld [vmem:[#allocation7 + $0x108] sm:$0xff] }
 0x13e   : > { %2553 = vmatpush1.bf16.msra.mxu0 %v2552_v11  ;;  %v1766_v11 = vld [vmem:[#allocation7 + $0x198] sm:$0xff] }
 0x13f   : > { %2749 = vmatpush1.bf16.msra.mxu1 %v2748_v12  ;;  %2555 = vmatprep.subr.bf16.mxu0 %v2554_v13  ;;  %v2764_v12 = vpack.c.bf16 %v1716_v3, %v1715_v2  ;;  %v2796_v13 = vpack.c.bf16 %v1748_v5, %v1747_v4  ;;  %v2798_v18 = vpack.c.bf16 %v1766_v11, %v1765_v10  ;;  %v1725_v3 = vld [vmem:[#allocation7 + $0x50] sm:$0xff]  ;;  %v1726_v4 = vld [vmem:[#allocation7 + $0x58] sm:$0xff]  ;;  %v1744_v10 = vld [vmem:[#allocation7 + $0xe8] sm:$0xff] }
 0x140   : > { %2751 = vmatprep.subr.bf16.mxu1 %v2750_v17  ;;  %v1749_v17 = vld [vmem:[#allocation7 + $0x110] sm:$0xff]  ;;  %v325_v11 = vld [vmem:[%s3484_s14 + $0x148] sm:$0xff] }
 0x141   : > { %v2800_v26 = vpack.c.bf16 %v1750_v19, %v1749_v17  ;;  %v1757_v5 = vld [vmem:[#allocation7 + $0x150] sm:$0xff] }
 0x142   : > { %2557 = vmatpush1.bf16.msra.mxu0 %v2556_v23  ;;  %v1767_v23 = vld [vmem:[#allocation7 + $0x1a0] sm:$0xff]  ;;  %v339_v19 = vld [vmem:[%s3484_s14 + $0x1b8] sm:$0xff] }
 0x143   : > { %2753 = vmatpush1.bf16.msra.mxu1 %v2752_v24  ;;  %2559 = vmatprep.subr.bf16.mxu0 %v2558_v25  ;;  %v1768_v24 = vld [vmem:[#allocation7 + $0x1a8] sm:$0xff]  ;;  %v2768_v25 = vpack.c.bf16 %v1718_v16, %v1717_v15  ;;  %v2816_v15 = vpack.c.bf16 %v1758_v7, %v1757_v5 }
 0x144   : > { %2755 = vmatprep.subr.bf16.mxu1 %v2754_v29  ;;  %v1720_v29 = vld [vmem:[#allocation7 + $0x28] sm:$0xff]  ;;  %v2802_v31 = vpack.c.bf16 %v1768_v24, %v1767_v23  ;;  %v2788_v23 = vpack.c.bf16 %v1728_v21, %v1727_v20 }
 0x145   : > { %v2772_v38 = vpack.c.bf16 %v1720_v29, %v1719_v28  ;;  %v1760_v24 = vld [vmem:[#allocation7 + $0x168] sm:$0xff]  ;;  %v1777_v28 = vld [vmem:[#allocation7 + $0x1f0] sm:$0xff] }
 0x146   : > { %2561 = vmatpush1.bf16.msra.mxu0 %v2560_v35  ;;  %v304_v35 = vld [vmem:[%s3484_s14 + $0xa0] sm:$0xff] }
 0x147   : > { %2757 = vmatpush1.bf16.msra.mxu1 %v2756_v36  ;;  %2563 = vmatprep.subr.bf16.mxu0 %v2562_v37  ;;  %v1769_v36 = vld [vmem:[#allocation7 + $0x1b0] sm:$0xff]  ;;  %v1770_v37 = vld [vmem:[#allocation7 + $0x1b8] sm:$0xff] }
 0x148   : > { %2759 = vmatprep.subr.bf16.mxu1 %v2758_v40  ;;  %v2774_v40 = vpack.c.bf16 %v1738_v34, %v1737_v33  ;;  %v2806_v44 = vpack.c.bf16 %v1770_v37, %v1769_v36  ;;  %v1761_v34 = vld [vmem:[#allocation7 + $0x170] sm:$0xff]  ;;  %v734_v37 = vlaneseq }
 0x149   : > { %1070 = vmatmul.mubr.f32.vlgmr.msra.gmra.mrb[0].mxu0 %v288_v45 }
 0x14a   : > { %1522 = vmatmul.mubr.f32.vlgmr.msra.gmra.mrb[0].mxu1 %v288_v45  ;;  %2565 = vmatpush1.bf16.msra.mxu0 %v2564_v46  ;;  %v1754_v45 = vld [vmem:[#allocation7 + $0x138] sm:$0xff]  ;;  %v1739_v46 = vld [vmem:[#allocation7 + $0xc0] sm:$0xff] }
 0x14b   : > { %1075 = vmatprep.mubr.f32.mxu0 %v296_v49  ;;  %1527 = vmatprep.mubr.f32.mxu1 %v296_v49  ;;  %v1771_v49 = vld [vmem:[#allocation7 + $0x1c0] sm:$0xff] }
 0x14c   : > { %2761 = vmatpush1.bf16.msra.mxu1 %v2760_v50  ;;  %2763 = vmatprep.subr.bf16.mxu0 %v2762_v51  ;;  %v1772_v50 = vld [vmem:[#allocation7 + $0x1c8] sm:$0xff]  ;;  %v2776_v51 = vpack.c.bf16 %v1722_v42, %v1721_v41 }
 0x14d   : > { %1076 = vmatmul.mubr.f32.gmra.mrb[2].mxu0 %v295_v53  ;;  %2795 = vmatprep.subr.bf16.mxu1 %v2794_v52  ;;  %v2808_v52 = vpack.c.bf16 %v1754_v45, %v1753_v43 }
 0x14e   : > { %1528 = vmatmul.mubr.f32.gmra.mrb[2].mxu1 %v295_v53  ;;  %1081 = vmatprep.mubr.f32.mxu0 %v303_v54  ;;  %v2778_v53 = vpack.c.bf16 %v1740_v47, %v1739_v46 }
 0x14f   : > { %1533 = vmatprep.mubr.f32.mxu1 %v303_v54  ;;  %v1723_v54 = vld [vmem:[#allocation7 + $0x40] sm:$0xff] }
 0x151   : > { %1082 = vmatmul.mubr.f32.gmra.mrb[4].mxu0 %v302_v55 }
 0x152   : > { %1534 = vmatmul.mubr.f32.gmra.mrb[4].mxu1 %v302_v55  ;;  %1087 = vmatprep.mubr.f32.mxu0 %v310_v56  ;;  %v1724_v55 = vld [vmem:[#allocation7 + $0x48] sm:$0xff] }
 0x153   : > { %1539 = vmatprep.mubr.f32.mxu1 %v310_v56  ;;  %v1755_v56 = vld [vmem:[#allocation7 + $0x140] sm:$0xff] }
 0x155   : > { %1088 = vmatmul.mubr.f32.gmra.mrb[6].mxu0 %v309_v57 }
 0x156   : > { %1540 = vmatmul.mubr.f32.gmra.mrb[6].mxu1 %v309_v57  ;;  %1093 = vmatprep.mubr.f32.mxu0 %v317_v58  ;;  %v2810_v57 = vpack.c.bf16 %v1772_v50, %v1771_v49 }
 0x157   : > { %1545 = vmatprep.mubr.f32.mxu1 %v317_v58  ;;  %v1756_v58 = vld [vmem:[#allocation7 + $0x148] sm:$0xff] }
 0x159   : > { %1094 = vmatmul.mubr.f32.gmra.mrb[8].mxu0 %v316_v59 }
 0x15a   : > { %1546 = vmatmul.mubr.f32.gmra.mrb[8].mxu1 %v316_v59  ;;  %1099 = vmatprep.mubr.f32.mxu0 %v324_v60  ;;  %v1741_v59 = vld [vmem:[#allocation7 + $0xd0] sm:$0xff] }
 0x15b   : > { %1551 = vmatprep.mubr.f32.mxu1 %v324_v60  ;;  %v1742_v60 = vld [vmem:[#allocation7 + $0xd8] sm:$0xff] }
 0x15c   : > { %v2782_v2 = vpack.c.bf16 %v1742_v60, %v1741_v59 }
 0x15d   : > { %1100 = vmatmul.mubr.f32.gmra.mrb[10].mxu0 %v323_v61 }
 0x15e   : > { %1552 = vmatmul.mubr.f32.gmra.mrb[10].mxu1 %v323_v61  ;;  %1105 = vmatprep.mubr.f32.mxu0 %v331_v62  ;;  %v318_v61 = vld [vmem:[%s3484_s14 + $0x110] sm:$0xff] }
 0x15f   : > { %1557 = vmatprep.mubr.f32.mxu1 %v331_v62  ;;  %v1773_v62 = vld [vmem:[#allocation7 + $0x1d0] sm:$0xff] }
 0x161   : > { %1106 = vmatmul.mubr.f32.gmra.mrb[12].mxu0 %v330_v63 }
 0x162   : > { %1558 = vmatmul.mubr.f32.gmra.mrb[12].mxu1 %v330_v63  ;;  %1111 = vmatprep.mubr.f32.mxu0 %v338_v0  ;;  %v1774_v63 = vld [vmem:[#allocation7 + $0x1d8] sm:$0xff] }
 0x163   : > { %1563 = vmatprep.mubr.f32.mxu1 %v338_v0  ;;  %v2780_v0 = vpack.c.bf16 %v1724_v55, %v1723_v54  ;;  %v2814_v6 = vpack.c.bf16 %v1774_v63, %v1773_v62 }
 0x165   : > { %1112 = vmatmul.mubr.f32.gmra.mrb[14].mxu0 %v337_v1 }
 0x166   : > { %1564 = vmatmul.mubr.f32.gmra.mrb[14].mxu1 %v337_v1  ;;  %1182 = vmatprep.mubr.f32.mxu0 %v3270_v8  ;;  %v2812_v1 = vpack.c.bf16 %v1756_v58, %v1755_v56 }
 0x167   : > { %1634 = vmatprep.mubr.f32.mxu1 %v3270_v8 }
 0x169   : > { %2235 = vmatmul.mubr.msk.f32.vlgmr.msra.gmra.mrb[0].mxu0 %vm754_vm0, %v290_v9 }
 0x16a   : > { %2243 = vmatmul.mubr.msk.f32.vlgmr.msra.gmra.mrb[0].mxu1 %vm754_vm0, %v290_v9  ;;  %1188 = vmatprep.mubr.f32.mxu0 %v3270_v8  ;;  %v1743_v9 = vld [vmem:[#allocation7 + $0xe0] sm:$0xff] }
 0x16b   : > { %1640 = vmatprep.mubr.f32.mxu1 %v3270_v8  ;;  %2765 = vmatpush3.bf16.msra.mxu0 %v2764_v12  ;;  %v1775_v12 = vld [vmem:[#allocation7 + $0x1e0] sm:$0xff]  ;;  %v2786_v16 = vpack.c.bf16 %v1744_v10, %v1743_v9 }
 0x16c   : > { %2797 = vmatpush3.bf16.msra.mxu1 %v2796_v13  ;;  %2767 = vmatprep.subr.bf16.mxu0 %v2766_v14  ;;  %v1776_v13 = vld [vmem:[#allocation7 + $0x1e8] sm:$0xff]  ;;  %v2784_v14 = vpack.c.bf16 %v1726_v4, %v1725_v3 }
 0x16d   : > { %2236 = vmatmul.mubr.msk.f32.gmra.mrb[2].mxu0 %vm754_vm0, %v297_v22  ;;  %2799 = vmatprep.subr.bf16.mxu1 %v2798_v18  ;;  %v2818_v17 = vpack.c.bf16 %v1776_v13, %v1775_v12  ;;  %v332_v18 = vld [vmem:[%s3484_s14 + $0x180] sm:$0xff] }
 0x16e   : > { %2244 = vmatmul.mubr.msk.f32.gmra.mrb[2].mxu1 %vm754_vm0, %v297_v22  ;;  %1194 = vmatprep.mubr.f32.mxu0 %v3270_v8  ;;  %v1759_v22 = vld [vmem:[#allocation7 + $0x160] sm:$0xff] }
 0x16f   : > { %1646 = vmatprep.mubr.f32.mxu1 %v3270_v8  ;;  %2769 = vmatpush3.bf16.msra.mxu0 %v2768_v25  ;;  %v2820_v25 = vpack.c.bf16 %v1760_v24, %v1759_v22 }
 0x170   : > { %2801 = vmatpush3.bf16.msra.mxu1 %v2800_v26  ;;  %2771 = vmatprep.subr.bf16.mxu0 %v2770_v27  ;;  %v1745_v26 = vld [vmem:[#allocation7 + $0xf0] sm:$0xff]  ;;  %v1746_v27 = vld [vmem:[#allocation7 + $0xf8] sm:$0xff] }
 0x171   : > { %2237 = vmatmul.mubr.msk.f32.gmra.mrb[4].mxu0 %vm754_vm0, %v304_v35  ;;  %2803 = vmatprep.subr.bf16.mxu1 %v2802_v31  ;;  %v2790_v29 = vpack.c.bf16 %v1746_v27, %v1745_v26  ;;  %v1729_v31 = vld [vmem:[#allocation7 + $0x70] sm:$0xff] }
 0x172   : > { %2245 = vmatmul.mubr.msk.f32.gmra.mrb[4].mxu1 %vm754_vm0, %v304_v35  ;;  %1200 = vmatprep.mubr.f32.mxu0 %v3270_v8  ;;  %v2792_v33 = vpack.c.bf16 %v1730_v32, %v1729_v31  ;;  %v1762_v35 = vld [vmem:[#allocation7 + $0x178] sm:$0xff] }
 0x173   : > { %1652 = vmatprep.mubr.f32.mxu1 %v3270_v8  ;;  %2773 = vmatpush3.bf16.msra.mxu0 %v2772_v38  ;;  %v2824_v36 = vpack.c.bf16 %v1762_v35, %v1761_v34  ;;  %v735_v38 = vshrl.u32 %v734_v37, 7 }
 0x174   : > { %2805 = vmatpush3.bf16.msra.mxu1 %v2804_v39  ;;  %2775 = vmatprep.subr.bf16.mxu0 %v2774_v40  ;;  %v732_v40 = vld [vmem:[#allocation5] sm:$0xf] }
 0x175   : > { %2238 = vmatmul.mubr.msk.f32.gmra.mrb[6].mxu0 %vm754_vm0, %v311_v48  ;;  %2807 = vmatprep.subr.bf16.mxu1 %v2806_v44  ;;  %v736_v39 = vsub.s32 0, %v735_v38  ;;  %v744_v41 = vsub.s32 2, %v735_v38  ;;  %v740_v42 = vsub.s32 1, %v735_v38  ;;  %v748_v43 = vsub.s32 3, %v735_v38 }
 0x176   : > { %2246 = vmatmul.mubr.msk.f32.gmra.mrb[6].mxu1 %vm754_vm0, %v311_v48  ;;  %1206 = vmatprep.mubr.f32.mxu0 %v3270_v8 }
 0x177   : > { %1658 = vmatprep.mubr.f32.mxu1 %v3270_v8  ;;  %2777 = vmatpush3.bf16.msra.mxu0 %v2776_v51  ;;  %v3575_v44 = vrot.slane %v732_v40, %v736_v39  ;;  %v3577_v45 = vrot.slane %v732_v40, %v744_v41  ;;  %v3579_v46 = vrot.slane %v732_v40, %v740_v42 }
 0x178   : > { %2809 = vmatpush3.bf16.msra.mxu1 %v2808_v52  ;;  %2779 = vmatprep.subr.bf16.mxu0 %v2778_v53  ;;  %v3581_v47 = vrot.slane %v732_v40, %v748_v43 }
 0x179   : > { %2239 = vmatmul.mubr.msk.f32.gmra.mrb[8].mxu0 %vm754_vm0, %v318_v61  ;;  %2811 = vmatprep.subr.bf16.mxu1 %v2810_v57 }
 0x17a   : > { %2247 = vmatmul.mubr.msk.f32.gmra.mrb[8].mxu1 %vm754_vm0, %v318_v61  ;;  %1212 = vmatprep.mubr.f32.mxu0 %v3270_v8 }
 0x17b   : > { %1664 = vmatprep.mubr.f32.mxu1 %v3270_v8  ;;  %2781 = vmatpush3.bf16.msra.mxu0 %v2780_v0 }
 0x17c   : > { %2813 = vmatpush3.bf16.msra.mxu1 %v2812_v1  ;;  %2783 = vmatprep.subr.bf16.mxu0 %v2782_v2 }
 0x17d   : > { %2240 = vmatmul.mubr.msk.f32.gmra.mrb[10].mxu0 %vm754_vm0, %v325_v11  ;;  %2815 = vmatprep.subr.bf16.mxu1 %v2814_v6 }
 0x17e   : > { %2248 = vmatmul.mubr.msk.f32.gmra.mrb[10].mxu1 %vm754_vm0, %v325_v11  ;;  %1218 = vmatprep.mubr.f32.mxu0 %v3270_v8 }
 0x17f   : > { %1670 = vmatprep.mubr.f32.mxu1 %v3270_v8  ;;  %2785 = vmatpush3.bf16.msra.mxu0 %v2784_v14 }
 0x180   : > { %2817 = vmatpush3.bf16.msra.mxu1 %v2816_v15  ;;  %2787 = vmatprep.subr.bf16.mxu0 %v2786_v16 }
 0x181   : > { %2241 = vmatmul.mubr.msk.f32.gmra.mrb[12].mxu0 %vm754_vm0, %v332_v18  ;;  %2819 = vmatprep.subr.bf16.mxu1 %v2818_v17 }
 0x182   : > { %2249 = vmatmul.mubr.msk.f32.gmra.mrb[12].mxu1 %vm754_vm0, %v332_v18  ;;  %1224 = vmatprep.mubr.f32.mxu0 %v3270_v8 }
 0x183   : > { %1676 = vmatprep.mubr.f32.mxu1 %v3270_v8  ;;  %2789 = vmatpush3.bf16.msra.mxu0 %v2788_v23  ;;  %v2822_v8 = vpack.c.bf16 %v1778_v30, %v1777_v28 }
 0x184   : > { %2821 = vmatpush3.bf16.msra.mxu1 %v2820_v25  ;;  %2791 = vmatprep.subr.bf16.mxu0 %v2790_v29 }
 0x185   : > { %2242 = vmatmul.mubr.msk.f32.gmra.mrb[14].mxu0 %vm754_vm0, %v339_v19  ;;  %2823 = vmatprep.subr.bf16.mxu1 %v2822_v8 }
 0x186   : > { %2250 = vmatmul.mubr.msk.f32.gmra.mrb[14].mxu1 %vm754_vm0, %v339_v19 }
 0x187   : > { %2793 = vmatpush3.bf16.msra.mxu0 %v2792_v33 }
 0x188   : > { %2825 = vmatpush3.bf16.msra.mxu1 %v2824_v36 }
 0x23c   : > { %v1184_v48 = vpop.f32.mrb[0].mxu0 }
 0x23d   : > { %v2826_v49 = vadd.f32 %v1184_v48, %v3575_v44  ;;  %v1636_v50 = vpop.f32.mrb[0].mxu1  ;;  %v1186_v51 = vpop.f32.mrb[1].mxu0 }
 0x23e   : > { %v2842_v52 = vadd.f32 %v1636_v50, %v3577_v45  ;;  %v2827_v53 = vadd.f32 %v1186_v51, %v3579_v46  ;;  %v1638_v54 = vpop.f32.mrb[1].mxu1 }
 0x23f   : > { %v2843_v55 = vadd.f32 %v1638_v54, %v3581_v47  ;;  %v1683_v58 = vmax.f32 %v2826_v49, 0.0 }
 0x240   : > { %v1684_v56 = vmax.f32 %v2827_v53, 0.0  ;;  %v1190_v57 = vpop.f32.mrb[2].mxu0  ;;  %v1685_v63 = vmax.f32 %v2842_v52, 0.0 }
 0x241   : > { %v1686_v59 = vmax.f32 %v2843_v55, 0.0  ;;  %v2828_v60 = vadd.f32 %v1190_v57, %v3575_v44  ;;  %v1642_v61 = vpop.f32.mrb[2].mxu1  ;;  %v1192_v62 = vpop.f32.mrb[3].mxu0 }
 0x242   : > { %v2844_v0 = vadd.f32 %v1642_v61, %v3577_v45  ;;  %v2829_v1 = vadd.f32 %v1192_v62, %v3579_v46  ;;  %v1644_v2 = vpop.f32.mrb[3].mxu1  ;;  %1850 = vmatprep.mubr.f32.mxu0 %v1684_v56 }
 0x243   : > { %v2845_v3 = vadd.f32 %v1644_v2, %v3581_v47  ;;  %1955 = vmatprep.mubr.f32.mxu1 %v1686_v59  ;;  %1851 = vmatmul.mubr.f32.vlgmr.msra.gmra.mrb[16].mxu0 %v1683_v58  ;;  %v1687_v6 = vmax.f32 %v2828_v60, 0.0 }
 0x244   : > { %v1688_v4 = vmax.f32 %v2829_v1, 0.0  ;;  %1956 = vmatmul.mubr.f32.vlgmr.msra.gmra.mrb[16].mxu1 %v1685_v63  ;;  %v1196_v5 = vpop.f32.mrb[4].mxu0  ;;  %v1689_v12 = vmax.f32 %v2844_v0, 0.0 }
 0x245   : > { %v1690_v7 = vmax.f32 %v2845_v3, 0.0  ;;  %v2830_v9 = vadd.f32 %v1196_v5, %v3575_v44  ;;  %v1648_v10 = vpop.f32.mrb[4].mxu1  ;;  %v1198_v11 = vpop.f32.mrb[5].mxu0 }
 0x246   : > { %v2846_v13 = vadd.f32 %v1648_v10, %v3577_v45  ;;  %v2831_v14 = vadd.f32 %v1198_v11, %v3579_v46  ;;  %v1650_v15 = vpop.f32.mrb[5].mxu1  ;;  %1855 = vmatprep.mubr.f32.mxu0 %v1688_v4 }
 0x247   : > { %v2847_v16 = vadd.f32 %v1650_v15, %v3581_v47  ;;  %1960 = vmatprep.mubr.f32.mxu1 %v1690_v7  ;;  %1856 = vmatmul.mubr.f32.gmra.mrb[18].mxu0 %v1687_v6  ;;  %v1691_v19 = vmax.f32 %v2830_v9, 0.0 }
 0x248   : > { %v1692_v17 = vmax.f32 %v2831_v14, 0.0  ;;  %1961 = vmatmul.mubr.f32.gmra.mrb[18].mxu1 %v1689_v12  ;;  %v1202_v18 = vpop.f32.mrb[6].mxu0  ;;  %v1693_v24 = vmax.f32 %v2846_v13, 0.0 }
 0x249   : > { %v1694_v20 = vmax.f32 %v2847_v16, 0.0  ;;  %v2832_v21 = vadd.f32 %v1202_v18, %v3575_v44  ;;  %v1654_v22 = vpop.f32.mrb[6].mxu1  ;;  %v1204_v23 = vpop.f32.mrb[7].mxu0 }
 0x24a   : > { %v2848_v25 = vadd.f32 %v1654_v22, %v3577_v45  ;;  %v2833_v26 = vadd.f32 %v1204_v23, %v3579_v46  ;;  %v1656_v27 = vpop.f32.mrb[7].mxu1  ;;  %1860 = vmatprep.mubr.f32.mxu0 %v1692_v17  ;;  %v3618_v23 = vand.u32 127, %v734_v37 }
 0x24b   : > { %v2849_v28 = vadd.f32 %v1656_v27, %v3581_v47  ;;  %1965 = vmatprep.mubr.f32.mxu1 %v1694_v20  ;;  %1861 = vmatmul.mubr.f32.gmra.mrb[20].mxu0 %v1691_v19  ;;  %v1695_v31 = vmax.f32 %v2832_v21, 0.0 }
 0x24c   : > { %v1696_v29 = vmax.f32 %v2833_v26, 0.0  ;;  %1966 = vmatmul.mubr.f32.gmra.mrb[20].mxu1 %v1693_v24  ;;  %v1208_v30 = vpop.f32.mrb[8].mxu0  ;;  %v1697_v35 = vmax.f32 %v2848_v25, 0.0  ;;  %vm1998_vm1 = vcmp.lt.s32.totalorder %v3618_v23, 10 }
 0x24d   : > { %v1698_v32 = vmax.f32 %v2849_v28, 0.0  ;;  %v2834_v8 = vadd.f32 %v1208_v30, %v3575_v44  ;;  %v1660_v33 = vpop.f32.mrb[8].mxu1  ;;  %v1210_v34 = vpop.f32.mrb[9].mxu0 }
 0x24e   : > { %v2850_v36 = vadd.f32 %v1660_v33, %v3577_v45  ;;  %v2835_v38 = vadd.f32 %v1210_v34, %v3579_v46  ;;  %v1662_v39 = vpop.f32.mrb[9].mxu1  ;;  %1865 = vmatprep.mubr.f32.mxu0 %v1696_v29 }
 0x24f   : > { %v2851_v40 = vadd.f32 %v1662_v39, %v3581_v47  ;;  %1970 = vmatprep.mubr.f32.mxu1 %v1698_v32  ;;  %1866 = vmatmul.mubr.f32.gmra.mrb[22].mxu0 %v1695_v31  ;;  %v1699_v43 = vmax.f32 %v2834_v8, 0.0 }
 0x250   : > { %v1700_v41 = vmax.f32 %v2835_v38, 0.0  ;;  %1971 = vmatmul.mubr.f32.gmra.mrb[22].mxu1 %v1697_v35  ;;  %v1214_v42 = vpop.f32.mrb[10].mxu0  ;;  %v1701_v52 = vmax.f32 %v2850_v36, 0.0 }
 0x251   : > { %v1702_v48 = vmax.f32 %v2851_v40, 0.0  ;;  %v2836_v49 = vadd.f32 %v1214_v42, %v3575_v44  ;;  %v1666_v50 = vpop.f32.mrb[10].mxu1  ;;  %v1216_v51 = vpop.f32.mrb[11].mxu0 }
 0x252   : > { %v2852_v53 = vadd.f32 %v1666_v50, %v3577_v45  ;;  %v2837_v54 = vadd.f32 %v1216_v51, %v3579_v46  ;;  %v1668_v55 = vpop.f32.mrb[11].mxu1  ;;  %1870 = vmatprep.mubr.f32.mxu0 %v1700_v41 }
 0x253   : > { %v2853_v56 = vadd.f32 %v1668_v55, %v3581_v47  ;;  %1975 = vmatprep.mubr.f32.mxu1 %v1702_v48  ;;  %1871 = vmatmul.mubr.f32.gmra.mrb[24].mxu0 %v1699_v43  ;;  %v1703_v59 = vmax.f32 %v2836_v49, 0.0 }
 0x254   : > { %v1704_v57 = vmax.f32 %v2837_v54, 0.0  ;;  %1976 = vmatmul.mubr.f32.gmra.mrb[24].mxu1 %v1701_v52  ;;  %v1220_v58 = vpop.f32.mrb[12].mxu0  ;;  %v1705_v0 = vmax.f32 %v2852_v53, 0.0 }
 0x255   : > { %v1706_v60 = vmax.f32 %v2853_v56, 0.0  ;;  %v2838_v61 = vadd.f32 %v1220_v58, %v3575_v44  ;;  %v1672_v62 = vpop.f32.mrb[12].mxu1  ;;  %v1222_v63 = vpop.f32.mrb[13].mxu0 }
 0x256   : > { %v2854_v1 = vadd.f32 %v1672_v62, %v3577_v45  ;;  %v2839_v2 = vadd.f32 %v1222_v63, %v3579_v46  ;;  %v1674_v3 = vpop.f32.mrb[13].mxu1  ;;  %1875 = vmatprep.mubr.f32.mxu0 %v1704_v57 }
 0x257   : > { %v2855_v4 = vadd.f32 %v1674_v3, %v3581_v47  ;;  %1980 = vmatprep.mubr.f32.mxu1 %v1706_v60  ;;  %1876 = vmatmul.mubr.f32.gmra.mrb[26].mxu0 %v1703_v59  ;;  %v1707_v7 = vmax.f32 %v2838_v61, 0.0 }
 0x258   : > { %v1708_v5 = vmax.f32 %v2839_v2, 0.0  ;;  %1981 = vmatmul.mubr.f32.gmra.mrb[26].mxu1 %v1705_v0  ;;  %v1226_v6 = vpop.f32.mrb[14].mxu0  ;;  %v1709_v13 = vmax.f32 %v2854_v1, 0.0 }
 0x259   : > { %v1710_v9 = vmax.f32 %v2855_v4, 0.0  ;;  %v2840_v10 = vadd.f32 %v1226_v6, %v3575_v44  ;;  %v1678_v11 = vpop.f32.mrb[14].mxu1  ;;  %v1228_v12 = vpop.f32.mrb[15].mxu0 }
 0x25a   : > { %v2856_v14 = vadd.f32 %v1678_v11, %v3577_v45  ;;  %v2841_v15 = vadd.f32 %v1228_v12, %v3579_v46  ;;  %v1680_v16 = vpop.f32.mrb[15].mxu1  ;;  %1880 = vmatprep.mubr.f32.mxu0 %v1708_v5  ;;  %v3615_v45 = vld [vmem:[#allocation8] ss:$0 sm:$0xff] }
 0x25b   : > { %v2857_v17 = vadd.f32 %v1680_v16, %v3581_v47  ;;  %1985 = vmatprep.mubr.f32.mxu1 %v1710_v9  ;;  %1881 = vmatmul.mubr.f32.gmra.mrb[28].mxu0 %v1707_v7  ;;  %v1711_v19 = vmax.f32 %v2840_v10, 0.0 }
 0x25c   : > { %v1712_v18 = vmax.f32 %v2841_v15, 0.0  ;;  %1986 = vmatmul.mubr.f32.gmra.mrb[28].mxu1 %v1709_v13  ;;  %v1713_v21 = vmax.f32 %v2856_v14, 0.0 }
 0x25d   : > { %v1714_v20 = vmax.f32 %v2857_v17, 0.0 }
 0x25e   : > { %1885 = vmatprep.mubr.f32.mxu0 %v1712_v18 }
 0x25f   : > { %1990 = vmatprep.mubr.f32.mxu1 %v1714_v20  ;;  %1886 = vmatmul.mubr.f32.gmra.mrb[30].mxu0 %v1711_v19 }
 0x260   : > { %1991 = vmatmul.mubr.f32.gmra.mrb[30].mxu1 %v1713_v21 }
 0x316   : > { %v2290_v44 = vpop.f32.mrb[16].mxu0 }
 0x317   : > { %v2346_v22 = vpop.f32.mrb[16].mxu1  ;;  %v2291_v46 = vpop.f32.mrb[17].mxu0 }
 0x318   : > { %v2292_v47 = vadd.f32 %v2291_v46, %v2290_v44  ;;  %v2347_v24 = vpop.f32.mrb[17].mxu1 }
 0x319   : > { %v2348_v25 = vadd.f32 %v2347_v24, %v2346_v22 }
 0x31a   : > { %v1853_v26 = vadd.f32 %v2292_v47, %v3615_v45  ;;  %v2293_v27 = vpop.f32.mrb[18].mxu0 }
 0x31b   : > { %v2349_v28 = vpop.f32.mrb[18].mxu1  ;;  %v2294_v29 = vpop.f32.mrb[19].mxu0 }
 0x31c   : > { %v2295_v30 = vadd.f32 %v2294_v29, %v2293_v27  ;;  %v2350_v31 = vpop.f32.mrb[19].mxu1  ;;  %v3622_v32 = vadd.f32 %v2348_v25, %v1853_v26 }
 0x31d   : > { %v2351_v8 = vadd.f32 %v2350_v31, %v2349_v28 }
 0x31e   : > { %v1858_v33 = vadd.f32 %v2295_v30, %v3615_v45  ;;  %v2296_v34 = vpop.f32.mrb[20].mxu0  ;;  %v3628_v37 = vsel %vm1998_vm1, %v3622_v32, -1e+30 }
 0x31f   : > { %v2352_v35 = vpop.f32.mrb[20].mxu1  ;;  %v2297_v36 = vpop.f32.mrb[21].mxu0  ;;  %2007 = vmax.xlane.f32.xlu0 %v3628_v37 }
 0x320   : > { %v2298_v38 = vadd.f32 %v2297_v36, %v2296_v34  ;;  %v2353_v39 = vpop.f32.mrb[21].mxu1  ;;  %v3631_v40 = vadd.f32 %v2351_v8, %v1858_v33 }
 0x321   : > { %v2354_v41 = vadd.f32 %v2353_v39, %v2352_v35 }
 0x322   : > { %v1863_v42 = vadd.f32 %v2298_v38, %v3615_v45  ;;  %v2299_v43 = vpop.f32.mrb[22].mxu0  ;;  %v2000_v48 = vsel %vm1998_vm1, %v3631_v40, -1e+30 }
 0x323   : > { %v2355_v49 = vpop.f32.mrb[22].mxu1  ;;  %v2300_v50 = vpop.f32.mrb[23].mxu0  ;;  %2009 = vmax.xlane.f32.xlu0 %v2000_v48 }
 0x324   : > { %v2301_v51 = vadd.f32 %v2300_v50, %v2299_v43  ;;  %v2356_v52 = vpop.f32.mrb[23].mxu1  ;;  %v3637_v53 = vadd.f32 %v2354_v41, %v1863_v42 }
 0x325   : > { %v2357_v54 = vadd.f32 %v2356_v52, %v2355_v49 }
 0x326   : > { %v1868_v55 = vadd.f32 %v2301_v51, %v3615_v45  ;;  %v2302_v56 = vpop.f32.mrb[24].mxu0  ;;  %v2001_v57 = vsel %vm1998_vm1, %v3637_v53, -1e+30 }
 0x327   : > { %v2358_v58 = vpop.f32.mrb[24].mxu1  ;;  %v2303_v59 = vpop.f32.mrb[25].mxu0  ;;  %2011 = vmax.xlane.f32.xlu1 %v2001_v57 }
 0x328   : > { %v2304_v60 = vadd.f32 %v2303_v59, %v2302_v56  ;;  %v2359_v61 = vpop.f32.mrb[25].mxu1  ;;  %v3643_v62 = vadd.f32 %v2357_v54, %v1868_v55 }
 0x329   : > { %v2360_v63 = vadd.f32 %v2359_v61, %v2358_v58 }
 0x32a   : > { %v1873_v0 = vadd.f32 %v2304_v60, %v3615_v45  ;;  %v2305_v1 = vpop.f32.mrb[26].mxu0  ;;  %v2002_v2 = vsel %vm1998_vm1, %v3643_v62, -1e+30 }
 0x32b   : > { %v2361_v3 = vpop.f32.mrb[26].mxu1  ;;  %v2306_v4 = vpop.f32.mrb[27].mxu0  ;;  %2013 = vmax.xlane.f32.xlu1 %v2002_v2 }
 0x32c   : > { %v2307_v5 = vadd.f32 %v2306_v4, %v2305_v1  ;;  %v2362_v6 = vpop.f32.mrb[27].mxu1  ;;  %v3649_v7 = vadd.f32 %v2360_v63, %v1873_v0 }
 0x32d   : > { %v2363_v9 = vadd.f32 %v2362_v6, %v2361_v3 }
 0x32e   : > { %v1878_v10 = vadd.f32 %v2307_v5, %v3615_v45  ;;  %v2308_v11 = vpop.f32.mrb[28].mxu0  ;;  %v2003_v12 = vsel %vm1998_vm1, %v3649_v7, -1e+30 }
 0x32f   : > { %v2364_v13 = vpop.f32.mrb[28].mxu1  ;;  %v2309_v14 = vpop.f32.mrb[29].mxu0  ;;  %2015 = vmax.xlane.f32.xlu0 %v2003_v12 }
 0x330   : > { %v2310_v15 = vadd.f32 %v2309_v14, %v2308_v11  ;;  %v2365_v16 = vpop.f32.mrb[29].mxu1  ;;  %v3655_v17 = vadd.f32 %v2363_v9, %v1878_v10 }
 0x331   : > { %v2366_v18 = vadd.f32 %v2365_v16, %v2364_v13 }
 0x332   : > { %v1883_v19 = vadd.f32 %v2310_v15, %v3615_v45  ;;  %v2311_v20 = vpop.f32.mrb[30].mxu0  ;;  %v2004_v21 = vsel %vm1998_vm1, %v3655_v17, -1e+30 }
 0x333   : > { %v2367_v44 = vpop.f32.mrb[30].mxu1  ;;  %v2312_v22 = vpop.f32.mrb[31].mxu0  ;;  %2017 = vmax.xlane.f32.xlu1 %v2004_v21 }
 0x334   : > { %v2313_v46 = vadd.f32 %v2312_v22, %v2311_v20  ;;  %v2368_v47 = vpop.f32.mrb[31].mxu1  ;;  %v3661_v24 = vadd.f32 %v2366_v18, %v1883_v19 }
 0x335   : > { %v2369_v25 = vadd.f32 %v2368_v47, %v2367_v44 }
 0x336   : > { %v1888_v26 = vadd.f32 %v2313_v46, %v3615_v45  ;;  %v2005_v27 = vsel %vm1998_vm1, %v3661_v24, -1e+30 }
 0x337   : > { %2019 = vmax.xlane.f32.xlu0 %v2005_v27 }
 0x338   : > { %v3667_v28 = vadd.f32 %v2369_v25, %v1888_v26 }
 0x33a   : > { %v2006_v29 = vsel %vm1998_vm1, %v3667_v28, -1e+30 }
 0x33b   : > { %2021 = vmax.xlane.f32.xlu1 %v2006_v29 }
 0x3ac   : > { %v2008_v30 = vpop.xlane.xlu0 %2007 }
 0x3ad   : > { %v2023_v31 = vsub.f32 %v3628_v37, %v2008_v30 }
 0x3af   : > { %v2031_v8 = vmul.f32 1.442695, %v2023_v31 }
 0x3b0   : > { %v3673_v33 = vpop.xlane.xlu0 %2009 }
 0x3b1   : > { %3042 = vpow2.f32 %v2031_v8  ;;  %v2024_v45 = vsub.f32 %v2000_v48, %v3673_v33 }
 0x3b3   : > { %v2033_v34 = vmul.f32 1.442695, %v2024_v45 }
 0x3b4   : > { %v3676_v35 = vpop.xlane.xlu1 %2011 }
 0x3b5   : > { %3044 = vpow2.f32 %v2033_v34  ;;  %v2025_v36 = vsub.f32 %v2001_v57, %v3676_v35 }
 0x3b7   : > { %v2035_v38 = vmul.f32 1.442695, %v2025_v36 }
 0x3b8   : > { %v3679_v39 = vpop.xlane.xlu1 %2013 }
 0x3b9   : > { %3046 = vpow2.f32 %v2035_v38  ;;  %v2026_v23 = vsub.f32 %v2002_v2, %v3679_v39 }
 0x3bb   : > { %v3043_v41 = vpop.eup %3042  ;;  %v2037_v37 = vmul.f32 1.442695, %v2026_v23 }
 0x3bc   : > { %2047 = vadd.xlane.f32.xlu0 %v3043_v41  ;;  %v3682_v42 = vpop.xlane.xlu0 %2015 }
 0x3bd   : > { %3048 = vpow2.f32 %v2037_v37  ;;  %v2027_v43 = vsub.f32 %v2003_v12, %v3682_v42 }
 0x3bf   : > { %v3045_v48 = vpop.eup %3044  ;;  %v2039_v49 = vmul.f32 1.442695, %v2027_v43 }
 0x3c0   : > { %v3685_v50 = vpop.xlane.xlu1 %2017  ;;  %2049 = vadd.xlane.f32.xlu1 %v3045_v48 }
 0x3c1   : > { %3050 = vpow2.f32 %v2039_v49  ;;  %v2028_v51 = vsub.f32 %v2004_v21, %v3685_v50 }
 0x3c3   : > { %v3047_v52 = vpop.eup %3046  ;;  %v2041_v54 = vmul.f32 1.442695, %v2028_v51 }
 0x3c4   : > { %2051 = vadd.xlane.f32.xlu0 %v3047_v52  ;;  %v3688_v55 = vpop.xlane.xlu0 %2019 }
 0x3c5   : > { %3052 = vpow2.f32 %v2041_v54  ;;  %v2029_v56 = vsub.f32 %v2005_v27, %v3688_v55 }
 0x3c7   : > { %v3049_v57 = vpop.eup %3048  ;;  %v2043_v58 = vmul.f32 1.442695, %v2029_v56 }
 0x3c8   : > { %v3691_v59 = vpop.xlane.xlu1 %2021  ;;  %2053 = vadd.xlane.f32.xlu1 %v3049_v57 }
 0x3c9   : > { %3054 = vpow2.f32 %v2043_v58  ;;  %v2030_v60 = vsub.f32 %v2006_v29, %v3691_v59 }
 0x3cb   : > { %v3051_v61 = vpop.eup %3050  ;;  %v2045_v63 = vmul.f32 1.442695, %v2030_v60 }
 0x3cc   : > { %2055 = vadd.xlane.f32.xlu0 %v3051_v61 }
 0x3cd   : > { %3056 = vpow2.f32 %v2045_v63 }
 0x3cf   : > { %v3053_v0 = vpop.eup %3052 }
 0x3d0   : > { %2057 = vadd.xlane.f32.xlu1 %v3053_v0 }
 0x3d3   : > { %v3055_v1 = vpop.eup %3054 }
 0x3d4   : > { %2059 = vadd.xlane.f32.xlu0 %v3055_v1 }
 0x3d7   : > { %v3057_v2 = vpop.eup %3056 }
 0x3d8   : > { %2061 = vadd.xlane.f32.xlu1 %v3057_v2 }
 0x449   : > { %v2048_v3 = vpop.xlane.xlu0 %2047 }
 0x44a   : > { %3058 = vlog2.f32 %v2048_v3 }
 0x44d   : > { %v2050_v4 = vpop.xlane.xlu1 %2049 }
 0x44e   : > { %3060 = vlog2.f32 %v2050_v4 }
 0x451   : > { %v2052_v5 = vpop.xlane.xlu0 %2051 }
 0x452   : > { %3062 = vlog2.f32 %v2052_v5 }
 0x454   : > { %v3059_v6 = vpop.eup %3058 }
 0x455   : > { %v2064_v9 = vmul.f32 0.6931472, %v3059_v6  ;;  %v2054_v10 = vpop.xlane.xlu1 %2053 }
 0x456   : > { %3064 = vlog2.f32 %v2054_v10 }
 0x457   : > { %v2079_v11 = vadd.f32 %v2064_v9, %v2008_v30 }
 0x458   : > { %v3061_v12 = vpop.eup %3060 }
 0x459   : > { %v2087_v13 = vsub.f32 %v3622_v32, %v2079_v11  ;;  %v2066_v14 = vmul.f32 0.6931472, %v3061_v12  ;;  %v2056_v15 = vpop.xlane.xlu0 %2055 }
 0x45a   : > { %3066 = vlog2.f32 %v2056_v15 }
 0x45b   : > { %2095 = vst [vmem:[%s3698_s17] sm:$0xff] %v2087_v13  ;;  %v2080_v16 = vadd.f32 %v2066_v14, %v3673_v33 }
 0x45c   : > { %v3063_v18 = vpop.eup %3062 }
 0x45d   : > { %v2088_v19 = vsub.f32 %v3631_v40, %v2080_v16  ;;  %v2068_v20 = vmul.f32 0.6931472, %v3063_v18  ;;  %v2058_v21 = vpop.xlane.xlu1 %2057 }
 0x45e   : > { %3068 = vlog2.f32 %v2058_v21 }
 0x45f   : > { %2096 = vst [vmem:[%s3698_s17 + $0x8] sm:$0xff] %v2088_v19  ;;  %v2081_v32 = vadd.f32 %v2068_v20, %v3676_v35 }
 0x460   : > { %v3065_v44 = vpop.eup %3064 }
 0x461   : > { %v2089_v22 = vsub.f32 %v3637_v53, %v2081_v32  ;;  %v2070_v46 = vmul.f32 0.6931472, %v3065_v44  ;;  %v2060_v47 = vpop.xlane.xlu0 %2059 }
 0x462   : > { %3070 = vlog2.f32 %v2060_v47 }
 0x463   : > { %2097 = vst [vmem:[%s3698_s17 + $0x10] sm:$0xff] %v2089_v22  ;;  %v2082_v25 = vadd.f32 %v2070_v46, %v3679_v39 }
 0x464   : > { %v3067_v26 = vpop.eup %3066 }
 0x465   : > { %v2090_v40 = vsub.f32 %v3643_v62, %v2082_v25  ;;  %v2072_v27 = vmul.f32 0.6931472, %v3067_v26  ;;  %v2062_v29 = vpop.xlane.xlu1 %2061 }
 0x466   : > { %3072 = vlog2.f32 %v2062_v29 }
 0x467   : > { %2098 = vst [vmem:[%s3698_s17 + $0x18] sm:$0xff] %v2090_v40  ;;  %v2083_v30 = vadd.f32 %v2072_v27, %v3682_v42 }
 0x468   : > { %v3069_v53 = vpop.eup %3068 }
 0x469   : > { %v2091_v31 = vsub.f32 %v3649_v7, %v2083_v30  ;;  %v2074_v8 = vmul.f32 0.6931472, %v3069_v53 }
 0x46b   : > { %2099 = vst [vmem:[%s3698_s17 + $0x20] sm:$0xff] %v2091_v31  ;;  %v2084_v33 = vadd.f32 %v2074_v8, %v3685_v50 }
 0x46c   : > { %v3071_v45 = vpop.eup %3070 }
 0x46d   : > { %v2092_v62 = vsub.f32 %v3655_v17, %v2084_v33  ;;  %v2076_v34 = vmul.f32 0.6931472, %v3071_v45 }
 0x46f   : > { %2100 = vst [vmem:[%s3698_s17 + $0x28] sm:$0xff] %v2092_v62  ;;  %v2085_v35 = vadd.f32 %v2076_v34, %v3688_v55 }
 0x470   : > { %v3073_v36 = vpop.eup %3072 }
 0x471   : > { %v2093_v38 = vsub.f32 %v3661_v24, %v2085_v35  ;;  %v2078_v39 = vmul.f32 0.6931472, %v3073_v36 }
 0x473   : > { %2101 = vst [vmem:[%s3698_s17 + $0x30] sm:$0xff] %v2093_v38  ;;  %v2086_v7 = vadd.f32 %v2078_v39, %v3691_v59 }
 0x475   : > { %v2094_v17 = vsub.f32 %v3667_v28, %v2086_v7 }
 0x477   : > { %2102 = vst [vmem:[%s3698_s17 + $0x38] sm:$0xff] %v2094_v17 }
 0x478   : > { %3199 = shalt.err (!%p3196_p1)
}
 0x479   : > { %s3200_s30 = scalar_lea.hbm %s3725_s12, 1024  ;;  %s3204_s13 = scalar_lea.hbm %s3779_s5, 2048 }
 0x47a   : > { %p3201_p0 = scmp.ne.s32.totalorder %s3725_s12, %s3200_s30  ;;  %p3205_p9 = scmp.lt.u32.totalorder %s3725_s12, %s3779_s5 }
 0x47b   : > { %p3206_p12 = scmp.lt.u32.totalorder %s3204_s13, %s3200_s30  ;;  %p3208_p2 = scmp.lt.u32.totalorder %s3200_s30, %s3725_s12 }
 0x47c   : > { %p3202_p6 = pnand %p3201_p0, %p3798_p3 }
 0x47d   : > { %p3207_p10 = por %p3206_p12, %p3205_p9 }
 0x47e   : > { %p3203_p5 = pneg %p3202_p6 }
 0x47f   : > { %p3209_p4 = por %p3208_p2, %p3207_p10 }
 0x481   : > { %p3210_p7 = pnand %p3209_p4, %p3203_p5 }
 0x483   : > { %3213 = shalt.err (!%p3210_p7)
}
 0x484   : > { %s3272_s16 = smov 128   ;;  %s3273_s17 = smov 8  }
 0x485   : > { %2971 = dma.vmem_to_hbm [thread:$0]  (%p3798_p3), %s3727_s26, 1024, %s3725_s12, %s3733_s9, %s3272_s16, %s3272_s16, %s3273_s17  }
 0x486 PF: > { %p2998_p8 = scmp.ge.s32.totalorder %s3260_s21, 2  ;;  %s2132_s25 = sand.u32 1, %s3248_s18  }
 0x487   : > { %p3799_p11 = scmp.ne.s32.totalorder %s3785_s29, 0  ;;  %s2133_s7 = scalar_lea.sflag [#allocation4], %s2132_s25 }
 0x489   : > { %p2987_p13 = pnand %p2998_p8, %p3799_p11 }
 0x48b   : > { %3243 = dma.done.wait (!%p2987_p13), %s2133_s7, 1024  }
 0x48c   : > { %3245 = vsyncadd (!%p2987_p13), %s2133_s7, 4294966272  ;;  %p18_p1 = scmp.ge.s32.totalorder %s3329_s24, 4   ;;  %s3800_s18 = smov %s3252_s19 }
 0x48d   : > { %s3801_s19 = smov %s3256_s20  ;;  %s3802_s20 = smov %s3340_s27 }
 0x48e   : > { %s3803_s21 = smov %s3329_s24  ;;  %20 = sbr.rel (!%p18_p1) target bundleno = 8 (0x8), region = 92 }
 0x495   :  { %2138 = vsyncpa [#allocation3], 1 }
 0x496   :  { %2140 = vsyncpa [#allocation3 + $0x1], 1 }
 0x497   :  { %2141 = vsyncpa [#allocation6], 1 }
 0x498   :  { %2142 = vsyncpa [#allocation9], 1 }
 0x499   :  { %2143 = vsyncpa [#allocation4], 1 }
 0x49a   :  { %2145 = vsyncpa [#allocation4 + $0x1], 1 }

// kernel: tpu_custom_call.1
= control target key start
LH: loop header
LB: loop body
LE: loop exit
PB: predicated region body
PF: predicated region fallthrough
CT: control target
= control target key end

     0   :  { %s3774_s0 = inlined_call_operand.vmem [shape: f32[128,784], index: 0, kind: input, shape index: {}]   ;;  %s3775_s1 = inlined_call_operand.hbm [shape: f32[784,512], index: 1, kind: input, shape index: {}]   ;;  %s3776_s2 = inlined_call_operand.hbm [shape: f32[1,512], index: 2, kind: input, shape index: {}]   ;;  %s3777_s3 = inlined_call_operand.hbm [shape: f32[512,128], index: 3, kind: input, shape index: {}]   ;;  %s3778_s4 = inlined_call_operand.hbm [shape: f32[1,128], index: 4, kind: input, shape index: {}]   ;;  %s3779_s5 = inlined_call_operand.hbm [shape: f32[128,128], index: 5, kind: output, shape index: {}]  }
   0x1   :  { %3783 = sst [smem:[#allocation15_spill]] %s3775_s1 }
   0x2   :  { %10 = vsyncpa [#allocation3], 0 }
   0x3   :  { %11 = vsyncpa [#allocation6], 0 }
   0x4   :  { %12 = vsyncpa [#allocation9], 0 }
   0x5   :  { %13 = vsyncpa [#allocation4], 0 }
   0x6   :  { %15 = vsyncpa [#allocation4 + $0x1], 0  ;;  %s3304_s18 = smov 0   ;;  %s3306_s19 = smov 0  }
   0x7   :  { %s3308_s20 = smov 0   ;;  %s3310_s21 = smov 0  }
   0x8 LB: > { %s3325_s22 = sadd.s32 4294967295, %s3260_s21   ;;  %s2220_s23 = sadd.s32 4294967294, %s3260_s21   ;;  %s3260_s21 = sphi %s3310_s21, %s3803_s21   ;;  %s3256_s20 = sphi %s3308_s20, %s3802_s20   ;;  %s3252_s19 = sphi %s3306_s19, %s3801_s19   ;;  %s3248_s18 = sphi %s3304_s18, %s3800_s18  }
   0x9   : > { %s3329_s24 = sadd.s32 1, %s3260_s21   ;;  %s138_s25 = sadd.s32 1, %s3256_s20 }
   0xa   : > { %s135_s26 = ssub.s32 %s3260_s21, %s3329_s24  ;;  %p148_p0 = scmp.ne.s32.totalorder %s3256_s20, %s3252_s19 }
   0xb   : > { %p136_p1 = scmp.eq.s32.totalorder %s135_s26, 0  ;;  %p149_p2 = scmp.eq.s32.totalorder %s3325_s22, 1 }
   0xc   : > { %p154_p3 = scmp.ne.s32.totalorder %s3252_s19, %s3248_s18  ;;  %p155_p4 = scmp.eq.s32.totalorder %s2220_s23, 1 }
   0xd   : > { %s3340_s27 = scalar_select %p136_p1, %s3256_s20, %s138_s25  }
   0xe   : > { %p3342_p5 = por %p149_p2, %p148_p0  ;;  %p3346_p6 = por %p155_p4, %p154_p3 }
   0xf   : > { %p2221_p7 = scmp.ge.s32.totalorder %s3260_s21, 1  ;;  %p162_p8 = scmp.lt.s32.totalorder %s3260_s21, 3 }
  0x10   : > { %s3784_s28 = scalar_select %p3342_p5, 1, 0 }
  0x11   : > { %s3785_s29 = scalar_select %p3346_p6, 1, 0 }
  0x12   : > { %p3780_p9 = scmp.eq.s32.totalorder %s3325_s22, 0  ;;  %p3353_p10 = pnand %p2221_p7, %p162_p8 }
  0x13   : > { %s3262_s6 = smov [#allocation5]   ;;  %s3263_s8 = smov [#allocation2]  }
  0x14   : > { %s3786_s30 = scalar_select %p3353_p10, 1, 0 }
  0x15   : > { %s188_s7 = sshll.u32 %s3262_s6, 4  ;;  %p2973_p11 = pneg %p3353_p10  ;;  %s189_s7 = int_to_ptr.vmem [resolvable:$true] %s188_s7 }
  0x16   : > { %s174_s9 = sshll.u32 %s3263_s8, 4  ;;  %s3264_s11 = smov [#allocation7]   ;;  %s3365_s9 = int_to_ptr.vmem [resolvable:$true] %s174_s9 }
  0x17   : > { %p3361_p12 = pnand %p3780_p9, %p2973_p11  ;;  %s3367_s12 = sshll.u32 %s3264_s11, 4  ;;  %s199_s12 = int_to_ptr.vmem [resolvable:$true] %s3367_s12 }
  0x18   : > { %s3074_s15 = scalar_lea.hbm %s3776_s2, 64 }
  0x19   : > { %p3075_p13 = scmp.ne.s32.totalorder %s3776_s2, %s3074_s15  ;;  %p3377_p0 = pneg %p3361_p12 }
  0x1a   : > { %p3081_p3 = scmp.lt.u32.totalorder %s3074_s15, %s3776_s2 }
  0x1b   : > { %p3077_p1 = pnand %p3377_p0, %p3075_p13 }
  0x1d   : > { %p3078_p2 = pneg %p3077_p1 }
  0x1f   : > { %p3083_p4 = pnand %p3081_p3, %p3078_p2 }
  0x21   : > { %3086 = shalt.err (!%p3083_p4)
}
  0x22   : > { %s3087_s6 = scalar_lea.vmem %s189_s7, 64  ;;  %p3095_p9 = scmp.lt.s32.totalorder %s189_s7, %s189_s7 }
  0x23   : > { %p3088_p7 = scmp.ne.s32.totalorder %s189_s7, %s3087_s6  ;;  %p3096_p6 = scmp.lt.s32.totalorder %s3087_s6, %s3087_s6 }
  0x25   : > { %p3090_p8 = pnand %p3088_p7, %p3377_p0  ;;  %p3097_p5 = por %p3096_p6, %p3095_p9 }
  0x27   : > { %p3091_p11 = pneg %p3090_p8 }
  0x29   : > { %p3098_p10 = pnand %p3097_p5, %p3091_p11 }
  0x2b   : > { %3101 = shalt.err (!%p3098_p10)
}
  0x2c   : > { %2979 = dma.hbm_to_vmem [thread:$0]  (!%p3361_p12), %s3776_s2, 64, %s189_s7, [#allocation6]  }
  0x2d   : > { %s3789_s1 = sld [smem:[#allocation15_spill]] }
  0x33   : > { %s3102_s15 = scalar_lea.hbm %s3789_s1, 50176 }
  0x34   : > { %p3103_p13 = scmp.ne.s32.totalorder %s3789_s1, %s3102_s15  ;;  %p3109_p5 = scmp.lt.u32.totalorder %s3102_s15, %s3789_s1 }
  0x36   : > { %p3105_p1 = pnand %p3103_p13, %p3377_p0 }
  0x38   : > { %p3106_p6 = pneg %p3105_p1 }
  0x3a   : > { %p3111_p9 = pnand %p3109_p5, %p3106_p6 }
  0x3c   : > { %3114 = shalt.err (!%p3111_p9)
}
  0x3d   : > { %s3115_s7 = scalar_lea.vmem %s3365_s9, 50176  ;;  %p3123_p4 = scmp.lt.s32.totalorder %s3365_s9, %s3365_s9 }
  0x3e   : > { %p3116_p10 = scmp.ne.s32.totalorder %s3365_s9, %s3115_s7  ;;  %p3124_p7 = scmp.lt.s32.totalorder %s3115_s7, %s3115_s7 }
  0x40   : > { %p3118_p2 = pnand %p3116_p10, %p3377_p0  ;;  %p3125_p8 = por %p3124_p7, %p3123_p4 }
  0x42   : > { %p3119_p3 = pneg %p3118_p2 }
  0x44   : > { %p3126_p11 = pnand %p3125_p8, %p3119_p3 }
  0x46   : > { %3129 = shalt.err (!%p3126_p11)
}
  0x47   : > { %s3265_s6 = smov 512   ;;  %s3266_s8 = smov 32  }
  0x48   : > { %2976 = dma.hbm_to_vmem [thread:$0]  (!%p3361_p12), %s3789_s1, 50176, %s3365_s9, [#allocation3], %s3265_s6, %s3265_s6, %s3266_s8  }
  0x49   : > { %s3130_s16 = scalar_lea.hbm %s3777_s3, 8192 }
  0x4a   : > { %p3131_p13 = scmp.ne.s32.totalorder %s3777_s3, %s3130_s16  ;;  %p3137_p5 = scmp.lt.u32.totalorder %s3130_s16, %s3777_s3 }
  0x4c   : > { %p3133_p1 = pnand %p3131_p13, %p3377_p0 }
  0x4e   : > { %p3134_p6 = pneg %p3133_p1 }
  0x50   : > { %p3139_p9 = pnand %p3137_p5, %p3134_p6 }
  0x52   : > { %3142 = shalt.err (!%p3139_p9)
}
  0x53   : > { %s3143_s11 = scalar_lea.vmem %s199_s12, 8192  ;;  %p3151_p4 = scmp.lt.s32.totalorder %s199_s12, %s199_s12 }
  0x54   : > { %p3144_p10 = scmp.ne.s32.totalorder %s199_s12, %s3143_s11  ;;  %p3152_p7 = scmp.lt.s32.totalorder %s3143_s11, %s3143_s11 }
  0x56   : > { %p3146_p2 = pnand %p3144_p10, %p3377_p0  ;;  %p3153_p8 = por %p3152_p7, %p3151_p4 }
  0x58   : > { %p3147_p3 = pneg %p3146_p2 }
  0x5a   : > { %p3154_p11 = pnand %p3153_p8, %p3147_p3 }
  0x5c   : > { %3157 = shalt.err (!%p3154_p11)
}
  0x5d   : > { %s3267_s9 = smov 128   ;;  %s3268_s6 = smov 8  }
  0x5e   : > { %2982 = dma.hbm_to_vmem [thread:$0]  (!%p3361_p12), %s3777_s3, 8192, %s199_s12, [#allocation6], %s3267_s9, %s3267_s9, %s3268_s6  }
  0x5f   : > { %s3269_s14 = smov [#allocation8]   ;;  %s3158_s25 = scalar_lea.hbm %s3778_s4, 16 }
  0x60   : > { %s212_s15 = sshll.u32 %s3269_s14, 4  ;;  %p3159_p13 = scmp.ne.s32.totalorder %s3778_s4, %s3158_s25  ;;  %s213_s15 = int_to_ptr.vmem [resolvable:$true] %s212_s15 }
  0x61   : > { %p3165_p5 = scmp.lt.u32.totalorder %s3158_s25, %s3778_s4 }
  0x62   : > { %p3161_p1 = pnand %p3159_p13, %p3377_p0 }
  0x64   : > { %p3162_p6 = pneg %p3161_p1 }
  0x66   : > { %p3167_p9 = pnand %p3165_p5, %p3162_p6 }
  0x68   : > { %3170 = shalt.err (!%p3167_p9)
}
  0x69   : > { %s3171_s12 = scalar_lea.vmem %s213_s15, 16  ;;  %s3178_s9 = scalar_lea.vmem %s213_s15, 32 }
  0x6a   : > { %p3172_p10 = scmp.ne.s32.totalorder %s213_s15, %s3171_s12  ;;  %p3179_p4 = scmp.lt.s32.totalorder %s213_s15, %s213_s15 }
  0x6b   : > { %p3180_p7 = scmp.lt.s32.totalorder %s3178_s9, %s3171_s12 }
  0x6c   : > { %p3174_p2 = pnand %p3172_p10, %p3377_p0 }
  0x6d   : > { %p3181_p8 = por %p3180_p7, %p3179_p4 }
  0x6e   : > { %p3175_p3 = pneg %p3174_p2 }
  0x70   : > { %p3182_p11 = pnand %p3181_p8, %p3175_p3 }
  0x72   : > { %3185 = shalt.err (!%p3182_p11)
}
  0x73   : > { %2985 = dma.hbm_to_vmem [thread:$0]  (!%p3361_p12), %s3778_s4, 16, %s213_s15, [#allocation9]  }
  0x74   : > { %p3790_p13 = scmp.ne.s32.totalorder %s3786_s30, 0 }
  0x75   : > { %p3791_p1 = scmp.eq.s32.totalorder (!%p3790_p13), %s3325_s22, 0 }
  0x76   : > { %235 = sbr.rel (%p3790_p13) target bundleno = 1158 (0x486), region = 40 }
  0x7d   : > { %3231 = dma.done.wait (%p3791_p1), [#allocation3], 50176   ;;  %p3792_p0 = pmov %p3791_p1 }
  0x7f   : > { %3233 = vsyncadd (%p3792_p0), [#allocation3], 4294917120  ;;  %p3793_p6 = pmov %p3792_p0 }
  0x80   : > { %p3794_p5 = pmov %p3792_p0 }
  0x81   : > { %3235 = dma.done.wait (%p3793_p6), [#allocation6], 8256  }
  0x82   : > { %3237 = vsyncadd (%p3794_p5), [#allocation6], 4294959040  ;;  %p3795_p9 = pmov %p3792_p0 }
  0x83   : > { %p3796_p12 = pmov %p3792_p0 }
  0x84   : > { %3239 = dma.done.wait (%p3795_p9), [#allocation9], 16  }
  0x85   : > { %3241 = vsyncadd (%p3796_p12), [#allocation9], 4294967280  ;;  %v341_v0 = vld [vmem:[#allocation2 + $0x8] sm:$0xff]  ;;  %v343_v2 = vld [vmem:[#allocation2 + $0x18] sm:$0xff]  ;;  %s2233_s1 = sshll.u32 %s3325_s22, 3  ;;  %vm754_vm0 = vcmask 130048  }
  0x86   : > { %v345_v1 = vld [vmem:[#allocation2 + $0x28] sm:$0xff]  ;;  %v347_v4 = vld [vmem:[#allocation2 + $0x38] sm:$0xff]  ;;  %v340_v5 = vld [vmem:[#allocation2] sm:$0xff]  ;;  %p3470_p10 = scmp.lt.s32.totalorder %s2233_s1, 15  ;;  %s273_s15 = sand.u32 1, %s3252_s19  }
  0x87   : > { %v2370_v3 = vpack.c.bf16 %v345_v1, %v341_v0  ;;  %v344_v6 = vld [vmem:[#allocation2 + $0x20] sm:$0xff]  ;;  %v2566_v7 = vpack.c.bf16 %v347_v4, %v343_v2  ;;  %v342_v9 = vld [vmem:[#allocation2 + $0x10] sm:$0xff]  ;;  %v349_v11 = vld [vmem:[#allocation2 + $0x48] sm:$0xff]  ;;  %s2232_s16 = sshll.u32 %s273_s15, 6  ;;  %s2257_s25 = sshll.u32 %s3325_s22, 10 }
  0x88   : > { %v2372_v8 = vpack.c.bf16 %v344_v6, %v340_v5  ;;  %v346_v10 = vld [vmem:[#allocation2 + $0x30] sm:$0xff]  ;;  %v353_v13 = vld [vmem:[#allocation2 + $0x68] sm:$0xff]  ;;  %v351_v14 = vld [vmem:[#allocation2 + $0x58] sm:$0xff]  ;;  %s3805_s1 = smov (!%p3470_p10, %s2233_s1), 15  ;;  %s3698_s17 = scalar_lea.vmem [#allocation10], %s2232_s16 }
  0x89   : > { %2371 = vmatprep.subr.bf16.mxu0 %v2370_v3  ;;  %v2568_v12 = vpack.c.bf16 %v346_v10, %v342_v9  ;;  %v355_v15 = vld [vmem:[#allocation2 + $0x78] sm:$0xff]  ;;  %2567 = vmatprep.subr.bf16.mxu1 %v2566_v7  ;;  %v2374_v16 = vpack.c.bf16 %v353_v13, %v349_v11  ;;  %v348_v18 = vld [vmem:[#allocation2 + $0x40] sm:$0xff]  ;;  %v350_v20 = vld [vmem:[#allocation2 + $0x50] sm:$0xff]  ;;  %s2954_s10 = smul.u32 56, %s3805_s1  ;;  %s2117_s26 = sshll.u32 %s3698_s17, 4  ;;  %s3727_s26 = int_to_ptr.vmem [resolvable:$true] %s2117_s26 }
  0x8a   : > { %2373 = vmatpush1.bf16.msra.mxu0 %v2372_v8  ;;  %v2570_v17 = vpack.c.bf16 %v355_v15, %v351_v14  ;;  %v352_v19 = vld [vmem:[#allocation2 + $0x60] sm:$0xff]  ;;  %v354_v22 = vld [vmem:[#allocation2 + $0x70] sm:$0xff]  ;;  %v357_v23 = vld [vmem:[#allocation2 + $0x88] sm:$0xff]  ;;  %s3725_s12 = scalar_lea.hbm %s3779_s5, %s2257_s25  ;;  %s3733_s9 = scalar_lea.sflag [#allocation4], %s273_s15 }
  0x8b   : > { %2569 = vmatpush1.bf16.msra.mxu1 %v2568_v12  ;;  %v2376_v21 = vpack.c.bf16 %v352_v19, %v348_v18  ;;  %v361_v24 = vld [vmem:[#allocation2 + $0xa8] sm:$0xff]  ;;  %2375 = vmatprep.subr.bf16.mxu0 %v2374_v16  ;;  %v2572_v25 = vpack.c.bf16 %v354_v22, %v350_v20  ;;  %v359_v27 = vld [vmem:[#allocation2 + $0x98] sm:$0xff]  ;;  %v356_v29 = vld [vmem:[#allocation2 + $0x80] sm:$0xff]  ;;  %s3484_s14 = scalar_lea.vmem %s3774_s0, %s2954_s10  ;;  %s3186_s22 = scalar_lea.vmem %s3727_s26, 1024 }
  0x8c   : > { %2571 = vmatprep.subr.bf16.mxu1 %v2570_v17  ;;  %v2378_v26 = vpack.c.bf16 %v361_v24, %v357_v23  ;;  %v363_v28 = vld [vmem:[#allocation2 + $0xb8] sm:$0xff]  ;;  %v360_v31 = vld [vmem:[#allocation2 + $0xa0] sm:$0xff]  ;;  %v358_v32 = vld [vmem:[#allocation2 + $0x90] sm:$0xff]  ;;  %p3187_p2 = scmp.ne.s32.totalorder %s3727_s26, %s3186_s22  ;;  %p3798_p3 = scmp.ne.s32.totalorder %s3784_s28, 0 }
  0x8d   : > { %v2574_v30 = vpack.c.bf16 %v363_v28, %v359_v27  ;;  %v362_v33 = vld [vmem:[#allocation2 + $0xb0] sm:$0xff]  ;;  %v2380_v34 = vpack.c.bf16 %v360_v31, %v356_v29  ;;  %v365_v35 = vld [vmem:[#allocation2 + $0xc8] sm:$0xff]  ;;  %v367_v37 = vld [vmem:[#allocation2 + $0xd8] sm:$0xff]  ;;  %s3271_s6 = smov [#allocation10]  }
  0x8e   : > { %2377 = vmatpush1.bf16.msra.mxu0 %v2376_v21  ;;  %v369_v36 = vld [vmem:[#allocation2 + $0xe8] sm:$0xff]  ;;  %v2576_v38 = vpack.c.bf16 %v362_v33, %v358_v32  ;;  %v371_v40 = vld [vmem:[#allocation2 + $0xf8] sm:$0xff]  ;;  %v364_v41 = vld [vmem:[#allocation2 + $0xc0] sm:$0xff]  ;;  %p3188_p4 = pnand %p3187_p2, %p3798_p3  ;;  %s3190_s8 = sshll.u32 %s3271_s6, 4  ;;  %s3191_s8 = int_to_ptr.vmem [resolvable:$false] %s3190_s8 }
  0x8f   : > { %2573 = vmatpush1.bf16.msra.mxu1 %v2572_v25  ;;  %2379 = vmatprep.subr.bf16.mxu0 %v2378_v26  ;;  %v2382_v39 = vpack.c.bf16 %v369_v36, %v365_v35  ;;  %v368_v42 = vld [vmem:[#allocation2 + $0xe0] sm:$0xff]  ;;  %v2578_v43 = vpack.c.bf16 %v371_v40, %v367_v37  ;;  %v366_v44 = vld [vmem:[#allocation2 + $0xd0] sm:$0xff]  ;;  %v373_v46 = vld [vmem:[#allocation2 + $0x108] sm:$0xff]  ;;  %s3192_s1 = scalar_lea.vmem %s3191_s8, 2048  ;;  %p3193_p8 = scmp.lt.s32.totalorder %s3727_s26, %s3191_s8 }
  0x90   : > { %2575 = vmatprep.subr.bf16.mxu1 %v2574_v30  ;;  %v370_v45 = vld [vmem:[#allocation2 + $0xf0] sm:$0xff]  ;;  %v377_v47 = vld [vmem:[#allocation2 + $0x128] sm:$0xff]  ;;  %v375_v48 = vld [vmem:[#allocation2 + $0x118] sm:$0xff]  ;;  %v2384_v50 = vpack.c.bf16 %v368_v42, %v364_v41  ;;  %p3189_p7 = pneg %p3188_p4  ;;  %p3194_p11 = scmp.lt.s32.totalorder %s3192_s1, %s3186_s22 }
  0x91   : > { %v379_v49 = vld [vmem:[#allocation2 + $0x138] sm:$0xff]  ;;  %v2580_v51 = vpack.c.bf16 %v370_v45, %v366_v44  ;;  %v2386_v52 = vpack.c.bf16 %v377_v47, %v373_v46  ;;  %v372_v53 = vld [vmem:[#allocation2 + $0x100] sm:$0xff]  ;;  %v374_v55 = vld [vmem:[#allocation2 + $0x110] sm:$0xff] }
  0x92   : > { %2381 = vmatpush1.bf16.msra.mxu0 %v2380_v34  ;;  %v376_v54 = vld [vmem:[#allocation2 + $0x120] sm:$0xff]  ;;  %v2582_v56 = vpack.c.bf16 %v379_v49, %v375_v48  ;;  %v378_v57 = vld [vmem:[#allocation2 + $0x130] sm:$0xff]  ;;  %v381_v58 = vld [vmem:[#allocation2 + $0x148] sm:$0xff]  ;;  %p3195_p13 = por %p3194_p11, %p3193_p8 }
  0x93   : > { %2577 = vmatpush1.bf16.msra.mxu1 %v2576_v38  ;;  %2383 = vmatprep.subr.bf16.mxu0 %v2382_v39  ;;  %v385_v59 = vld [vmem:[#allocation2 + $0x168] sm:$0xff]  ;;  %v383_v60 = vld [vmem:[#allocation2 + $0x158] sm:$0xff]  ;;  %v2388_v62 = vpack.c.bf16 %v376_v54, %v372_v53  ;;  %v2584_v63 = vpack.c.bf16 %v378_v57, %v374_v55  ;;  %v380_v1 = vld [vmem:[#allocation2 + $0x140] sm:$0xff] }
  0x94   : > { %2579 = vmatprep.subr.bf16.mxu1 %v2578_v43  ;;  %v387_v61 = vld [vmem:[#allocation2 + $0x178] sm:$0xff]  ;;  %v2390_v0 = vpack.c.bf16 %v385_v59, %v381_v58  ;;  %v384_v2 = vld [vmem:[#allocation2 + $0x160] sm:$0xff]  ;;  %v382_v3 = vld [vmem:[#allocation2 + $0x150] sm:$0xff]  ;;  %p3196_p1 = pnand %p3195_p13, %p3189_p7 }
  0x95   : > { %v2586_v4 = vpack.c.bf16 %v387_v61, %v383_v60  ;;  %v386_v5 = vld [vmem:[#allocation2 + $0x170] sm:$0xff]  ;;  %v389_v6 = vld [vmem:[#allocation2 + $0x188] sm:$0xff]  ;;  %v391_v8 = vld [vmem:[#allocation2 + $0x198] sm:$0xff]  ;;  %v2392_v10 = vpack.c.bf16 %v384_v2, %v380_v1 }
  0x96   : > { %2385 = vmatpush1.bf16.msra.mxu0 %v2384_v50  ;;  %v393_v7 = vld [vmem:[#allocation2 + $0x1a8] sm:$0xff]  ;;  %v395_v9 = vld [vmem:[#allocation2 + $0x1b8] sm:$0xff]  ;;  %v2588_v11 = vpack.c.bf16 %v386_v5, %v382_v3  ;;  %v388_v13 = vld [vmem:[#allocation2 + $0x180] sm:$0xff] }
  0x97   : > { %2581 = vmatpush1.bf16.msra.mxu1 %v2580_v51  ;;  %2387 = vmatprep.subr.bf16.mxu0 %v2386_v52  ;;  %v2394_v12 = vpack.c.bf16 %v393_v7, %v389_v6  ;;  %v392_v14 = vld [vmem:[#allocation2 + $0x1a0] sm:$0xff]  ;;  %v390_v15 = vld [vmem:[#allocation2 + $0x190] sm:$0xff]  ;;  %v2590_v16 = vpack.c.bf16 %v395_v9, %v391_v8  ;;  %v397_v18 = vld [vmem:[#allocation2 + $0x1c8] sm:$0xff] }
  0x98   : > { %2583 = vmatprep.subr.bf16.mxu1 %v2582_v56  ;;  %v394_v17 = vld [vmem:[#allocation2 + $0x1b0] sm:$0xff]  ;;  %v401_v19 = vld [vmem:[#allocation2 + $0x1e8] sm:$0xff]  ;;  %v399_v20 = vld [vmem:[#allocation2 + $0x1d8] sm:$0xff]  ;;  %v2396_v22 = vpack.c.bf16 %v392_v14, %v388_v13 }
  0x99   : > { %v403_v21 = vld [vmem:[#allocation2 + $0x1f8] sm:$0xff]  ;;  %v2592_v23 = vpack.c.bf16 %v394_v17, %v390_v15  ;;  %v2398_v24 = vpack.c.bf16 %v401_v19, %v397_v18  ;;  %v396_v25 = vld [vmem:[#allocation2 + $0x1c0] sm:$0xff]  ;;  %v398_v27 = vld [vmem:[#allocation2 + $0x1d0] sm:$0xff] }
  0x9a   : > { %2389 = vmatpush1.bf16.msra.mxu0 %v2388_v62  ;;  %v400_v26 = vld [vmem:[#allocation2 + $0x1e0] sm:$0xff]  ;;  %v2594_v28 = vpack.c.bf16 %v403_v21, %v399_v20  ;;  %v402_v29 = vld [vmem:[#allocation2 + $0x1f0] sm:$0xff]  ;;  %v405_v30 = vld [vmem:[#allocation2 + $0x208] sm:$0xff] }
  0x9b   : > { %2585 = vmatpush1.bf16.msra.mxu1 %v2584_v63  ;;  %2391 = vmatprep.subr.bf16.mxu0 %v2390_v0  ;;  %v409_v31 = vld [vmem:[#allocation2 + $0x228] sm:$0xff]  ;;  %v407_v32 = vld [vmem:[#allocation2 + $0x218] sm:$0xff]  ;;  %v2400_v34 = vpack.c.bf16 %v400_v26, %v396_v25  ;;  %v2596_v35 = vpack.c.bf16 %v402_v29, %v398_v27  ;;  %v404_v37 = vld [vmem:[#allocation2 + $0x200] sm:$0xff] }
  0x9c   : > { %2587 = vmatprep.subr.bf16.mxu1 %v2586_v4  ;;  %v411_v33 = vld [vmem:[#allocation2 + $0x238] sm:$0xff]  ;;  %v2402_v36 = vpack.c.bf16 %v409_v31, %v405_v30  ;;  %v408_v38 = vld [vmem:[#allocation2 + $0x220] sm:$0xff]  ;;  %v406_v39 = vld [vmem:[#allocation2 + $0x210] sm:$0xff] }
  0x9d   : > { %v2598_v40 = vpack.c.bf16 %v411_v33, %v407_v32  ;;  %v410_v41 = vld [vmem:[#allocation2 + $0x230] sm:$0xff]  ;;  %v413_v42 = vld [vmem:[#allocation2 + $0x248] sm:$0xff]  ;;  %v415_v44 = vld [vmem:[#allocation2 + $0x258] sm:$0xff]  ;;  %v2404_v46 = vpack.c.bf16 %v408_v38, %v404_v37 }
  0x9e   : > { %2393 = vmatpush1.bf16.msra.mxu0 %v2392_v10  ;;  %v417_v43 = vld [vmem:[#allocation2 + $0x268] sm:$0xff]  ;;  %v419_v45 = vld [vmem:[#allocation2 + $0x278] sm:$0xff]  ;;  %v2600_v47 = vpack.c.bf16 %v410_v41, %v406_v39  ;;  %v412_v49 = vld [vmem:[#allocation2 + $0x240] sm:$0xff] }
  0x9f   : > { %2589 = vmatpush1.bf16.msra.mxu1 %v2588_v11  ;;  %2395 = vmatprep.subr.bf16.mxu0 %v2394_v12  ;;  %v2406_v48 = vpack.c.bf16 %v417_v43, %v413_v42  ;;  %v416_v50 = vld [vmem:[#allocation2 + $0x260] sm:$0xff]  ;;  %v414_v51 = vld [vmem:[#allocation2 + $0x250] sm:$0xff]  ;;  %v2602_v52 = vpack.c.bf16 %v419_v45, %v415_v44  ;;  %v421_v54 = vld [vmem:[#allocation2 + $0x288] sm:$0xff] }
  0xa0   : > { %2591 = vmatprep.subr.bf16.mxu1 %v2590_v16  ;;  %v418_v53 = vld [vmem:[#allocation2 + $0x270] sm:$0xff]  ;;  %v425_v55 = vld [vmem:[#allocation2 + $0x2a8] sm:$0xff]  ;;  %v423_v56 = vld [vmem:[#allocation2 + $0x298] sm:$0xff]  ;;  %v2408_v58 = vpack.c.bf16 %v416_v50, %v412_v49 }
  0xa1   : > { %v427_v57 = vld [vmem:[#allocation2 + $0x2b8] sm:$0xff]  ;;  %v2604_v59 = vpack.c.bf16 %v418_v53, %v414_v51  ;;  %v2410_v60 = vpack.c.bf16 %v425_v55, %v421_v54  ;;  %v420_v61 = vld [vmem:[#allocation2 + $0x280] sm:$0xff]  ;;  %v422_v63 = vld [vmem:[#allocation2 + $0x290] sm:$0xff] }
  0xa2   : > { %2397 = vmatpush1.bf16.msra.mxu0 %v2396_v22  ;;  %v424_v62 = vld [vmem:[#allocation2 + $0x2a0] sm:$0xff]  ;;  %v2606_v0 = vpack.c.bf16 %v427_v57, %v423_v56  ;;  %v426_v1 = vld [vmem:[#allocation2 + $0x2b0] sm:$0xff]  ;;  %v429_v2 = vld [vmem:[#allocation2 + $0x2c8] sm:$0xff] }
  0xa3   : > { %2593 = vmatpush1.bf16.msra.mxu1 %v2592_v23  ;;  %2399 = vmatprep.subr.bf16.mxu0 %v2398_v24  ;;  %v433_v3 = vld [vmem:[#allocation2 + $0x2e8] sm:$0xff]  ;;  %v431_v4 = vld [vmem:[#allocation2 + $0x2d8] sm:$0xff]  ;;  %v2412_v6 = vpack.c.bf16 %v424_v62, %v420_v61  ;;  %v428_v7 = vld [vmem:[#allocation2 + $0x2c0] sm:$0xff]  ;;  %v2608_v8 = vpack.c.bf16 %v426_v1, %v422_v63 }
  0xa4   : > { %2595 = vmatprep.subr.bf16.mxu1 %v2594_v28  ;;  %v435_v5 = vld [vmem:[#allocation2 + $0x2f8] sm:$0xff]  ;;  %v2414_v9 = vpack.c.bf16 %v433_v3, %v429_v2  ;;  %v432_v10 = vld [vmem:[#allocation2 + $0x2e0] sm:$0xff]  ;;  %v430_v11 = vld [vmem:[#allocation2 + $0x2d0] sm:$0xff] }
  0xa5   : > { %v434_v12 = vld [vmem:[#allocation2 + $0x2f0] sm:$0xff]  ;;  %v2610_v13 = vpack.c.bf16 %v435_v5, %v431_v4  ;;  %v437_v14 = vld [vmem:[#allocation2 + $0x308] sm:$0xff]  ;;  %v439_v17 = vld [vmem:[#allocation2 + $0x318] sm:$0xff]  ;;  %v2416_v19 = vpack.c.bf16 %v432_v10, %v428_v7 }
  0xa6   : > { %2401 = vmatpush1.bf16.msra.mxu0 %v2400_v34  ;;  %v441_v15 = vld [vmem:[#allocation2 + $0x328] sm:$0xff]  ;;  %v443_v18 = vld [vmem:[#allocation2 + $0x338] sm:$0xff]  ;;  %v2612_v20 = vpack.c.bf16 %v434_v12, %v430_v11  ;;  %v436_v22 = vld [vmem:[#allocation2 + $0x300] sm:$0xff] }
  0xa7   : > { %2597 = vmatpush1.bf16.msra.mxu1 %v2596_v35  ;;  %2403 = vmatprep.subr.bf16.mxu0 %v2402_v36  ;;  %v285_v16 = vld [vmem:[%s3484_s14 + $0x8] sm:$0xff]  ;;  %v2418_v21 = vpack.c.bf16 %v441_v15, %v437_v14  ;;  %v440_v23 = vld [vmem:[#allocation2 + $0x320] sm:$0xff]  ;;  %v438_v24 = vld [vmem:[#allocation2 + $0x310] sm:$0xff]  ;;  %v2614_v25 = vpack.c.bf16 %v443_v18, %v439_v17 }
  0xa8   : > { %2599 = vmatprep.subr.bf16.mxu1 %v2598_v40  ;;  %843 = vmatprep.mubr.f32.mxu0 %v285_v16  ;;  %v442_v26 = vld [vmem:[#allocation2 + $0x330] sm:$0xff]  ;;  %v445_v27 = vld [vmem:[#allocation2 + $0x348] sm:$0xff]  ;;  %v447_v29 = vld [vmem:[#allocation2 + $0x358] sm:$0xff]  ;;  %v2420_v31 = vpack.c.bf16 %v440_v23, %v436_v22 }
  0xa9   : > { %1295 = vmatprep.mubr.f32.mxu1 %v285_v16  ;;  %v449_v28 = vld [vmem:[#allocation2 + $0x368] sm:$0xff]  ;;  %v451_v30 = vld [vmem:[#allocation2 + $0x378] sm:$0xff]  ;;  %v2616_v32 = vpack.c.bf16 %v442_v26, %v438_v24  ;;  %v444_v34 = vld [vmem:[#allocation2 + $0x340] sm:$0xff] }
  0xaa   : > { %2405 = vmatpush1.bf16.msra.mxu0 %v2404_v46  ;;  %v2422_v33 = vpack.c.bf16 %v449_v28, %v445_v27  ;;  %v448_v35 = vld [vmem:[#allocation2 + $0x360] sm:$0xff]  ;;  %v446_v36 = vld [vmem:[#allocation2 + $0x350] sm:$0xff]  ;;  %v2618_v37 = vpack.c.bf16 %v451_v30, %v447_v29  ;;  %v453_v39 = vld [vmem:[#allocation2 + $0x388] sm:$0xff] }
  0xab   : > { %2601 = vmatpush1.bf16.msra.mxu1 %v2600_v47  ;;  %2407 = vmatprep.subr.bf16.mxu0 %v2406_v48  ;;  %v450_v38 = vld [vmem:[#allocation2 + $0x370] sm:$0xff]  ;;  %v457_v40 = vld [vmem:[#allocation2 + $0x3a8] sm:$0xff]  ;;  %v455_v41 = vld [vmem:[#allocation2 + $0x398] sm:$0xff]  ;;  %v2424_v43 = vpack.c.bf16 %v448_v35, %v444_v34 }
  0xac   : > { %2603 = vmatprep.subr.bf16.mxu1 %v2602_v52  ;;  %v459_v42 = vld [vmem:[#allocation2 + $0x3b8] sm:$0xff]  ;;  %v2620_v44 = vpack.c.bf16 %v450_v38, %v446_v36  ;;  %v2426_v45 = vpack.c.bf16 %v457_v40, %v453_v39  ;;  %v452_v46 = vld [vmem:[#allocation2 + $0x380] sm:$0xff]  ;;  %v454_v48 = vld [vmem:[#allocation2 + $0x390] sm:$0xff] }
  0xad   : > { %v456_v47 = vld [vmem:[#allocation2 + $0x3a0] sm:$0xff]  ;;  %v2622_v49 = vpack.c.bf16 %v459_v42, %v455_v41  ;;  %v458_v50 = vld [vmem:[#allocation2 + $0x3b0] sm:$0xff]  ;;  %v461_v51 = vld [vmem:[#allocation2 + $0x3c8] sm:$0xff] }
  0xae   : > { %2409 = vmatpush1.bf16.msra.mxu0 %v2408_v58  ;;  %v465_v52 = vld [vmem:[#allocation2 + $0x3e8] sm:$0xff]  ;;  %v463_v53 = vld [vmem:[#allocation2 + $0x3d8] sm:$0xff]  ;;  %v2428_v55 = vpack.c.bf16 %v456_v47, %v452_v46  ;;  %v2624_v56 = vpack.c.bf16 %v458_v50, %v454_v48  ;;  %v460_v58 = vld [vmem:[#allocation2 + $0x3c0] sm:$0xff] }
  0xaf   : > { %2605 = vmatpush1.bf16.msra.mxu1 %v2604_v59  ;;  %2411 = vmatprep.subr.bf16.mxu0 %v2410_v60  ;;  %v467_v54 = vld [vmem:[#allocation2 + $0x3f8] sm:$0xff]  ;;  %v2430_v57 = vpack.c.bf16 %v465_v52, %v461_v51  ;;  %v464_v59 = vld [vmem:[#allocation2 + $0x3e0] sm:$0xff]  ;;  %v462_v60 = vld [vmem:[#allocation2 + $0x3d0] sm:$0xff] }
  0xb0   : > { %2607 = vmatprep.subr.bf16.mxu1 %v2606_v0  ;;  %v2626_v61 = vpack.c.bf16 %v467_v54, %v463_v53  ;;  %v466_v62 = vld [vmem:[#allocation2 + $0x3f0] sm:$0xff]  ;;  %v469_v63 = vld [vmem:[#allocation2 + $0x408] sm:$0xff]  ;;  %v471_v1 = vld [vmem:[#allocation2 + $0x418] sm:$0xff]  ;;  %v2432_v3 = vpack.c.bf16 %v464_v59, %v460_v58 }
  0xb1   : > { %v473_v0 = vld [vmem:[#allocation2 + $0x428] sm:$0xff]  ;;  %v475_v2 = vld [vmem:[#allocation2 + $0x438] sm:$0xff]  ;;  %v2628_v4 = vpack.c.bf16 %v466_v62, %v462_v60  ;;  %v472_v7 = vld [vmem:[#allocation2 + $0x420] sm:$0xff] }
  0xb2   : > { %2413 = vmatpush1.bf16.msra.mxu0 %v2412_v6  ;;  %v2434_v5 = vpack.c.bf16 %v473_v0, %v469_v63  ;;  %v468_v6 = vld [vmem:[#allocation2 + $0x400] sm:$0xff]  ;;  %v474_v10 = vld [vmem:[#allocation2 + $0x430] sm:$0xff]  ;;  %v477_v11 = vld [vmem:[#allocation2 + $0x448] sm:$0xff] }
  0xb3   : > { %2609 = vmatpush1.bf16.msra.mxu1 %v2608_v8  ;;  %2415 = vmatprep.subr.bf16.mxu0 %v2414_v9  ;;  %v470_v8 = vld [vmem:[#allocation2 + $0x410] sm:$0xff]  ;;  %v2630_v9 = vpack.c.bf16 %v475_v2, %v471_v1  ;;  %v481_v12 = vld [vmem:[#allocation2 + $0x468] sm:$0xff]  ;;  %v483_v14 = vld [vmem:[#allocation2 + $0x478] sm:$0xff]  ;;  %v2436_v16 = vpack.c.bf16 %v472_v7, %v468_v6 }
  0xb4   : > { %2611 = vmatprep.subr.bf16.mxu1 %v2610_v13  ;;  %v479_v13 = vld [vmem:[#allocation2 + $0x458] sm:$0xff]  ;;  %v284_v15 = vld [vmem:[%s3484_s14] sm:$0xff]  ;;  %v2632_v17 = vpack.c.bf16 %v474_v10, %v470_v8  ;;  %v2438_v18 = vpack.c.bf16 %v481_v12, %v477_v11  ;;  %v482_v23 = vld [vmem:[#allocation2 + $0x470] sm:$0xff] }
  0xb5   : > { %v2634_v22 = vpack.c.bf16 %v483_v14, %v479_v13  ;;  %v485_v24 = vld [vmem:[#allocation2 + $0x488] sm:$0xff]  ;;  %v487_v26 = vld [vmem:[#allocation2 + $0x498] sm:$0xff]  ;;  %v292_v28 = vld [vmem:[%s3484_s14 + $0x40] sm:$0xff] }
  0xb6   : > { %2417 = vmatpush1.bf16.msra.mxu0 %v2416_v19  ;;  %v476_v19 = vld [vmem:[#allocation2 + $0x440] sm:$0xff]  ;;  %v491_v27 = vld [vmem:[#allocation2 + $0x4b8] sm:$0xff]  ;;  %v486_v34 = vld [vmem:[#allocation2 + $0x490] sm:$0xff] }
  0xb7   : > { %2613 = vmatpush1.bf16.msra.mxu1 %v2612_v20  ;;  %2419 = vmatprep.subr.bf16.mxu0 %v2418_v21  ;;  %v480_v20 = vld [vmem:[#allocation2 + $0x460] sm:$0xff]  ;;  %v478_v21 = vld [vmem:[#allocation2 + $0x450] sm:$0xff]  ;;  %v291_v35 = vld [vmem:[%s3484_s14 + $0x38] sm:$0xff]  ;;  %v2638_v36 = vpack.c.bf16 %v491_v27, %v487_v26 }
  0xb8   : > { %2615 = vmatprep.subr.bf16.mxu1 %v2614_v25  ;;  %v489_v25 = vld [vmem:[#allocation2 + $0x4a8] sm:$0xff]  ;;  %v2440_v29 = vpack.c.bf16 %v480_v20, %v476_v19  ;;  %v484_v30 = vld [vmem:[#allocation2 + $0x480] sm:$0xff]  ;;  %v495_v40 = vld [vmem:[#allocation2 + $0x4d8] sm:$0xff] }
  0xb9   : > { %v493_v38 = vld [vmem:[#allocation2 + $0x4c8] sm:$0xff]  ;;  %v499_v41 = vld [vmem:[#allocation2 + $0x4f8] sm:$0xff]  ;;  %v492_v47 = vld [vmem:[#allocation2 + $0x4c0] sm:$0xff] }
  0xba   : > { %2421 = vmatpush1.bf16.msra.mxu0 %v2420_v31  ;;  %v2636_v31 = vpack.c.bf16 %v482_v23, %v478_v21  ;;  %v497_v39 = vld [vmem:[#allocation2 + $0x4e8] sm:$0xff]  ;;  %v299_v42 = vld [vmem:[%s3484_s14 + $0x78] sm:$0xff]  ;;  %v496_v48 = vld [vmem:[#allocation2 + $0x4e0] sm:$0xff]  ;;  %v2642_v50 = vpack.c.bf16 %v499_v41, %v495_v40 }
  0xbb   : > { %2617 = vmatpush1.bf16.msra.mxu1 %v2616_v32  ;;  %2423 = vmatprep.subr.bf16.mxu0 %v2422_v33  ;;  %v2442_v32 = vpack.c.bf16 %v489_v25, %v485_v24  ;;  %v488_v33 = vld [vmem:[#allocation2 + $0x4a0] sm:$0xff]  ;;  %v2446_v46 = vpack.c.bf16 %v497_v39, %v493_v38  ;;  %v498_v51 = vld [vmem:[#allocation2 + $0x4f0] sm:$0xff]  ;;  %v501_v52 = vld [vmem:[#allocation2 + $0x508] sm:$0xff] }
  0xbc   : > { %2619 = vmatprep.subr.bf16.mxu1 %v2618_v37  ;;  %v490_v37 = vld [vmem:[#allocation2 + $0x4b0] sm:$0xff]  ;;  %v505_v53 = vld [vmem:[#allocation2 + $0x528] sm:$0xff]  ;;  %v503_v54 = vld [vmem:[#allocation2 + $0x518] sm:$0xff] }
  0xbd   : > { %v305_v58 = vld [vmem:[%s3484_s14 + $0xa8] sm:$0xff]  ;;  %v2450_v60 = vpack.c.bf16 %v505_v53, %v501_v52  ;;  %v504_v62 = vld [vmem:[#allocation2 + $0x520] sm:$0xff]  ;;  %v502_v63 = vld [vmem:[#allocation2 + $0x510] sm:$0xff] }
  0xbe   : > { %2425 = vmatpush1.bf16.msra.mxu0 %v2424_v43  ;;  %v2444_v43 = vpack.c.bf16 %v488_v33, %v484_v30  ;;  %v506_v1 = vld [vmem:[#allocation2 + $0x530] sm:$0xff]  ;;  %v509_v2 = vld [vmem:[#allocation2 + $0x548] sm:$0xff]  ;;  %v312_v8 = vld [vmem:[%s3484_s14 + $0xe0] sm:$0xff] }
  0xbf   : > { %2621 = vmatpush1.bf16.msra.mxu1 %v2620_v44  ;;  %2427 = vmatprep.subr.bf16.mxu0 %v2426_v45  ;;  %v298_v44 = vld [vmem:[%s3484_s14 + $0x70] sm:$0xff]  ;;  %v2640_v45 = vpack.c.bf16 %v490_v37, %v486_v34  ;;  %v313_v6 = vld [vmem:[%s3484_s14 + $0xe8] sm:$0xff]  ;;  %v508_v11 = vld [vmem:[#allocation2 + $0x540] sm:$0xff] }
  0xc0   : > { %2623 = vmatprep.subr.bf16.mxu1 %v2622_v49  ;;  %v494_v49 = vld [vmem:[#allocation2 + $0x4d0] sm:$0xff]  ;;  %v512_v12 = vld [vmem:[#allocation2 + $0x560] sm:$0xff]  ;;  %v523_v19 = vld [vmem:[#allocation2 + $0x5b8] sm:$0xff] }
  0xc1   : > { %v2644_v59 = vpack.c.bf16 %v498_v51, %v494_v49  ;;  %v510_v13 = vld [vmem:[#allocation2 + $0x550] sm:$0xff]  ;;  %v320_v20 = vld [vmem:[%s3484_s14 + $0x120] sm:$0xff]  ;;  %v2456_v21 = vpack.c.bf16 %v512_v12, %v508_v11  ;;  %v525_v30 = vld [vmem:[#allocation2 + $0x5c8] sm:$0xff] }
  0xc2   : > { %2429 = vmatpush1.bf16.msra.mxu0 %v2428_v55  ;;  %v507_v55 = vld [vmem:[#allocation2 + $0x538] sm:$0xff]  ;;  %v516_v25 = vld [vmem:[#allocation2 + $0x580] sm:$0xff]  ;;  %v518_v27 = vld [vmem:[#allocation2 + $0x590] sm:$0xff] }
  0xc3   : > { %2625 = vmatpush1.bf16.msra.mxu1 %v2624_v56  ;;  %2431 = vmatprep.subr.bf16.mxu0 %v2430_v57  ;;  %v306_v56 = vld [vmem:[%s3484_s14 + $0xb0] sm:$0xff]  ;;  %v2448_v57 = vpack.c.bf16 %v496_v48, %v492_v47  ;;  %v2646_v0 = vpack.c.bf16 %v507_v55, %v503_v54  ;;  %v520_v26 = vld [vmem:[#allocation2 + $0x5a0] sm:$0xff]  ;;  %v531_v33 = vld [vmem:[#allocation2 + $0x5f8] sm:$0xff] }
  0xc4   : > { %2627 = vmatprep.subr.bf16.mxu1 %v2626_v61  ;;  %v500_v61 = vld [vmem:[#allocation2 + $0x500] sm:$0xff]  ;;  %v327_v34 = vld [vmem:[%s3484_s14 + $0x158] sm:$0xff]  ;;  %v526_v41 = vld [vmem:[#allocation2 + $0x5d0] sm:$0xff] }
  0xc5   : > { %v2452_v7 = vpack.c.bf16 %v504_v62, %v500_v61  ;;  %v524_v39 = vld [vmem:[#allocation2 + $0x5c0] sm:$0xff]  ;;  %v539_v47 = vld [vmem:[#allocation2 + $0x638] sm:$0xff]  ;;  %v334_v48 = vld [vmem:[%s3484_s14 + $0x190] sm:$0xff] }
  0xc6   : > { %2433 = vmatpush1.bf16.msra.mxu0 %v2432_v3  ;;  %v513_v3 = vld [vmem:[#allocation2 + $0x568] sm:$0xff]  ;;  %v528_v40 = vld [vmem:[#allocation2 + $0x5e0] sm:$0xff]  ;;  %v534_v55 = vld [vmem:[#allocation2 + $0x610] sm:$0xff] }
  0xc7   : > { %2629 = vmatpush1.bf16.msra.mxu1 %v2628_v4  ;;  %2435 = vmatprep.subr.bf16.mxu0 %v2434_v5  ;;  %v511_v4 = vld [vmem:[#allocation2 + $0x558] sm:$0xff]  ;;  %v2454_v10 = vpack.c.bf16 %v513_v3, %v509_v2  ;;  %v2464_v49 = vpack.c.bf16 %v528_v40, %v524_v39  ;;  %v532_v53 = vld [vmem:[#allocation2 + $0x600] sm:$0xff]  ;;  %v566_v40 = vld [vmem:[#allocation2 + $0x710] sm:$0xff] }
  0xc8   : > { %2631 = vmatprep.subr.bf16.mxu1 %v2630_v9  ;;  %v515_v5 = vld [vmem:[#allocation2 + $0x578] sm:$0xff]  ;;  %v2648_v9 = vpack.c.bf16 %v506_v1, %v502_v63  ;;  %v536_v54 = vld [vmem:[#allocation2 + $0x620] sm:$0xff] }
  0xc9   : > { %844 = vmatmul.mubr.f32.vlgmr.msra.gmra.mrb[0].mxu0 %v284_v15  ;;  %v2650_v14 = vpack.c.bf16 %v515_v5, %v511_v4  ;;  %v547_v61 = vld [vmem:[#allocation2 + $0x678] sm:$0xff]  ;;  %v2468_v63 = vpack.c.bf16 %v536_v54, %v532_v53  ;;  %v540_v2 = vld [vmem:[#allocation2 + $0x640] sm:$0xff]  ;;  %v542_v4 = vld [vmem:[#allocation2 + $0x650] sm:$0xff] }
  0xca   : > { %2437 = vmatpush1.bf16.msra.mxu0 %v2436_v16  ;;  %1296 = vmatmul.mubr.f32.vlgmr.msra.gmra.mrb[0].mxu1 %v284_v15  ;;  %v514_v15 = vld [vmem:[#allocation2 + $0x570] sm:$0xff]  ;;  %v517_v16 = vld [vmem:[#allocation2 + $0x588] sm:$0xff]  ;;  %v287_v62 = vld [vmem:[%s3484_s14 + $0x18] sm:$0xff] }
  0xcb   : > { %2633 = vmatpush1.bf16.msra.mxu1 %v2632_v17  ;;  %2439 = vmatprep.subr.bf16.mxu0 %v2438_v18  ;;  %v521_v17 = vld [vmem:[#allocation2 + $0x5a8] sm:$0xff]  ;;  %v519_v18 = vld [vmem:[#allocation2 + $0x598] sm:$0xff]  ;;  %v2652_v23 = vpack.c.bf16 %v514_v15, %v510_v13  ;;  %v544_v3 = vld [vmem:[#allocation2 + $0x660] sm:$0xff] }
  0xcc   : > { %2635 = vmatprep.subr.bf16.mxu1 %v2634_v22  ;;  %849 = vmatprep.mubr.f32.mxu0 %v292_v28  ;;  %v319_v22 = vld [vmem:[%s3484_s14 + $0x118] sm:$0xff]  ;;  %v2458_v24 = vpack.c.bf16 %v521_v17, %v517_v16  ;;  %v2472_v11 = vpack.c.bf16 %v544_v3, %v540_v2  ;;  %v552_v15 = vld [vmem:[#allocation2 + $0x6a0] sm:$0xff]  ;;  %v550_v16 = vld [vmem:[#allocation2 + $0x690] sm:$0xff] }
  0xcd   : > { %1301 = vmatprep.mubr.f32.mxu1 %v292_v28  ;;  %850 = vmatmul.mubr.f32.gmra.mrb[2].mxu0 %v291_v35  ;;  %v2654_v28 = vpack.c.bf16 %v523_v19, %v519_v18  ;;  %v554_v18 = vld [vmem:[#allocation2 + $0x6b0] sm:$0xff]  ;;  %v557_v19 = vld [vmem:[#allocation2 + $0x6c8] sm:$0xff]  ;;  %v568_v39 = vld [vmem:[#allocation2 + $0x720] sm:$0xff] }
  0xce   : > { %2441 = vmatpush1.bf16.msra.mxu0 %v2440_v29  ;;  %1302 = vmatmul.mubr.f32.gmra.mrb[2].mxu1 %v291_v35  ;;  %v522_v29 = vld [vmem:[#allocation2 + $0x5b0] sm:$0xff]  ;;  %v2460_v35 = vpack.c.bf16 %v520_v26, %v516_v25  ;;  %v556_v26 = vld [vmem:[#allocation2 + $0x6c0] sm:$0xff]  ;;  %v589_v3 = vld [vmem:[#allocation2 + $0x7c8] sm:$0xff] }
  0xcf   : > { %2637 = vmatpush1.bf16.msra.mxu1 %v2636_v31  ;;  %2443 = vmatprep.subr.bf16.mxu0 %v2442_v32  ;;  %v529_v31 = vld [vmem:[#allocation2 + $0x5e8] sm:$0xff]  ;;  %v527_v32 = vld [vmem:[#allocation2 + $0x5d8] sm:$0xff]  ;;  %v2656_v37 = vpack.c.bf16 %v522_v29, %v518_v27  ;;  %v560_v27 = vld [vmem:[#allocation2 + $0x6e0] sm:$0xff] }
  0xd0   : > { %2639 = vmatprep.subr.bf16.mxu1 %v2638_v36  ;;  %855 = vmatprep.mubr.f32.mxu0 %v299_v42  ;;  %v326_v36 = vld [vmem:[%s3484_s14 + $0x150] sm:$0xff]  ;;  %v2462_v38 = vpack.c.bf16 %v529_v31, %v525_v30  ;;  %v565_v31 = vld [vmem:[#allocation2 + $0x708] sm:$0xff] }
  0xd1   : > { %1307 = vmatprep.mubr.f32.mxu1 %v299_v42  ;;  %856 = vmatmul.mubr.f32.gmra.mrb[4].mxu0 %v298_v44  ;;  %v2658_v42 = vpack.c.bf16 %v531_v33, %v527_v32  ;;  %v562_v30 = vld [vmem:[#allocation2 + $0x6f0] sm:$0xff]  ;;  %v569_v32 = vld [vmem:[#allocation2 + $0x728] sm:$0xff]  ;;  %v567_v33 = vld [vmem:[#allocation2 + $0x718] sm:$0xff] }
  0xd2   : > { %2445 = vmatpush1.bf16.msra.mxu0 %v2444_v43  ;;  %1308 = vmatmul.mubr.f32.gmra.mrb[4].mxu1 %v298_v44  ;;  %v530_v43 = vld [vmem:[#allocation2 + $0x5f0] sm:$0xff]  ;;  %v533_v44 = vld [vmem:[#allocation2 + $0x608] sm:$0xff] }
  0xd3   : > { %2641 = vmatpush1.bf16.msra.mxu1 %v2640_v45  ;;  %2447 = vmatprep.subr.bf16.mxu0 %v2446_v46  ;;  %v537_v45 = vld [vmem:[#allocation2 + $0x628] sm:$0xff]  ;;  %v535_v46 = vld [vmem:[#allocation2 + $0x618] sm:$0xff]  ;;  %v2660_v51 = vpack.c.bf16 %v530_v43, %v526_v41  ;;  %v578_v54 = vld [vmem:[#allocation2 + $0x770] sm:$0xff] }
  0xd4   : > { %2643 = vmatprep.subr.bf16.mxu1 %v2642_v50  ;;  %861 = vmatprep.mubr.f32.mxu0 %v306_v56  ;;  %v333_v50 = vld [vmem:[%s3484_s14 + $0x188] sm:$0xff]  ;;  %v2466_v52 = vpack.c.bf16 %v537_v45, %v533_v44  ;;  %v575_v45 = vld [vmem:[#allocation2 + $0x758] sm:$0xff]  ;;  %v586_v2 = vld [vmem:[#allocation2 + $0x7b0] sm:$0xff] }
  0xd5   : > { %1313 = vmatprep.mubr.f32.mxu1 %v306_v56  ;;  %862 = vmatmul.mubr.f32.gmra.mrb[6].mxu0 %v305_v58  ;;  %v2662_v56 = vpack.c.bf16 %v539_v47, %v535_v46  ;;  %v573_v43 = vld [vmem:[#allocation2 + $0x748] sm:$0xff]  ;;  %v579_v46 = vld [vmem:[#allocation2 + $0x778] sm:$0xff] }
  0xd6   : > { %2449 = vmatpush1.bf16.msra.mxu0 %v2448_v57  ;;  %1314 = vmatmul.mubr.f32.gmra.mrb[6].mxu1 %v305_v58  ;;  %v538_v57 = vld [vmem:[#allocation2 + $0x630] sm:$0xff]  ;;  %v541_v58 = vld [vmem:[#allocation2 + $0x648] sm:$0xff]  ;;  %v2682_v53 = vpack.c.bf16 %v579_v46, %v575_v45 }
  0xd7   : > { %2645 = vmatpush1.bf16.msra.mxu1 %v2644_v59  ;;  %2451 = vmatprep.subr.bf16.mxu0 %v2450_v60  ;;  %v545_v59 = vld [vmem:[#allocation2 + $0x668] sm:$0xff]  ;;  %v543_v60 = vld [vmem:[#allocation2 + $0x658] sm:$0xff] }
  0xd8   : > { %2647 = vmatprep.subr.bf16.mxu1 %v2646_v0  ;;  %867 = vmatprep.mubr.f32.mxu0 %v313_v6  ;;  %v2664_v0 = vpack.c.bf16 %v538_v57, %v534_v55  ;;  %v2470_v1 = vpack.c.bf16 %v545_v59, %v541_v58  ;;  %v2666_v5 = vpack.c.bf16 %v547_v61, %v543_v60  ;;  %v577_v44 = vld [vmem:[#allocation2 + $0x768] sm:$0xff]  ;;  %v583_v57 = vld [vmem:[#allocation2 + $0x798] sm:$0xff] }
  0xd9   : > { %1319 = vmatprep.mubr.f32.mxu1 %v313_v6  ;;  %868 = vmatmul.mubr.f32.gmra.mrb[8].mxu0 %v312_v8  ;;  %v546_v6 = vld [vmem:[#allocation2 + $0x670] sm:$0xff]  ;;  %v581_v55 = vld [vmem:[#allocation2 + $0x788] sm:$0xff]  ;;  %v587_v58 = vld [vmem:[#allocation2 + $0x7b8] sm:$0xff] }
  0xda   : > { %2453 = vmatpush1.bf16.msra.mxu0 %v2452_v7  ;;  %1320 = vmatmul.mubr.f32.gmra.mrb[8].mxu1 %v312_v8  ;;  %v549_v7 = vld [vmem:[#allocation2 + $0x688] sm:$0xff]  ;;  %v2668_v12 = vpack.c.bf16 %v546_v6, %v542_v4  ;;  %v595_v6 = vld [vmem:[#allocation2 + $0x7f8] sm:$0xff] }
  0xdb   : > { %2649 = vmatpush1.bf16.msra.mxu1 %v2648_v9  ;;  %2455 = vmatprep.subr.bf16.mxu0 %v2454_v10  ;;  %v553_v8 = vld [vmem:[#allocation2 + $0x6a8] sm:$0xff]  ;;  %v551_v9 = vld [vmem:[#allocation2 + $0x698] sm:$0xff] }
  0xdc   : > { %2651 = vmatprep.subr.bf16.mxu1 %v2650_v14  ;;  %873 = vmatprep.mubr.f32.mxu0 %v320_v20  ;;  %v555_v10 = vld [vmem:[#allocation2 + $0x6b8] sm:$0xff]  ;;  %v2474_v13 = vpack.c.bf16 %v553_v8, %v549_v7  ;;  %v548_v14 = vld [vmem:[#allocation2 + $0x680] sm:$0xff]  ;;  %v593_v4 = vld [vmem:[#allocation2 + $0x7e8] sm:$0xff] }
  0xdd   : > { %1325 = vmatprep.mubr.f32.mxu1 %v320_v20  ;;  %874 = vmatmul.mubr.f32.gmra.mrb[10].mxu0 %v319_v22  ;;  %v2670_v17 = vpack.c.bf16 %v555_v10, %v551_v9  ;;  %v561_v20 = vld [vmem:[#allocation2 + $0x6e8] sm:$0xff]  ;;  %v2494_v9 = vpack.c.bf16 %v593_v4, %v589_v3  ;;  %v588_v10 = vld [vmem:[#allocation2 + $0x7c0] sm:$0xff]  ;;  %v626_v3 = vld [vmem:[#allocation2 + $0x8f0] sm:$0xff] }
  0xde   : > { %2457 = vmatpush1.bf16.msra.mxu0 %v2456_v21  ;;  %1326 = vmatmul.mubr.f32.gmra.mrb[10].mxu1 %v319_v22  ;;  %v559_v21 = vld [vmem:[#allocation2 + $0x6d8] sm:$0xff]  ;;  %v2478_v25 = vpack.c.bf16 %v561_v20, %v557_v19  ;;  %v293_v46 = vld [vmem:[%s3484_s14 + $0x48] sm:$0xff] }
  0xdf   : > { %2653 = vmatpush1.bf16.msra.mxu1 %v2652_v23  ;;  %2459 = vmatprep.subr.bf16.mxu0 %v2458_v24  ;;  %v563_v22 = vld [vmem:[#allocation2 + $0x6f8] sm:$0xff]  ;;  %v2476_v23 = vpack.c.bf16 %v552_v15, %v548_v14  ;;  %v2672_v24 = vpack.c.bf16 %v554_v18, %v550_v16  ;;  %v594_v14 = vld [vmem:[#allocation2 + $0x7f0] sm:$0xff]  ;;  %v597_v15 = vld [vmem:[#allocation2 + $0x808] sm:$0xff] }
  0xe0   : > { %2655 = vmatprep.subr.bf16.mxu1 %v2654_v28  ;;  %879 = vmatprep.mubr.f32.mxu0 %v327_v34  ;;  %v558_v28 = vld [vmem:[#allocation2 + $0x6d0] sm:$0xff]  ;;  %v2674_v29 = vpack.c.bf16 %v563_v22, %v559_v21  ;;  %v601_v16 = vld [vmem:[#allocation2 + $0x828] sm:$0xff]  ;;  %v603_v18 = vld [vmem:[#allocation2 + $0x838] sm:$0xff] }
  0xe1   : > { %1331 = vmatprep.mubr.f32.mxu1 %v327_v34  ;;  %880 = vmatmul.mubr.f32.gmra.mrb[12].mxu0 %v326_v36  ;;  %v571_v34 = vld [vmem:[#allocation2 + $0x738] sm:$0xff]  ;;  %v2498_v21 = vpack.c.bf16 %v601_v16, %v597_v15  ;;  %v596_v22 = vld [vmem:[#allocation2 + $0x800] sm:$0xff]  ;;  %v629_v4 = vld [vmem:[#allocation2 + $0x908] sm:$0xff] }
  0xe2   : > { %2461 = vmatpush1.bf16.msra.mxu0 %v2460_v35  ;;  %1332 = vmatmul.mubr.f32.gmra.mrb[12].mxu1 %v326_v36  ;;  %v2480_v35 = vpack.c.bf16 %v560_v27, %v556_v26  ;;  %v2676_v36 = vpack.c.bf16 %v562_v30, %v558_v28  ;;  %v2678_v41 = vpack.c.bf16 %v571_v34, %v567_v33  ;;  %v602_v26 = vld [vmem:[#allocation2 + $0x830] sm:$0xff]  ;;  %v605_v27 = vld [vmem:[#allocation2 + $0x848] sm:$0xff]  ;;  %v611_v30 = vld [vmem:[#allocation2 + $0x878] sm:$0xff] }
  0xe3   : > { %2657 = vmatpush1.bf16.msra.mxu1 %v2656_v37  ;;  %2463 = vmatprep.subr.bf16.mxu0 %v2462_v38  ;;  %v2482_v37 = vpack.c.bf16 %v569_v32, %v565_v31  ;;  %v564_v38 = vld [vmem:[#allocation2 + $0x700] sm:$0xff]  ;;  %v609_v28 = vld [vmem:[#allocation2 + $0x868] sm:$0xff]  ;;  %v286_v31 = vld [vmem:[%s3484_s14 + $0x10] sm:$0xff] }
  0xe4   : > { %2659 = vmatprep.subr.bf16.mxu1 %v2658_v42  ;;  %885 = vmatprep.mubr.f32.mxu0 %v334_v48  ;;  %v570_v42 = vld [vmem:[#allocation2 + $0x730] sm:$0xff]  ;;  %v2484_v47 = vpack.c.bf16 %v568_v39, %v564_v38  ;;  %v2502_v34 = vpack.c.bf16 %v609_v28, %v605_v27  ;;  %v636_v27 = vld [vmem:[#allocation2 + $0x940] sm:$0xff] }
  0xe5   : > { %1337 = vmatprep.mubr.f32.mxu1 %v334_v48  ;;  %886 = vmatmul.mubr.f32.gmra.mrb[14].mxu0 %v333_v50  ;;  %v2680_v48 = vpack.c.bf16 %v570_v42, %v566_v40  ;;  %v610_v39 = vld [vmem:[#allocation2 + $0x870] sm:$0xff]  ;;  %v613_v40 = vld [vmem:[#allocation2 + $0x888] sm:$0xff]  ;;  %v615_v42 = vld [vmem:[#allocation2 + $0x898] sm:$0xff] }
  0xe6   : > { %2465 = vmatpush1.bf16.msra.mxu0 %v2464_v49  ;;  %1338 = vmatmul.mubr.f32.gmra.mrb[14].mxu1 %v333_v50  ;;  %v2486_v49 = vpack.c.bf16 %v577_v44, %v573_v43  ;;  %v572_v50 = vld [vmem:[#allocation2 + $0x740] sm:$0xff]  ;;  %v619_v43 = vld [vmem:[#allocation2 + $0x8b8] sm:$0xff]  ;;  %v294_v44 = vld [vmem:[%s3484_s14 + $0x50] sm:$0xff] }
  0xe7   : > { %2661 = vmatpush1.bf16.msra.mxu1 %v2660_v51  ;;  %2467 = vmatprep.subr.bf16.mxu0 %v2466_v52  ;;  %v576_v51 = vld [vmem:[#allocation2 + $0x760] sm:$0xff]  ;;  %v574_v52 = vld [vmem:[#allocation2 + $0x750] sm:$0xff] }
  0xe8   : > { %2663 = vmatprep.subr.bf16.mxu1 %v2662_v56  ;;  %956 = vmatprep.mubr.f32.mxu0 %v287_v62  ;;  %v585_v56 = vld [vmem:[#allocation2 + $0x7a8] sm:$0xff]  ;;  %v2488_v59 = vpack.c.bf16 %v576_v51, %v572_v50  ;;  %v2684_v60 = vpack.c.bf16 %v578_v54, %v574_v52  ;;  %v616_v50 = vld [vmem:[#allocation2 + $0x8a0] sm:$0xff]  ;;  %v614_v51 = vld [vmem:[#allocation2 + $0x890] sm:$0xff]  ;;  %v2702_v52 = vpack.c.bf16 %v619_v43, %v615_v42 }
  0xe9   : > { %1408 = vmatprep.mubr.f32.mxu1 %v287_v62  ;;  %v2490_v61 = vpack.c.bf16 %v585_v56, %v581_v55  ;;  %v580_v62 = vld [vmem:[#allocation2 + $0x780] sm:$0xff]  ;;  %v621_v54 = vld [vmem:[#allocation2 + $0x8c8] sm:$0xff]  ;;  %v623_v56 = vld [vmem:[#allocation2 + $0x8d8] sm:$0xff] }
  0xea   : > { %2469 = vmatpush1.bf16.msra.mxu0 %v2468_v63  ;;  %v584_v63 = vld [vmem:[#allocation2 + $0x7a0] sm:$0xff]  ;;  %v625_v55 = vld [vmem:[#allocation2 + $0x8e8] sm:$0xff]  ;;  %v630_v15 = vld [vmem:[#allocation2 + $0x910] sm:$0xff] }
  0xeb   : > { %2665 = vmatpush1.bf16.msra.mxu1 %v2664_v0  ;;  %2471 = vmatprep.subr.bf16.mxu0 %v2470_v1  ;;  %v582_v0 = vld [vmem:[#allocation2 + $0x790] sm:$0xff]  ;;  %v2686_v1 = vpack.c.bf16 %v587_v58, %v583_v57  ;;  %v2492_v7 = vpack.c.bf16 %v584_v63, %v580_v62  ;;  %v627_v57 = vld [vmem:[#allocation2 + $0x8f8] sm:$0xff]  ;;  %v301_v58 = vld [vmem:[%s3484_s14 + $0x88] sm:$0xff]  ;;  %v2510_v62 = vpack.c.bf16 %v625_v55, %v621_v54 }
  0xec   : > { %2667 = vmatprep.subr.bf16.mxu1 %v2666_v5  ;;  %v591_v5 = vld [vmem:[#allocation2 + $0x7d8] sm:$0xff]  ;;  %v2688_v8 = vpack.c.bf16 %v586_v2, %v582_v0  ;;  %v620_v63 = vld [vmem:[#allocation2 + $0x8c0] sm:$0xff]  ;;  %v2706_v2 = vpack.c.bf16 %v627_v57, %v623_v56  ;;  %v646_v43 = vld [vmem:[#allocation2 + $0x990] sm:$0xff] }
  0xed   : > { %v624_v0 = vld [vmem:[#allocation2 + $0x8e0] sm:$0xff]  ;;  %v654_v57 = vld [vmem:[#allocation2 + $0x9d0] sm:$0xff] }
  0xee   : > { %2473 = vmatpush1.bf16.msra.mxu0 %v2472_v11  ;;  %v592_v11 = vld [vmem:[#allocation2 + $0x7e0] sm:$0xff] }
  0xef   : > { %2669 = vmatpush1.bf16.msra.mxu1 %v2668_v12  ;;  %2475 = vmatprep.subr.bf16.mxu0 %v2474_v13  ;;  %v590_v12 = vld [vmem:[#allocation2 + $0x7d0] sm:$0xff]  ;;  %v2690_v13 = vpack.c.bf16 %v595_v6, %v591_v5  ;;  %v2496_v19 = vpack.c.bf16 %v592_v11, %v588_v10  ;;  %v633_v5 = vld [vmem:[#allocation2 + $0x928] sm:$0xff]  ;;  %v631_v6 = vld [vmem:[#allocation2 + $0x918] sm:$0xff] }
  0xf0   : > { %2671 = vmatprep.subr.bf16.mxu1 %v2670_v17  ;;  %v599_v17 = vld [vmem:[#allocation2 + $0x818] sm:$0xff]  ;;  %v2692_v20 = vpack.c.bf16 %v594_v14, %v590_v12  ;;  %v2514_v12 = vpack.c.bf16 %v633_v5, %v629_v4  ;;  %v632_v14 = vld [vmem:[#allocation2 + $0x920] sm:$0xff] }
  0xf1   : > { %v307_v10 = vld [vmem:[%s3484_s14 + $0xb8] sm:$0xff]  ;;  %v640_v28 = vld [vmem:[#allocation2 + $0x960] sm:$0xff] }
  0xf2   : > { %2477 = vmatpush1.bf16.msra.mxu0 %v2476_v23  ;;  %v600_v23 = vld [vmem:[#allocation2 + $0x820] sm:$0xff] }
  0xf3   : > { %2673 = vmatpush1.bf16.msra.mxu1 %v2672_v24  ;;  %2479 = vmatprep.subr.bf16.mxu0 %v2478_v25  ;;  %v598_v24 = vld [vmem:[#allocation2 + $0x810] sm:$0xff]  ;;  %v2694_v25 = vpack.c.bf16 %v603_v18, %v599_v17  ;;  %v2500_v32 = vpack.c.bf16 %v600_v23, %v596_v22  ;;  %v637_v18 = vld [vmem:[#allocation2 + $0x948] sm:$0xff]  ;;  %v315_v22 = vld [vmem:[%s3484_s14 + $0xf8] sm:$0xff] }
  0xf4   : > { %2675 = vmatprep.subr.bf16.mxu1 %v2674_v29  ;;  %v607_v29 = vld [vmem:[#allocation2 + $0x858] sm:$0xff]  ;;  %v2696_v33 = vpack.c.bf16 %v602_v26, %v598_v24  ;;  %v634_v17 = vld [vmem:[#allocation2 + $0x930] sm:$0xff]  ;;  %v648_v42 = vld [vmem:[#allocation2 + $0x9a0] sm:$0xff] }
  0xf5   : > { %v2698_v38 = vpack.c.bf16 %v611_v30, %v607_v29  ;;  %v314_v24 = vld [vmem:[%s3484_s14 + $0xf0] sm:$0xff]  ;;  %v652_v55 = vld [vmem:[#allocation2 + $0x9c0] sm:$0xff] }
  0xf6   : > { %2481 = vmatpush1.bf16.msra.mxu0 %v2480_v35  ;;  %v604_v35 = vld [vmem:[#allocation2 + $0x840] sm:$0xff]  ;;  %v638_v29 = vld [vmem:[#allocation2 + $0x950] sm:$0xff] }
  0xf7   : > { %2677 = vmatpush1.bf16.msra.mxu1 %v2676_v36  ;;  %2483 = vmatprep.subr.bf16.mxu0 %v2482_v37  ;;  %v608_v36 = vld [vmem:[#allocation2 + $0x860] sm:$0xff]  ;;  %v606_v37 = vld [vmem:[#allocation2 + $0x850] sm:$0xff] }
  0xf8   : > { %2679 = vmatprep.subr.bf16.mxu1 %v2678_v41  ;;  %v617_v41 = vld [vmem:[#allocation2 + $0x8a8] sm:$0xff]  ;;  %v2504_v45 = vpack.c.bf16 %v608_v36, %v604_v35  ;;  %v651_v35 = vld [vmem:[#allocation2 + $0x9b8] sm:$0xff]  ;;  %v322_v36 = vld [vmem:[%s3484_s14 + $0x130] sm:$0xff] }
  0xf9   : > { %v656_v56 = vld [vmem:[#allocation2 + $0x9e0] sm:$0xff] }
  0xfa   : > { %2485 = vmatpush1.bf16.msra.mxu0 %v2484_v47  ;;  %v2700_v47 = vpack.c.bf16 %v610_v39, %v606_v37  ;;  %v2520_v37 = vpack.c.bf16 %v640_v28, %v636_v27  ;;  %v660_v5 = vld [vmem:[#allocation2 + $0xa00] sm:$0xff] }
  0xfb   : > { %2681 = vmatpush1.bf16.msra.mxu1 %v2680_v48  ;;  %2487 = vmatprep.subr.bf16.mxu0 %v2486_v49  ;;  %v2506_v48 = vpack.c.bf16 %v617_v41, %v613_v40  ;;  %v612_v49 = vld [vmem:[#allocation2 + $0x880] sm:$0xff] }
  0xfc   : > { %2683 = vmatprep.subr.bf16.mxu1 %v2682_v53  ;;  %v618_v53 = vld [vmem:[#allocation2 + $0x8b0] sm:$0xff]  ;;  %v644_v41 = vld [vmem:[#allocation2 + $0x980] sm:$0xff] }
  0xfe   : > { %2489 = vmatpush1.bf16.msra.mxu0 %v2488_v59  ;;  %v2508_v59 = vpack.c.bf16 %v616_v50, %v612_v49  ;;  %v659_v49 = vld [vmem:[#allocation2 + $0x9f8] sm:$0xff]  ;;  %v329_v50 = vld [vmem:[%s3484_s14 + $0x168] sm:$0xff] }
  0xff   : > { %2685 = vmatpush1.bf16.msra.mxu1 %v2684_v60  ;;  %2491 = vmatprep.subr.bf16.mxu0 %v2490_v61  ;;  %v300_v60 = vld [vmem:[%s3484_s14 + $0x80] sm:$0xff]  ;;  %v2704_v61 = vpack.c.bf16 %v618_v53, %v614_v51  ;;  %v2524_v51 = vpack.c.bf16 %v648_v42, %v644_v41 }
 0x100   : > { %2687 = vmatprep.subr.bf16.mxu1 %v2686_v1  ;;  %v622_v1 = vld [vmem:[#allocation2 + $0x8d0] sm:$0xff]  ;;  %v684_v42 = vld [vmem:[#allocation2 + $0xac0] sm:$0xff] }
 0x101   : > { %v2708_v11 = vpack.c.bf16 %v626_v3, %v622_v1  ;;  %v2528_v1 = vpack.c.bf16 %v656_v56, %v652_v55  ;;  %v696_v55 = vld [vmem:[#allocation2 + $0xb20] sm:$0xff]  ;;  %v694_v56 = vld [vmem:[#allocation2 + $0xb10] sm:$0xff] }
 0x102   : > { %2493 = vmatpush1.bf16.msra.mxu0 %v2492_v7  ;;  %v635_v7 = vld [vmem:[#allocation2 + $0x938] sm:$0xff] }
 0x103   : > { %2689 = vmatpush1.bf16.msra.mxu1 %v2688_v8  ;;  %2495 = vmatprep.subr.bf16.mxu0 %v2494_v9  ;;  %v308_v8 = vld [vmem:[%s3484_s14 + $0xc0] sm:$0xff]  ;;  %v2512_v9 = vpack.c.bf16 %v624_v0, %v620_v63  ;;  %v2710_v16 = vpack.c.bf16 %v635_v7, %v631_v6  ;;  %v667_v63 = vld [vmem:[#allocation2 + $0xa38] sm:$0xff]  ;;  %v662_v7 = vld [vmem:[#allocation2 + $0xa10] sm:$0xff] }
 0x104   : > { %2691 = vmatprep.subr.bf16.mxu1 %v2690_v13  ;;  %v628_v13 = vld [vmem:[#allocation2 + $0x900] sm:$0xff] }
 0x105   : > { %v2516_v23 = vpack.c.bf16 %v632_v14, %v628_v13  ;;  %v336_v0 = vld [vmem:[%s3484_s14 + $0x1a0] sm:$0xff]  ;;  %v675_v13 = vld [vmem:[#allocation2 + $0xa78] sm:$0xff]  ;;  %v289_v14 = vld [vmem:[%s3484_s14 + $0x28] sm:$0xff] }
 0x106   : > { %2497 = vmatpush1.bf16.msra.mxu0 %v2496_v19  ;;  %v641_v19 = vld [vmem:[#allocation2 + $0x968] sm:$0xff]  ;;  %v664_v6 = vld [vmem:[#allocation2 + $0xa20] sm:$0xff] }
 0x107   : > { %2693 = vmatpush1.bf16.msra.mxu1 %v2692_v20  ;;  %2499 = vmatprep.subr.bf16.mxu0 %v2498_v21  ;;  %v639_v20 = vld [vmem:[#allocation2 + $0x958] sm:$0xff]  ;;  %v2518_v26 = vpack.c.bf16 %v641_v19, %v637_v18  ;;  %v668_v18 = vld [vmem:[#allocation2 + $0xa40] sm:$0xff] }
 0x108   : > { %2695 = vmatprep.subr.bf16.mxu1 %v2694_v25  ;;  %v643_v21 = vld [vmem:[#allocation2 + $0x978] sm:$0xff]  ;;  %v2712_v25 = vpack.c.bf16 %v634_v17, %v630_v15  ;;  %v2532_v15 = vpack.c.bf16 %v664_v6, %v660_v5  ;;  %v672_v19 = vld [vmem:[#allocation2 + $0xa60] sm:$0xff]  ;;  %v706_v6 = vld [vmem:[#allocation2 + $0xb70] sm:$0xff] }
 0x109   : > { %957 = vmatmul.mubr.f32.vlgmr.msra.gmra.mrb[0].mxu0 %v286_v31  ;;  %v2714_v30 = vpack.c.bf16 %v643_v21, %v639_v20  ;;  %v670_v20 = vld [vmem:[#allocation2 + $0xa50] sm:$0xff]  ;;  %v2536_v27 = vpack.c.bf16 %v672_v19, %v668_v18  ;;  %v717_v19 = vld [vmem:[#allocation2 + $0xbc8] sm:$0xff] }
 0x10a   : > { %2501 = vmatpush1.bf16.msra.mxu0 %v2500_v32  ;;  %1409 = vmatmul.mubr.f32.vlgmr.msra.gmra.mrb[0].mxu1 %v286_v31  ;;  %v642_v31 = vld [vmem:[#allocation2 + $0x970] sm:$0xff]  ;;  %v645_v32 = vld [vmem:[#allocation2 + $0x988] sm:$0xff] }
 0x10b   : > { %2697 = vmatpush1.bf16.msra.mxu1 %v2696_v33  ;;  %2503 = vmatprep.subr.bf16.mxu0 %v2502_v34  ;;  %v649_v33 = vld [vmem:[#allocation2 + $0x9a8] sm:$0xff]  ;;  %v647_v34 = vld [vmem:[#allocation2 + $0x998] sm:$0xff]  ;;  %v2716_v39 = vpack.c.bf16 %v642_v31, %v638_v29  ;;  %v680_v31 = vld [vmem:[#allocation2 + $0xaa0] sm:$0xff] }
 0x10c   : > { %2699 = vmatprep.subr.bf16.mxu1 %v2698_v38  ;;  %962 = vmatprep.mubr.f32.mxu0 %v294_v44  ;;  %v321_v38 = vld [vmem:[%s3484_s14 + $0x128] sm:$0xff]  ;;  %v2522_v40 = vpack.c.bf16 %v649_v33, %v645_v32  ;;  %v678_v32 = vld [vmem:[#allocation2 + $0xa90] sm:$0xff] }
 0x10d   : > { %1414 = vmatprep.mubr.f32.mxu1 %v294_v44  ;;  %963 = vmatmul.mubr.f32.gmra.mrb[2].mxu0 %v293_v46  ;;  %v2718_v44 = vpack.c.bf16 %v651_v35, %v647_v34  ;;  %v682_v34 = vld [vmem:[#allocation2 + $0xab0] sm:$0xff]  ;;  %v685_v35 = vld [vmem:[#allocation2 + $0xac8] sm:$0xff] }
 0x10e   : > { %2505 = vmatpush1.bf16.msra.mxu0 %v2504_v45  ;;  %1415 = vmatmul.mubr.f32.gmra.mrb[2].mxu1 %v293_v46  ;;  %v650_v45 = vld [vmem:[#allocation2 + $0x9b0] sm:$0xff]  ;;  %v653_v46 = vld [vmem:[#allocation2 + $0x9c8] sm:$0xff] }
 0x10f   : > { %2701 = vmatpush1.bf16.msra.mxu1 %v2700_v47  ;;  %2507 = vmatprep.subr.bf16.mxu0 %v2506_v48  ;;  %v657_v47 = vld [vmem:[#allocation2 + $0x9e8] sm:$0xff]  ;;  %v655_v48 = vld [vmem:[#allocation2 + $0x9d8] sm:$0xff]  ;;  %v2720_v53 = vpack.c.bf16 %v650_v45, %v646_v43  ;;  %v688_v43 = vld [vmem:[#allocation2 + $0xae0] sm:$0xff] }
 0x110   : > { %2703 = vmatprep.subr.bf16.mxu1 %v2702_v52  ;;  %968 = vmatprep.mubr.f32.mxu0 %v301_v58  ;;  %v328_v52 = vld [vmem:[%s3484_s14 + $0x160] sm:$0xff]  ;;  %v2526_v54 = vpack.c.bf16 %v657_v47, %v653_v46  ;;  %v690_v46 = vld [vmem:[#allocation2 + $0xaf0] sm:$0xff]  ;;  %v693_v47 = vld [vmem:[#allocation2 + $0xb08] sm:$0xff] }
 0x111   : > { %1420 = vmatprep.mubr.f32.mxu1 %v301_v58  ;;  %969 = vmatmul.mubr.f32.gmra.mrb[4].mxu0 %v300_v60  ;;  %v2722_v58 = vpack.c.bf16 %v659_v49, %v655_v48  ;;  %v697_v48 = vld [vmem:[#allocation2 + $0xb28] sm:$0xff]  ;;  %v695_v49 = vld [vmem:[#allocation2 + $0xb18] sm:$0xff]  ;;  %v714_v18 = vld [vmem:[#allocation2 + $0xbb0] sm:$0xff] }
 0x112   : > { %2509 = vmatpush1.bf16.msra.mxu0 %v2508_v59  ;;  %1421 = vmatmul.mubr.f32.gmra.mrb[4].mxu1 %v300_v60  ;;  %v658_v59 = vld [vmem:[#allocation2 + $0x9f0] sm:$0xff]  ;;  %v661_v60 = vld [vmem:[#allocation2 + $0xa08] sm:$0xff] }
 0x113   : > { %2705 = vmatpush1.bf16.msra.mxu1 %v2704_v61  ;;  %2511 = vmatprep.subr.bf16.mxu0 %v2510_v62  ;;  %v665_v61 = vld [vmem:[#allocation2 + $0xa28] sm:$0xff]  ;;  %v663_v62 = vld [vmem:[#allocation2 + $0xa18] sm:$0xff]  ;;  %v2724_v3 = vpack.c.bf16 %v658_v59, %v654_v57 }
 0x114   : > { %2707 = vmatprep.subr.bf16.mxu1 %v2706_v2  ;;  %974 = vmatprep.mubr.f32.mxu0 %v308_v8  ;;  %v335_v2 = vld [vmem:[%s3484_s14 + $0x198] sm:$0xff]  ;;  %v2530_v4 = vpack.c.bf16 %v665_v61, %v661_v60  ;;  %v701_v59 = vld [vmem:[#allocation2 + $0xb48] sm:$0xff] }
 0x115   : > { %1426 = vmatprep.mubr.f32.mxu1 %v308_v8  ;;  %975 = vmatmul.mubr.f32.gmra.mrb[6].mxu0 %v307_v10  ;;  %v2726_v8 = vpack.c.bf16 %v667_v63, %v663_v62  ;;  %v705_v60 = vld [vmem:[#allocation2 + $0xb68] sm:$0xff]  ;;  %v703_v61 = vld [vmem:[#allocation2 + $0xb58] sm:$0xff] }
 0x116   : > { %2513 = vmatpush1.bf16.msra.mxu0 %v2512_v9  ;;  %1427 = vmatmul.mubr.f32.gmra.mrb[6].mxu1 %v307_v10  ;;  %v666_v9 = vld [vmem:[#allocation2 + $0xa30] sm:$0xff]  ;;  %v669_v10 = vld [vmem:[#allocation2 + $0xa48] sm:$0xff]  ;;  %v707_v62 = vld [vmem:[#allocation2 + $0xb78] sm:$0xff] }
 0x117   : > { %2709 = vmatpush1.bf16.msra.mxu1 %v2708_v11  ;;  %2515 = vmatprep.subr.bf16.mxu0 %v2514_v12  ;;  %v673_v11 = vld [vmem:[#allocation2 + $0xa68] sm:$0xff]  ;;  %v671_v12 = vld [vmem:[#allocation2 + $0xa58] sm:$0xff]  ;;  %v2746_v5 = vpack.c.bf16 %v707_v62, %v703_v61 }
 0x118   : > { %2711 = vmatprep.subr.bf16.mxu1 %v2710_v16  ;;  %980 = vmatprep.mubr.f32.mxu0 %v315_v22  ;;  %v2728_v16 = vpack.c.bf16 %v666_v9, %v662_v7  ;;  %v2534_v17 = vpack.c.bf16 %v673_v11, %v669_v10  ;;  %v2730_v21 = vpack.c.bf16 %v675_v13, %v671_v12  ;;  %v709_v7 = vld [vmem:[#allocation2 + $0xb88] sm:$0xff]  ;;  %v711_v9 = vld [vmem:[#allocation2 + $0xb98] sm:$0xff] }
 0x119   : > { %1432 = vmatprep.mubr.f32.mxu1 %v315_v22  ;;  %981 = vmatmul.mubr.f32.gmra.mrb[8].mxu0 %v314_v24  ;;  %v674_v22 = vld [vmem:[#allocation2 + $0xa70] sm:$0xff]  ;;  %v715_v10 = vld [vmem:[#allocation2 + $0xbb8] sm:$0xff] }
 0x11a   : > { %2517 = vmatpush1.bf16.msra.mxu0 %v2516_v23  ;;  %1433 = vmatmul.mubr.f32.gmra.mrb[8].mxu1 %v314_v24  ;;  %v677_v23 = vld [vmem:[#allocation2 + $0xa88] sm:$0xff]  ;;  %v2732_v28 = vpack.c.bf16 %v674_v22, %v670_v20  ;;  %v723_v22 = vld [vmem:[#allocation2 + $0xbf8] sm:$0xff] }
 0x11b   : > { %2713 = vmatpush1.bf16.msra.mxu1 %v2712_v25  ;;  %2519 = vmatprep.subr.bf16.mxu0 %v2518_v26  ;;  %v681_v24 = vld [vmem:[#allocation2 + $0xaa8] sm:$0xff]  ;;  %v679_v25 = vld [vmem:[#allocation2 + $0xa98] sm:$0xff] }
 0x11c   : > { %2715 = vmatprep.subr.bf16.mxu1 %v2714_v30  ;;  %986 = vmatprep.mubr.f32.mxu0 %v322_v36  ;;  %v683_v26 = vld [vmem:[#allocation2 + $0xab8] sm:$0xff]  ;;  %v2538_v29 = vpack.c.bf16 %v681_v24, %v677_v23  ;;  %v676_v30 = vld [vmem:[#allocation2 + $0xa80] sm:$0xff]  ;;  %v721_v20 = vld [vmem:[#allocation2 + $0xbe8] sm:$0xff] }
 0x11d   : > { %1438 = vmatprep.mubr.f32.mxu1 %v322_v36  ;;  %987 = vmatmul.mubr.f32.gmra.mrb[10].mxu0 %v321_v38  ;;  %v2734_v33 = vpack.c.bf16 %v683_v26, %v679_v25  ;;  %v689_v36 = vld [vmem:[#allocation2 + $0xae8] sm:$0xff]  ;;  %v2558_v25 = vpack.c.bf16 %v721_v20, %v717_v19  ;;  %v716_v26 = vld [vmem:[#allocation2 + $0xbc0] sm:$0xff]  ;;  %v323_v61 = vld [vmem:[%s3484_s14 + $0x138] sm:$0xff] }
 0x11e   : > { %2521 = vmatpush1.bf16.msra.mxu0 %v2520_v37  ;;  %1439 = vmatmul.mubr.f32.gmra.mrb[10].mxu1 %v321_v38  ;;  %v687_v37 = vld [vmem:[#allocation2 + $0xad8] sm:$0xff]  ;;  %v2542_v41 = vpack.c.bf16 %v689_v36, %v685_v35  ;;  %v1735_v20 = vld [vmem:[#allocation7 + $0xa0] sm:$0xff] }
 0x11f   : > { %2717 = vmatpush1.bf16.msra.mxu1 %v2716_v39  ;;  %2523 = vmatprep.subr.bf16.mxu0 %v2522_v40  ;;  %v691_v38 = vld [vmem:[#allocation2 + $0xaf8] sm:$0xff]  ;;  %v2540_v39 = vpack.c.bf16 %v680_v31, %v676_v30  ;;  %v2736_v40 = vpack.c.bf16 %v682_v34, %v678_v32  ;;  %v722_v30 = vld [vmem:[#allocation2 + $0xbf0] sm:$0xff]  ;;  %v725_v31 = vld [vmem:[#allocation2 + $0xc08] sm:$0xff] }
 0x120   : > { %2719 = vmatprep.subr.bf16.mxu1 %v2718_v44  ;;  %992 = vmatprep.mubr.f32.mxu0 %v329_v50  ;;  %v686_v44 = vld [vmem:[#allocation2 + $0xad0] sm:$0xff]  ;;  %v2738_v45 = vpack.c.bf16 %v691_v38, %v687_v37  ;;  %v729_v32 = vld [vmem:[#allocation2 + $0xc28] sm:$0xff]  ;;  %v731_v34 = vld [vmem:[#allocation2 + $0xc38] sm:$0xff] }
 0x121   : > { %1444 = vmatprep.mubr.f32.mxu1 %v329_v50  ;;  %993 = vmatmul.mubr.f32.gmra.mrb[12].mxu0 %v328_v52  ;;  %v699_v50 = vld [vmem:[#allocation2 + $0xb38] sm:$0xff]  ;;  %v2562_v37 = vpack.c.bf16 %v729_v32, %v725_v31  ;;  %v724_v38 = vld [vmem:[#allocation2 + $0xc00] sm:$0xff]  ;;  %v1752_v32 = vld [vmem:[#allocation7 + $0x128] sm:$0xff] }
 0x122   : > { %2525 = vmatpush1.bf16.msra.mxu0 %v2524_v51  ;;  %1445 = vmatmul.mubr.f32.gmra.mrb[12].mxu1 %v328_v52  ;;  %v2544_v51 = vpack.c.bf16 %v688_v43, %v684_v42  ;;  %v2740_v52 = vpack.c.bf16 %v690_v46, %v686_v44  ;;  %v2742_v57 = vpack.c.bf16 %v699_v50, %v695_v49  ;;  %v730_v42 = vld [vmem:[#allocation2 + $0xc30] sm:$0xff]  ;;  %v1731_v43 = vld [vmem:[#allocation7 + $0x80] sm:$0xff]  ;;  %v331_v62 = vld [vmem:[%s3484_s14 + $0x178] sm:$0xff] }
 0x123   : > { %2721 = vmatpush1.bf16.msra.mxu1 %v2720_v53  ;;  %2527 = vmatprep.subr.bf16.mxu0 %v2526_v54  ;;  %v2546_v53 = vpack.c.bf16 %v697_v48, %v693_v47  ;;  %v692_v54 = vld [vmem:[#allocation2 + $0xb00] sm:$0xff]  ;;  %v1732_v44 = vld [vmem:[#allocation7 + $0x88] sm:$0xff] }
 0x124   : > { %2723 = vmatprep.subr.bf16.mxu1 %v2722_v58  ;;  %998 = vmatprep.mubr.f32.mxu0 %v336_v0  ;;  %v698_v58 = vld [vmem:[#allocation2 + $0xb30] sm:$0xff]  ;;  %v2548_v63 = vpack.c.bf16 %v696_v55, %v692_v54  ;;  %v1763_v47 = vld [vmem:[#allocation7 + $0x180] sm:$0xff]  ;;  %v303_v54 = vld [vmem:[%s3484_s14 + $0x98] sm:$0xff] }
 0x125   : > { %1450 = vmatprep.mubr.f32.mxu1 %v336_v0  ;;  %999 = vmatmul.mubr.f32.gmra.mrb[14].mxu0 %v335_v2  ;;  %v2744_v0 = vpack.c.bf16 %v698_v58, %v694_v56  ;;  %v1764_v48 = vld [vmem:[#allocation7 + $0x188] sm:$0xff]  ;;  %v296_v49 = vld [vmem:[%s3484_s14 + $0x60] sm:$0xff] }
 0x126   : > { %2529 = vmatpush1.bf16.msra.mxu0 %v2528_v1  ;;  %1451 = vmatmul.mubr.f32.gmra.mrb[14].mxu1 %v335_v2  ;;  %v2550_v1 = vpack.c.bf16 %v705_v60, %v701_v59  ;;  %v700_v2 = vld [vmem:[#allocation2 + $0xb40] sm:$0xff]  ;;  %v302_v55 = vld [vmem:[%s3484_s14 + $0x90] sm:$0xff]  ;;  %v317_v58 = vld [vmem:[%s3484_s14 + $0x108] sm:$0xff] }
 0x127   : > { %2725 = vmatpush1.bf16.msra.mxu1 %v2724_v3  ;;  %2531 = vmatprep.subr.bf16.mxu0 %v2530_v4  ;;  %v704_v3 = vld [vmem:[#allocation2 + $0xb60] sm:$0xff]  ;;  %v702_v4 = vld [vmem:[#allocation2 + $0xb50] sm:$0xff] }
 0x128   : > { %2727 = vmatprep.subr.bf16.mxu1 %v2726_v8  ;;  %1069 = vmatprep.mubr.f32.mxu0 %v289_v14  ;;  %v713_v8 = vld [vmem:[#allocation2 + $0xba8] sm:$0xff]  ;;  %v2552_v11 = vpack.c.bf16 %v704_v3, %v700_v2  ;;  %v2748_v12 = vpack.c.bf16 %v706_v6, %v702_v4  ;;  %v310_v56 = vld [vmem:[%s3484_s14 + $0xd0] sm:$0xff]  ;;  %v316_v59 = vld [vmem:[%s3484_s14 + $0x100] sm:$0xff] }
 0x129   : > { %1521 = vmatprep.mubr.f32.mxu1 %v289_v14  ;;  %v2554_v13 = vpack.c.bf16 %v713_v8, %v709_v7  ;;  %v708_v14 = vld [vmem:[#allocation2 + $0xb80] sm:$0xff]  ;;  %v1716_v3 = vld [vmem:[#allocation7 + $0x8] sm:$0xff]  ;;  %v1733_v6 = vld [vmem:[#allocation7 + $0x90] sm:$0xff]  ;;  %v3270_v8 = vmov 0.0  }
 0x12a   : > { %2533 = vmatpush1.bf16.msra.mxu0 %v2532_v15  ;;  %v712_v15 = vld [vmem:[#allocation2 + $0xba0] sm:$0xff] }
 0x12b   : > { %2729 = vmatpush1.bf16.msra.mxu1 %v2728_v16  ;;  %2535 = vmatprep.subr.bf16.mxu0 %v2534_v17  ;;  %v710_v16 = vld [vmem:[#allocation2 + $0xb90] sm:$0xff]  ;;  %v2750_v17 = vpack.c.bf16 %v715_v10, %v711_v9  ;;  %v2556_v23 = vpack.c.bf16 %v712_v15, %v708_v14  ;;  %v324_v60 = vld [vmem:[%s3484_s14 + $0x140] sm:$0xff] }
 0x12c   : > { %2731 = vmatprep.subr.bf16.mxu1 %v2730_v21  ;;  %v719_v21 = vld [vmem:[#allocation2 + $0xbd8] sm:$0xff]  ;;  %v2752_v24 = vpack.c.bf16 %v714_v18, %v710_v16  ;;  %v1715_v2 = vld [vmem:[#allocation7] sm:$0xff]  ;;  %v290_v9 = vld [vmem:[%s3484_s14 + $0x30] sm:$0xff] }
 0x12d   : > { %v1747_v4 = vld [vmem:[#allocation7 + $0x100] sm:$0xff]  ;;  %v1734_v7 = vld [vmem:[#allocation7 + $0x98] sm:$0xff]  ;;  %v1765_v10 = vld [vmem:[#allocation7 + $0x190] sm:$0xff] }
 0x12e   : > { %2537 = vmatpush1.bf16.msra.mxu0 %v2536_v27  ;;  %v720_v27 = vld [vmem:[#allocation2 + $0xbe0] sm:$0xff]  ;;  %v2766_v14 = vpack.c.bf16 %v1734_v7, %v1733_v6  ;;  %v1717_v15 = vld [vmem:[#allocation7 + $0x10] sm:$0xff] }
 0x12f   : > { %2733 = vmatpush1.bf16.msra.mxu1 %v2732_v28  ;;  %2539 = vmatprep.subr.bf16.mxu0 %v2538_v29  ;;  %v718_v28 = vld [vmem:[#allocation2 + $0xbd0] sm:$0xff]  ;;  %v2754_v29 = vpack.c.bf16 %v723_v22, %v719_v21  ;;  %v2560_v35 = vpack.c.bf16 %v720_v27, %v716_v26  ;;  %v1718_v16 = vld [vmem:[#allocation7 + $0x18] sm:$0xff]  ;;  %v297_v22 = vld [vmem:[%s3484_s14 + $0x68] sm:$0xff] }
 0x130   : > { %2735 = vmatprep.subr.bf16.mxu1 %v2734_v33  ;;  %v727_v33 = vld [vmem:[#allocation2 + $0xc18] sm:$0xff]  ;;  %v2756_v36 = vpack.c.bf16 %v722_v30, %v718_v28  ;;  %v1736_v21 = vld [vmem:[#allocation7 + $0xa8] sm:$0xff]  ;;  %v1719_v28 = vld [vmem:[#allocation7 + $0x20] sm:$0xff] }
 0x131   : > { %v1750_v19 = vld [vmem:[#allocation7 + $0x118] sm:$0xff]  ;;  %v2770_v27 = vpack.c.bf16 %v1736_v21, %v1735_v20  ;;  %v1751_v30 = vld [vmem:[#allocation7 + $0x120] sm:$0xff]  ;;  %v1728_v21 = vld [vmem:[#allocation7 + $0x68] sm:$0xff] }
 0x132   : > { %2541 = vmatpush1.bf16.msra.mxu0 %v2540_v39  ;;  %v728_v39 = vld [vmem:[#allocation2 + $0xc20] sm:$0xff] }
 0x133   : > { %2737 = vmatpush1.bf16.msra.mxu1 %v2736_v40  ;;  %2543 = vmatprep.subr.bf16.mxu0 %v2542_v41  ;;  %v2758_v40 = vpack.c.bf16 %v731_v34, %v727_v33  ;;  %v726_v41 = vld [vmem:[#allocation2 + $0xc10] sm:$0xff]  ;;  %v2564_v46 = vpack.c.bf16 %v728_v39, %v724_v38  ;;  %v1738_v34 = vld [vmem:[#allocation7 + $0xb8] sm:$0xff]  ;;  %v2804_v39 = vpack.c.bf16 %v1752_v32, %v1751_v30  ;;  %v1727_v20 = vld [vmem:[#allocation7 + $0x60] sm:$0xff] }
 0x134   : > { %2739 = vmatprep.subr.bf16.mxu1 %v2738_v45  ;;  %v288_v45 = vld [vmem:[%s3484_s14 + $0x20] sm:$0xff]  ;;  %v2760_v50 = vpack.c.bf16 %v730_v42, %v726_v41  ;;  %v1737_v33 = vld [vmem:[#allocation7 + $0xb0] sm:$0xff] }
 0x135   : > { %v1721_v41 = vld [vmem:[#allocation7 + $0x30] sm:$0xff]  ;;  %v1722_v42 = vld [vmem:[#allocation7 + $0x38] sm:$0xff] }
 0x136   : > { %2545 = vmatpush1.bf16.msra.mxu0 %v2544_v51  ;;  %v2762_v51 = vpack.c.bf16 %v1732_v44, %v1731_v43  ;;  %v1753_v43 = vld [vmem:[#allocation7 + $0x130] sm:$0xff]  ;;  %v1758_v7 = vld [vmem:[#allocation7 + $0x158] sm:$0xff] }
 0x137   : > { %2741 = vmatpush1.bf16.msra.mxu1 %v2740_v52  ;;  %2547 = vmatprep.subr.bf16.mxu0 %v2546_v53  ;;  %v2794_v52 = vpack.c.bf16 %v1764_v48, %v1763_v47  ;;  %v295_v53 = vld [vmem:[%s3484_s14 + $0x58] sm:$0xff]  ;;  %v1740_v47 = vld [vmem:[#allocation7 + $0xc8] sm:$0xff] }
 0x138   : > { %2743 = vmatprep.subr.bf16.mxu1 %v2742_v57  ;;  %v309_v57 = vld [vmem:[%s3484_s14 + $0xc8] sm:$0xff]  ;;  %v311_v48 = vld [vmem:[%s3484_s14 + $0xd8] sm:$0xff] }
 0x139   : > { %v1778_v30 = vld [vmem:[#allocation7 + $0x1f8] sm:$0xff] }
 0x13a   : > { %2549 = vmatpush1.bf16.msra.mxu0 %v2548_v63  ;;  %v330_v63 = vld [vmem:[%s3484_s14 + $0x170] sm:$0xff]  ;;  %v1730_v32 = vld [vmem:[#allocation7 + $0x78] sm:$0xff] }
 0x13b   : > { %2745 = vmatpush1.bf16.msra.mxu1 %v2744_v0  ;;  %2551 = vmatprep.subr.bf16.mxu0 %v2550_v1  ;;  %v338_v0 = vld [vmem:[%s3484_s14 + $0x1b0] sm:$0xff]  ;;  %v337_v1 = vld [vmem:[%s3484_s14 + $0x1a8] sm:$0xff] }
 0x13c   : > { %2747 = vmatprep.subr.bf16.mxu1 %v2746_v5  ;;  %v1748_v5 = vld [vmem:[#allocation7 + $0x108] sm:$0xff] }
 0x13e   : > { %2553 = vmatpush1.bf16.msra.mxu0 %v2552_v11  ;;  %v1766_v11 = vld [vmem:[#allocation7 + $0x198] sm:$0xff] }
 0x13f   : > { %2749 = vmatpush1.bf16.msra.mxu1 %v2748_v12  ;;  %2555 = vmatprep.subr.bf16.mxu0 %v2554_v13  ;;  %v2764_v12 = vpack.c.bf16 %v1716_v3, %v1715_v2  ;;  %v2796_v13 = vpack.c.bf16 %v1748_v5, %v1747_v4  ;;  %v2798_v18 = vpack.c.bf16 %v1766_v11, %v1765_v10  ;;  %v1725_v3 = vld [vmem:[#allocation7 + $0x50] sm:$0xff]  ;;  %v1726_v4 = vld [vmem:[#allocation7 + $0x58] sm:$0xff]  ;;  %v1744_v10 = vld [vmem:[#allocation7 + $0xe8] sm:$0xff] }
 0x140   : > { %2751 = vmatprep.subr.bf16.mxu1 %v2750_v17  ;;  %v1749_v17 = vld [vmem:[#allocation7 + $0x110] sm:$0xff]  ;;  %v325_v11 = vld [vmem:[%s3484_s14 + $0x148] sm:$0xff] }
 0x141   : > { %v2800_v26 = vpack.c.bf16 %v1750_v19, %v1749_v17  ;;  %v1757_v5 = vld [vmem:[#allocation7 + $0x150] sm:$0xff] }
 0x142   : > { %2557 = vmatpush1.bf16.msra.mxu0 %v2556_v23  ;;  %v1767_v23 = vld [vmem:[#allocation7 + $0x1a0] sm:$0xff]  ;;  %v339_v19 = vld [vmem:[%s3484_s14 + $0x1b8] sm:$0xff] }
 0x143   : > { %2753 = vmatpush1.bf16.msra.mxu1 %v2752_v24  ;;  %2559 = vmatprep.subr.bf16.mxu0 %v2558_v25  ;;  %v1768_v24 = vld [vmem:[#allocation7 + $0x1a8] sm:$0xff]  ;;  %v2768_v25 = vpack.c.bf16 %v1718_v16, %v1717_v15  ;;  %v2816_v15 = vpack.c.bf16 %v1758_v7, %v1757_v5 }
 0x144   : > { %2755 = vmatprep.subr.bf16.mxu1 %v2754_v29  ;;  %v1720_v29 = vld [vmem:[#allocation7 + $0x28] sm:$0xff]  ;;  %v2802_v31 = vpack.c.bf16 %v1768_v24, %v1767_v23  ;;  %v2788_v23 = vpack.c.bf16 %v1728_v21, %v1727_v20 }
 0x145   : > { %v2772_v38 = vpack.c.bf16 %v1720_v29, %v1719_v28  ;;  %v1760_v24 = vld [vmem:[#allocation7 + $0x168] sm:$0xff]  ;;  %v1777_v28 = vld [vmem:[#allocation7 + $0x1f0] sm:$0xff] }
 0x146   : > { %2561 = vmatpush1.bf16.msra.mxu0 %v2560_v35  ;;  %v304_v35 = vld [vmem:[%s3484_s14 + $0xa0] sm:$0xff] }
 0x147   : > { %2757 = vmatpush1.bf16.msra.mxu1 %v2756_v36  ;;  %2563 = vmatprep.subr.bf16.mxu0 %v2562_v37  ;;  %v1769_v36 = vld [vmem:[#allocation7 + $0x1b0] sm:$0xff]  ;;  %v1770_v37 = vld [vmem:[#allocation7 + $0x1b8] sm:$0xff] }
 0x148   : > { %2759 = vmatprep.subr.bf16.mxu1 %v2758_v40  ;;  %v2774_v40 = vpack.c.bf16 %v1738_v34, %v1737_v33  ;;  %v2806_v44 = vpack.c.bf16 %v1770_v37, %v1769_v36  ;;  %v1761_v34 = vld [vmem:[#allocation7 + $0x170] sm:$0xff]  ;;  %v734_v37 = vlaneseq }
 0x149   : > { %1070 = vmatmul.mubr.f32.vlgmr.msra.gmra.mrb[0].mxu0 %v288_v45 }
 0x14a   : > { %1522 = vmatmul.mubr.f32.vlgmr.msra.gmra.mrb[0].mxu1 %v288_v45  ;;  %2565 = vmatpush1.bf16.msra.mxu0 %v2564_v46  ;;  %v1754_v45 = vld [vmem:[#allocation7 + $0x138] sm:$0xff]  ;;  %v1739_v46 = vld [vmem:[#allocation7 + $0xc0] sm:$0xff] }
 0x14b   : > { %1075 = vmatprep.mubr.f32.mxu0 %v296_v49  ;;  %1527 = vmatprep.mubr.f32.mxu1 %v296_v49  ;;  %v1771_v49 = vld [vmem:[#allocation7 + $0x1c0] sm:$0xff] }
 0x14c   : > { %2761 = vmatpush1.bf16.msra.mxu1 %v2760_v50  ;;  %2763 = vmatprep.subr.bf16.mxu0 %v2762_v51  ;;  %v1772_v50 = vld [vmem:[#allocation7 + $0x1c8] sm:$0xff]  ;;  %v2776_v51 = vpack.c.bf16 %v1722_v42, %v1721_v41 }
 0x14d   : > { %1076 = vmatmul.mubr.f32.gmra.mrb[2].mxu0 %v295_v53  ;;  %2795 = vmatprep.subr.bf16.mxu1 %v2794_v52  ;;  %v2808_v52 = vpack.c.bf16 %v1754_v45, %v1753_v43 }
 0x14e   : > { %1528 = vmatmul.mubr.f32.gmra.mrb[2].mxu1 %v295_v53  ;;  %1081 = vmatprep.mubr.f32.mxu0 %v303_v54  ;;  %v2778_v53 = vpack.c.bf16 %v1740_v47, %v1739_v46 }
 0x14f   : > { %1533 = vmatprep.mubr.f32.mxu1 %v303_v54  ;;  %v1723_v54 = vld [vmem:[#allocation7 + $0x40] sm:$0xff] }
 0x151   : > { %1082 = vmatmul.mubr.f32.gmra.mrb[4].mxu0 %v302_v55 }
 0x152   : > { %1534 = vmatmul.mubr.f32.gmra.mrb[4].mxu1 %v302_v55  ;;  %1087 = vmatprep.mubr.f32.mxu0 %v310_v56  ;;  %v1724_v55 = vld [vmem:[#allocation7 + $0x48] sm:$0xff] }
 0x153   : > { %1539 = vmatprep.mubr.f32.mxu1 %v310_v56  ;;  %v1755_v56 = vld [vmem:[#allocation7 + $0x140] sm:$0xff] }
 0x155   : > { %1088 = vmatmul.mubr.f32.gmra.mrb[6].mxu0 %v309_v57 }
 0x156   : > { %1540 = vmatmul.mubr.f32.gmra.mrb[6].mxu1 %v309_v57  ;;  %1093 = vmatprep.mubr.f32.mxu0 %v317_v58  ;;  %v2810_v57 = vpack.c.bf16 %v1772_v50, %v1771_v49 }
 0x157   : > { %1545 = vmatprep.mubr.f32.mxu1 %v317_v58  ;;  %v1756_v58 = vld [vmem:[#allocation7 + $0x148] sm:$0xff] }
 0x159   : > { %1094 = vmatmul.mubr.f32.gmra.mrb[8].mxu0 %v316_v59 }
 0x15a   : > { %1546 = vmatmul.mubr.f32.gmra.mrb[8].mxu1 %v316_v59  ;;  %1099 = vmatprep.mubr.f32.mxu0 %v324_v60  ;;  %v1741_v59 = vld [vmem:[#allocation7 + $0xd0] sm:$0xff] }
 0x15b   : > { %1551 = vmatprep.mubr.f32.mxu1 %v324_v60  ;;  %v1742_v60 = vld [vmem:[#allocation7 + $0xd8] sm:$0xff] }
 0x15c   : > { %v2782_v2 = vpack.c.bf16 %v1742_v60, %v1741_v59 }
 0x15d   : > { %1100 = vmatmul.mubr.f32.gmra.mrb[10].mxu0 %v323_v61 }
 0x15e   : > { %1552 = vmatmul.mubr.f32.gmra.mrb[10].mxu1 %v323_v61  ;;  %1105 = vmatprep.mubr.f32.mxu0 %v331_v62  ;;  %v318_v61 = vld [vmem:[%s3484_s14 + $0x110] sm:$0xff] }
 0x15f   : > { %1557 = vmatprep.mubr.f32.mxu1 %v331_v62  ;;  %v1773_v62 = vld [vmem:[#allocation7 + $0x1d0] sm:$0xff] }
 0x161   : > { %1106 = vmatmul.mubr.f32.gmra.mrb[12].mxu0 %v330_v63 }
 0x162   : > { %1558 = vmatmul.mubr.f32.gmra.mrb[12].mxu1 %v330_v63  ;;  %1111 = vmatprep.mubr.f32.mxu0 %v338_v0  ;;  %v1774_v63 = vld [vmem:[#allocation7 + $0x1d8] sm:$0xff] }
 0x163   : > { %1563 = vmatprep.mubr.f32.mxu1 %v338_v0  ;;  %v2780_v0 = vpack.c.bf16 %v1724_v55, %v1723_v54  ;;  %v2814_v6 = vpack.c.bf16 %v1774_v63, %v1773_v62 }
 0x165   : > { %1112 = vmatmul.mubr.f32.gmra.mrb[14].mxu0 %v337_v1 }
 0x166   : > { %1564 = vmatmul.mubr.f32.gmra.mrb[14].mxu1 %v337_v1  ;;  %1182 = vmatprep.mubr.f32.mxu0 %v3270_v8  ;;  %v2812_v1 = vpack.c.bf16 %v1756_v58, %v1755_v56 }
 0x167   : > { %1634 = vmatprep.mubr.f32.mxu1 %v3270_v8 }
 0x169   : > { %2235 = vmatmul.mubr.msk.f32.vlgmr.msra.gmra.mrb[0].mxu0 %vm754_vm0, %v290_v9 }
 0x16a   : > { %2243 = vmatmul.mubr.msk.f32.vlgmr.msra.gmra.mrb[0].mxu1 %vm754_vm0, %v290_v9  ;;  %1188 = vmatprep.mubr.f32.mxu0 %v3270_v8  ;;  %v1743_v9 = vld [vmem:[#allocation7 + $0xe0] sm:$0xff] }
 0x16b   : > { %1640 = vmatprep.mubr.f32.mxu1 %v3270_v8  ;;  %2765 = vmatpush3.bf16.msra.mxu0 %v2764_v12  ;;  %v1775_v12 = vld [vmem:[#allocation7 + $0x1e0] sm:$0xff]  ;;  %v2786_v16 = vpack.c.bf16 %v1744_v10, %v1743_v9 }
 0x16c   : > { %2797 = vmatpush3.bf16.msra.mxu1 %v2796_v13  ;;  %2767 = vmatprep.subr.bf16.mxu0 %v2766_v14  ;;  %v1776_v13 = vld [vmem:[#allocation7 + $0x1e8] sm:$0xff]  ;;  %v2784_v14 = vpack.c.bf16 %v1726_v4, %v1725_v3 }
 0x16d   : > { %2236 = vmatmul.mubr.msk.f32.gmra.mrb[2].mxu0 %vm754_vm0, %v297_v22  ;;  %2799 = vmatprep.subr.bf16.mxu1 %v2798_v18  ;;  %v2818_v17 = vpack.c.bf16 %v1776_v13, %v1775_v12  ;;  %v332_v18 = vld [vmem:[%s3484_s14 + $0x180] sm:$0xff] }
 0x16e   : > { %2244 = vmatmul.mubr.msk.f32.gmra.mrb[2].mxu1 %vm754_vm0, %v297_v22  ;;  %1194 = vmatprep.mubr.f32.mxu0 %v3270_v8  ;;  %v1759_v22 = vld [vmem:[#allocation7 + $0x160] sm:$0xff] }
 0x16f   : > { %1646 = vmatprep.mubr.f32.mxu1 %v3270_v8  ;;  %2769 = vmatpush3.bf16.msra.mxu0 %v2768_v25  ;;  %v2820_v25 = vpack.c.bf16 %v1760_v24, %v1759_v22 }
 0x170   : > { %2801 = vmatpush3.bf16.msra.mxu1 %v2800_v26  ;;  %2771 = vmatprep.subr.bf16.mxu0 %v2770_v27  ;;  %v1745_v26 = vld [vmem:[#allocation7 + $0xf0] sm:$0xff]  ;;  %v1746_v27 = vld [vmem:[#allocation7 + $0xf8] sm:$0xff] }
 0x171   : > { %2237 = vmatmul.mubr.msk.f32.gmra.mrb[4].mxu0 %vm754_vm0, %v304_v35  ;;  %2803 = vmatprep.subr.bf16.mxu1 %v2802_v31  ;;  %v2790_v29 = vpack.c.bf16 %v1746_v27, %v1745_v26  ;;  %v1729_v31 = vld [vmem:[#allocation7 + $0x70] sm:$0xff] }
 0x172   : > { %2245 = vmatmul.mubr.msk.f32.gmra.mrb[4].mxu1 %vm754_vm0, %v304_v35  ;;  %1200 = vmatprep.mubr.f32.mxu0 %v3270_v8  ;;  %v2792_v33 = vpack.c.bf16 %v1730_v32, %v1729_v31  ;;  %v1762_v35 = vld [vmem:[#allocation7 + $0x178] sm:$0xff] }
 0x173   : > { %1652 = vmatprep.mubr.f32.mxu1 %v3270_v8  ;;  %2773 = vmatpush3.bf16.msra.mxu0 %v2772_v38  ;;  %v2824_v36 = vpack.c.bf16 %v1762_v35, %v1761_v34  ;;  %v735_v38 = vshrl.u32 %v734_v37, 7 }
 0x174   : > { %2805 = vmatpush3.bf16.msra.mxu1 %v2804_v39  ;;  %2775 = vmatprep.subr.bf16.mxu0 %v2774_v40  ;;  %v732_v40 = vld [vmem:[#allocation5] sm:$0xf] }
 0x175   : > { %2238 = vmatmul.mubr.msk.f32.gmra.mrb[6].mxu0 %vm754_vm0, %v311_v48  ;;  %2807 = vmatprep.subr.bf16.mxu1 %v2806_v44  ;;  %v736_v39 = vsub.s32 0, %v735_v38  ;;  %v744_v41 = vsub.s32 2, %v735_v38  ;;  %v740_v42 = vsub.s32 1, %v735_v38  ;;  %v748_v43 = vsub.s32 3, %v735_v38 }
 0x176   : > { %2246 = vmatmul.mubr.msk.f32.gmra.mrb[6].mxu1 %vm754_vm0, %v311_v48  ;;  %1206 = vmatprep.mubr.f32.mxu0 %v3270_v8 }
 0x177   : > { %1658 = vmatprep.mubr.f32.mxu1 %v3270_v8  ;;  %2777 = vmatpush3.bf16.msra.mxu0 %v2776_v51  ;;  %v3575_v44 = vrot.slane %v732_v40, %v736_v39  ;;  %v3577_v45 = vrot.slane %v732_v40, %v744_v41  ;;  %v3579_v46 = vrot.slane %v732_v40, %v740_v42 }
 0x178   : > { %2809 = vmatpush3.bf16.msra.mxu1 %v2808_v52  ;;  %2779 = vmatprep.subr.bf16.mxu0 %v2778_v53  ;;  %v3581_v47 = vrot.slane %v732_v40, %v748_v43 }
 0x179   : > { %2239 = vmatmul.mubr.msk.f32.gmra.mrb[8].mxu0 %vm754_vm0, %v318_v61  ;;  %2811 = vmatprep.subr.bf16.mxu1 %v2810_v57 }
 0x17a   : > { %2247 = vmatmul.mubr.msk.f32.gmra.mrb[8].mxu1 %vm754_vm0, %v318_v61  ;;  %1212 = vmatprep.mubr.f32.mxu0 %v3270_v8 }
 0x17b   : > { %1664 = vmatprep.mubr.f32.mxu1 %v3270_v8  ;;  %2781 = vmatpush3.bf16.msra.mxu0 %v2780_v0 }
 0x17c   : > { %2813 = vmatpush3.bf16.msra.mxu1 %v2812_v1  ;;  %2783 = vmatprep.subr.bf16.mxu0 %v2782_v2 }
 0x17d   : > { %2240 = vmatmul.mubr.msk.f32.gmra.mrb[10].mxu0 %vm754_vm0, %v325_v11  ;;  %2815 = vmatprep.subr.bf16.mxu1 %v2814_v6 }
 0x17e   : > { %2248 = vmatmul.mubr.msk.f32.gmra.mrb[10].mxu1 %vm754_vm0, %v325_v11  ;;  %1218 = vmatprep.mubr.f32.mxu0 %v3270_v8 }
 0x17f   : > { %1670 = vmatprep.mubr.f32.mxu1 %v3270_v8  ;;  %2785 = vmatpush3.bf16.msra.mxu0 %v2784_v14 }
 0x180   : > { %2817 = vmatpush3.bf16.msra.mxu1 %v2816_v15  ;;  %2787 = vmatprep.subr.bf16.mxu0 %v2786_v16 }
 0x181   : > { %2241 = vmatmul.mubr.msk.f32.gmra.mrb[12].mxu0 %vm754_vm0, %v332_v18  ;;  %2819 = vmatprep.subr.bf16.mxu1 %v2818_v17 }
 0x182   : > { %2249 = vmatmul.mubr.msk.f32.gmra.mrb[12].mxu1 %vm754_vm0, %v332_v18  ;;  %1224 = vmatprep.mubr.f32.mxu0 %v3270_v8 }
 0x183   : > { %1676 = vmatprep.mubr.f32.mxu1 %v3270_v8  ;;  %2789 = vmatpush3.bf16.msra.mxu0 %v2788_v23  ;;  %v2822_v8 = vpack.c.bf16 %v1778_v30, %v1777_v28 }
 0x184   : > { %2821 = vmatpush3.bf16.msra.mxu1 %v2820_v25  ;;  %2791 = vmatprep.subr.bf16.mxu0 %v2790_v29 }
 0x185   : > { %2242 = vmatmul.mubr.msk.f32.gmra.mrb[14].mxu0 %vm754_vm0, %v339_v19  ;;  %2823 = vmatprep.subr.bf16.mxu1 %v2822_v8 }
 0x186   : > { %2250 = vmatmul.mubr.msk.f32.gmra.mrb[14].mxu1 %vm754_vm0, %v339_v19 }
 0x187   : > { %2793 = vmatpush3.bf16.msra.mxu0 %v2792_v33 }
 0x188   : > { %2825 = vmatpush3.bf16.msra.mxu1 %v2824_v36 }
 0x23c   : > { %v1184_v48 = vpop.f32.mrb[0].mxu0 }
 0x23d   : > { %v2826_v49 = vadd.f32 %v1184_v48, %v3575_v44  ;;  %v1636_v50 = vpop.f32.mrb[0].mxu1  ;;  %v1186_v51 = vpop.f32.mrb[1].mxu0 }
 0x23e   : > { %v2842_v52 = vadd.f32 %v1636_v50, %v3577_v45  ;;  %v2827_v53 = vadd.f32 %v1186_v51, %v3579_v46  ;;  %v1638_v54 = vpop.f32.mrb[1].mxu1 }
 0x23f   : > { %v2843_v55 = vadd.f32 %v1638_v54, %v3581_v47  ;;  %v1683_v58 = vmax.f32 %v2826_v49, 0.0 }
 0x240   : > { %v1684_v56 = vmax.f32 %v2827_v53, 0.0  ;;  %v1190_v57 = vpop.f32.mrb[2].mxu0  ;;  %v1685_v63 = vmax.f32 %v2842_v52, 0.0 }
 0x241   : > { %v1686_v59 = vmax.f32 %v2843_v55, 0.0  ;;  %v2828_v60 = vadd.f32 %v1190_v57, %v3575_v44  ;;  %v1642_v61 = vpop.f32.mrb[2].mxu1  ;;  %v1192_v62 = vpop.f32.mrb[3].mxu0 }
 0x242   : > { %v2844_v0 = vadd.f32 %v1642_v61, %v3577_v45  ;;  %v2829_v1 = vadd.f32 %v1192_v62, %v3579_v46  ;;  %v1644_v2 = vpop.f32.mrb[3].mxu1  ;;  %1850 = vmatprep.mubr.f32.mxu0 %v1684_v56 }
 0x243   : > { %v2845_v3 = vadd.f32 %v1644_v2, %v3581_v47  ;;  %1955 = vmatprep.mubr.f32.mxu1 %v1686_v59  ;;  %1851 = vmatmul.mubr.f32.vlgmr.msra.gmra.mrb[16].mxu0 %v1683_v58  ;;  %v1687_v6 = vmax.f32 %v2828_v60, 0.0 }
 0x244   : > { %v1688_v4 = vmax.f32 %v2829_v1, 0.0  ;;  %1956 = vmatmul.mubr.f32.vlgmr.msra.gmra.mrb[16].mxu1 %v1685_v63  ;;  %v1196_v5 = vpop.f32.mrb[4].mxu0  ;;  %v1689_v12 = vmax.f32 %v2844_v0, 0.0 }
 0x245   : > { %v1690_v7 = vmax.f32 %v2845_v3, 0.0  ;;  %v2830_v9 = vadd.f32 %v1196_v5, %v3575_v44  ;;  %v1648_v10 = vpop.f32.mrb[4].mxu1  ;;  %v1198_v11 = vpop.f32.mrb[5].mxu0 }
 0x246   : > { %v2846_v13 = vadd.f32 %v1648_v10, %v3577_v45  ;;  %v2831_v14 = vadd.f32 %v1198_v11, %v3579_v46  ;;  %v1650_v15 = vpop.f32.mrb[5].mxu1  ;;  %1855 = vmatprep.mubr.f32.mxu0 %v1688_v4 }
 0x247   : > { %v2847_v16 = vadd.f32 %v1650_v15, %v3581_v47  ;;  %1960 = vmatprep.mubr.f32.mxu1 %v1690_v7  ;;  %1856 = vmatmul.mubr.f32.gmra.mrb[18].mxu0 %v1687_v6  ;;  %v1691_v19 = vmax.f32 %v2830_v9, 0.0 }
 0x248   : > { %v1692_v17 = vmax.f32 %v2831_v14, 0.0  ;;  %1961 = vmatmul.mubr.f32.gmra.mrb[18].mxu1 %v1689_v12  ;;  %v1202_v18 = vpop.f32.mrb[6].mxu0  ;;  %v1693_v24 = vmax.f32 %v2846_v13, 0.0 }
 0x249   : > { %v1694_v20 = vmax.f32 %v2847_v16, 0.0  ;;  %v2832_v21 = vadd.f32 %v1202_v18, %v3575_v44  ;;  %v1654_v22 = vpop.f32.mrb[6].mxu1  ;;  %v1204_v23 = vpop.f32.mrb[7].mxu0 }
 0x24a   : > { %v2848_v25 = vadd.f32 %v1654_v22, %v3577_v45  ;;  %v2833_v26 = vadd.f32 %v1204_v23, %v3579_v46  ;;  %v1656_v27 = vpop.f32.mrb[7].mxu1  ;;  %1860 = vmatprep.mubr.f32.mxu0 %v1692_v17  ;;  %v3618_v23 = vand.u32 127, %v734_v37 }
 0x24b   : > { %v2849_v28 = vadd.f32 %v1656_v27, %v3581_v47  ;;  %1965 = vmatprep.mubr.f32.mxu1 %v1694_v20  ;;  %1861 = vmatmul.mubr.f32.gmra.mrb[20].mxu0 %v1691_v19  ;;  %v1695_v31 = vmax.f32 %v2832_v21, 0.0 }
 0x24c   : > { %v1696_v29 = vmax.f32 %v2833_v26, 0.0  ;;  %1966 = vmatmul.mubr.f32.gmra.mrb[20].mxu1 %v1693_v24  ;;  %v1208_v30 = vpop.f32.mrb[8].mxu0  ;;  %v1697_v35 = vmax.f32 %v2848_v25, 0.0  ;;  %vm1998_vm1 = vcmp.lt.s32.totalorder %v3618_v23, 10 }
 0x24d   : > { %v1698_v32 = vmax.f32 %v2849_v28, 0.0  ;;  %v2834_v8 = vadd.f32 %v1208_v30, %v3575_v44  ;;  %v1660_v33 = vpop.f32.mrb[8].mxu1  ;;  %v1210_v34 = vpop.f32.mrb[9].mxu0 }
 0x24e   : > { %v2850_v36 = vadd.f32 %v1660_v33, %v3577_v45  ;;  %v2835_v38 = vadd.f32 %v1210_v34, %v3579_v46  ;;  %v1662_v39 = vpop.f32.mrb[9].mxu1  ;;  %1865 = vmatprep.mubr.f32.mxu0 %v1696_v29 }
 0x24f   : > { %v2851_v40 = vadd.f32 %v1662_v39, %v3581_v47  ;;  %1970 = vmatprep.mubr.f32.mxu1 %v1698_v32  ;;  %1866 = vmatmul.mubr.f32.gmra.mrb[22].mxu0 %v1695_v31  ;;  %v1699_v43 = vmax.f32 %v2834_v8, 0.0 }
 0x250   : > { %v1700_v41 = vmax.f32 %v2835_v38, 0.0  ;;  %1971 = vmatmul.mubr.f32.gmra.mrb[22].mxu1 %v1697_v35  ;;  %v1214_v42 = vpop.f32.mrb[10].mxu0  ;;  %v1701_v52 = vmax.f32 %v2850_v36, 0.0 }
 0x251   : > { %v1702_v48 = vmax.f32 %v2851_v40, 0.0  ;;  %v2836_v49 = vadd.f32 %v1214_v42, %v3575_v44  ;;  %v1666_v50 = vpop.f32.mrb[10].mxu1  ;;  %v1216_v51 = vpop.f32.mrb[11].mxu0 }
 0x252   : > { %v2852_v53 = vadd.f32 %v1666_v50, %v3577_v45  ;;  %v2837_v54 = vadd.f32 %v1216_v51, %v3579_v46  ;;  %v1668_v55 = vpop.f32.mrb[11].mxu1  ;;  %1870 = vmatprep.mubr.f32.mxu0 %v1700_v41 }
 0x253   : > { %v2853_v56 = vadd.f32 %v1668_v55, %v3581_v47  ;;  %1975 = vmatprep.mubr.f32.mxu1 %v1702_v48  ;;  %1871 = vmatmul.mubr.f32.gmra.mrb[24].mxu0 %v1699_v43  ;;  %v1703_v59 = vmax.f32 %v2836_v49, 0.0 }
 0x254   : > { %v1704_v57 = vmax.f32 %v2837_v54, 0.0  ;;  %1976 = vmatmul.mubr.f32.gmra.mrb[24].mxu1 %v1701_v52  ;;  %v1220_v58 = vpop.f32.mrb[12].mxu0  ;;  %v1705_v0 = vmax.f32 %v2852_v53, 0.0 }
 0x255   : > { %v1706_v60 = vmax.f32 %v2853_v56, 0.0  ;;  %v2838_v61 = vadd.f32 %v1220_v58, %v3575_v44  ;;  %v1672_v62 = vpop.f32.mrb[12].mxu1  ;;  %v1222_v63 = vpop.f32.mrb[13].mxu0 }
 0x256   : > { %v2854_v1 = vadd.f32 %v1672_v62, %v3577_v45  ;;  %v2839_v2 = vadd.f32 %v1222_v63, %v3579_v46  ;;  %v1674_v3 = vpop.f32.mrb[13].mxu1  ;;  %1875 = vmatprep.mubr.f32.mxu0 %v1704_v57 }
 0x257   : > { %v2855_v4 = vadd.f32 %v1674_v3, %v3581_v47  ;;  %1980 = vmatprep.mubr.f32.mxu1 %v1706_v60  ;;  %1876 = vmatmul.mubr.f32.gmra.mrb[26].mxu0 %v1703_v59  ;;  %v1707_v7 = vmax.f32 %v2838_v61, 0.0 }
 0x258   : > { %v1708_v5 = vmax.f32 %v2839_v2, 0.0  ;;  %1981 = vmatmul.mubr.f32.gmra.mrb[26].mxu1 %v1705_v0  ;;  %v1226_v6 = vpop.f32.mrb[14].mxu0  ;;  %v1709_v13 = vmax.f32 %v2854_v1, 0.0 }
 0x259   : > { %v1710_v9 = vmax.f32 %v2855_v4, 0.0  ;;  %v2840_v10 = vadd.f32 %v1226_v6, %v3575_v44  ;;  %v1678_v11 = vpop.f32.mrb[14].mxu1  ;;  %v1228_v12 = vpop.f32.mrb[15].mxu0 }
 0x25a   : > { %v2856_v14 = vadd.f32 %v1678_v11, %v3577_v45  ;;  %v2841_v15 = vadd.f32 %v1228_v12, %v3579_v46  ;;  %v1680_v16 = vpop.f32.mrb[15].mxu1  ;;  %1880 = vmatprep.mubr.f32.mxu0 %v1708_v5  ;;  %v3615_v45 = vld [vmem:[#allocation8] ss:$0 sm:$0xff] }
 0x25b   : > { %v2857_v17 = vadd.f32 %v1680_v16, %v3581_v47  ;;  %1985 = vmatprep.mubr.f32.mxu1 %v1710_v9  ;;  %1881 = vmatmul.mubr.f32.gmra.mrb[28].mxu0 %v1707_v7  ;;  %v1711_v19 = vmax.f32 %v2840_v10, 0.0 }
 0x25c   : > { %v1712_v18 = vmax.f32 %v2841_v15, 0.0  ;;  %1986 = vmatmul.mubr.f32.gmra.mrb[28].mxu1 %v1709_v13  ;;  %v1713_v21 = vmax.f32 %v2856_v14, 0.0 }
 0x25d   : > { %v1714_v20 = vmax.f32 %v2857_v17, 0.0 }
 0x25e   : > { %1885 = vmatprep.mubr.f32.mxu0 %v1712_v18 }
 0x25f   : > { %1990 = vmatprep.mubr.f32.mxu1 %v1714_v20  ;;  %1886 = vmatmul.mubr.f32.gmra.mrb[30].mxu0 %v1711_v19 }
 0x260   : > { %1991 = vmatmul.mubr.f32.gmra.mrb[30].mxu1 %v1713_v21 }
 0x316   : > { %v2290_v44 = vpop.f32.mrb[16].mxu0 }
 0x317   : > { %v2346_v22 = vpop.f32.mrb[16].mxu1  ;;  %v2291_v46 = vpop.f32.mrb[17].mxu0 }
 0x318   : > { %v2292_v47 = vadd.f32 %v2291_v46, %v2290_v44  ;;  %v2347_v24 = vpop.f32.mrb[17].mxu1 }
 0x319   : > { %v2348_v25 = vadd.f32 %v2347_v24, %v2346_v22 }
 0x31a   : > { %v1853_v26 = vadd.f32 %v2292_v47, %v3615_v45  ;;  %v2293_v27 = vpop.f32.mrb[18].mxu0 }
 0x31b   : > { %v2349_v28 = vpop.f32.mrb[18].mxu1  ;;  %v2294_v29 = vpop.f32.mrb[19].mxu0 }
 0x31c   : > { %v2295_v30 = vadd.f32 %v2294_v29, %v2293_v27  ;;  %v2350_v31 = vpop.f32.mrb[19].mxu1  ;;  %v3622_v32 = vadd.f32 %v2348_v25, %v1853_v26 }
 0x31d   : > { %v2351_v8 = vadd.f32 %v2350_v31, %v2349_v28 }
 0x31e   : > { %v1858_v33 = vadd.f32 %v2295_v30, %v3615_v45  ;;  %v2296_v34 = vpop.f32.mrb[20].mxu0  ;;  %v3628_v37 = vsel %vm1998_vm1, %v3622_v32, -1e+30 }
 0x31f   : > { %v2352_v35 = vpop.f32.mrb[20].mxu1  ;;  %v2297_v36 = vpop.f32.mrb[21].mxu0  ;;  %2007 = vmax.xlane.f32.xlu0 %v3628_v37 }
 0x320   : > { %v2298_v38 = vadd.f32 %v2297_v36, %v2296_v34  ;;  %v2353_v39 = vpop.f32.mrb[21].mxu1  ;;  %v3631_v40 = vadd.f32 %v2351_v8, %v1858_v33 }
 0x321   : > { %v2354_v41 = vadd.f32 %v2353_v39, %v2352_v35 }
 0x322   : > { %v1863_v42 = vadd.f32 %v2298_v38, %v3615_v45  ;;  %v2299_v43 = vpop.f32.mrb[22].mxu0  ;;  %v2000_v48 = vsel %vm1998_vm1, %v3631_v40, -1e+30 }
 0x323   : > { %v2355_v49 = vpop.f32.mrb[22].mxu1  ;;  %v2300_v50 = vpop.f32.mrb[23].mxu0  ;;  %2009 = vmax.xlane.f32.xlu0 %v2000_v48 }
 0x324   : > { %v2301_v51 = vadd.f32 %v2300_v50, %v2299_v43  ;;  %v2356_v52 = vpop.f32.mrb[23].mxu1  ;;  %v3637_v53 = vadd.f32 %v2354_v41, %v1863_v42 }
 0x325   : > { %v2357_v54 = vadd.f32 %v2356_v52, %v2355_v49 }
 0x326   : > { %v1868_v55 = vadd.f32 %v2301_v51, %v3615_v45  ;;  %v2302_v56 = vpop.f32.mrb[24].mxu0  ;;  %v2001_v57 = vsel %vm1998_vm1, %v3637_v53, -1e+30 }
 0x327   : > { %v2358_v58 = vpop.f32.mrb[24].mxu1  ;;  %v2303_v59 = vpop.f32.mrb[25].mxu0  ;;  %2011 = vmax.xlane.f32.xlu1 %v2001_v57 }
 0x328   : > { %v2304_v60 = vadd.f32 %v2303_v59, %v2302_v56  ;;  %v2359_v61 = vpop.f32.mrb[25].mxu1  ;;  %v3643_v62 = vadd.f32 %v2357_v54, %v1868_v55 }
 0x329   : > { %v2360_v63 = vadd.f32 %v2359_v61, %v2358_v58 }
 0x32a   : > { %v1873_v0 = vadd.f32 %v2304_v60, %v3615_v45  ;;  %v2305_v1 = vpop.f32.mrb[26].mxu0  ;;  %v2002_v2 = vsel %vm1998_vm1, %v3643_v62, -1e+30 }
 0x32b   : > { %v2361_v3 = vpop.f32.mrb[26].mxu1  ;;  %v2306_v4 = vpop.f32.mrb[27].mxu0  ;;  %2013 = vmax.xlane.f32.xlu1 %v2002_v2 }
 0x32c   : > { %v2307_v5 = vadd.f32 %v2306_v4, %v2305_v1  ;;  %v2362_v6 = vpop.f32.mrb[27].mxu1  ;;  %v3649_v7 = vadd.f32 %v2360_v63, %v1873_v0 }
 0x32d   : > { %v2363_v9 = vadd.f32 %v2362_v6, %v2361_v3 }
 0x32e   : > { %v1878_v10 = vadd.f32 %v2307_v5, %v3615_v45  ;;  %v2308_v11 = vpop.f32.mrb[28].mxu0  ;;  %v2003_v12 = vsel %vm1998_vm1, %v3649_v7, -1e+30 }
 0x32f   : > { %v2364_v13 = vpop.f32.mrb[28].mxu1  ;;  %v2309_v14 = vpop.f32.mrb[29].mxu0  ;;  %2015 = vmax.xlane.f32.xlu0 %v2003_v12 }
 0x330   : > { %v2310_v15 = vadd.f32 %v2309_v14, %v2308_v11  ;;  %v2365_v16 = vpop.f32.mrb[29].mxu1  ;;  %v3655_v17 = vadd.f32 %v2363_v9, %v1878_v10 }
 0x331   : > { %v2366_v18 = vadd.f32 %v2365_v16, %v2364_v13 }
 0x332   : > { %v1883_v19 = vadd.f32 %v2310_v15, %v3615_v45  ;;  %v2311_v20 = vpop.f32.mrb[30].mxu0  ;;  %v2004_v21 = vsel %vm1998_vm1, %v3655_v17, -1e+30 }
 0x333   : > { %v2367_v44 = vpop.f32.mrb[30].mxu1  ;;  %v2312_v22 = vpop.f32.mrb[31].mxu0  ;;  %2017 = vmax.xlane.f32.xlu1 %v2004_v21 }
 0x334   : > { %v2313_v46 = vadd.f32 %v2312_v22, %v2311_v20  ;;  %v2368_v47 = vpop.f32.mrb[31].mxu1  ;;  %v3661_v24 = vadd.f32 %v2366_v18, %v1883_v19 }
 0x335   : > { %v2369_v25 = vadd.f32 %v2368_v47, %v2367_v44 }
 0x336   : > { %v1888_v26 = vadd.f32 %v2313_v46, %v3615_v45  ;;  %v2005_v27 = vsel %vm1998_vm1, %v3661_v24, -1e+30 }
 0x337   : > { %2019 = vmax.xlane.f32.xlu0 %v2005_v27 }
 0x338   : > { %v3667_v28 = vadd.f32 %v2369_v25, %v1888_v26 }
 0x33a   : > { %v2006_v29 = vsel %vm1998_vm1, %v3667_v28, -1e+30 }
 0x33b   : > { %2021 = vmax.xlane.f32.xlu1 %v2006_v29 }
 0x3ac   : > { %v2008_v30 = vpop.xlane.xlu0 %2007 }
 0x3ad   : > { %v2023_v31 = vsub.f32 %v3628_v37, %v2008_v30 }
 0x3af   : > { %v2031_v8 = vmul.f32 1.442695, %v2023_v31 }
 0x3b0   : > { %v3673_v33 = vpop.xlane.xlu0 %2009 }
 0x3b1   : > { %3042 = vpow2.f32 %v2031_v8  ;;  %v2024_v45 = vsub.f32 %v2000_v48, %v3673_v33 }
 0x3b3   : > { %v2033_v34 = vmul.f32 1.442695, %v2024_v45 }
 0x3b4   : > { %v3676_v35 = vpop.xlane.xlu1 %2011 }
 0x3b5   : > { %3044 = vpow2.f32 %v2033_v34  ;;  %v2025_v36 = vsub.f32 %v2001_v57, %v3676_v35 }
 0x3b7   : > { %v2035_v38 = vmul.f32 1.442695, %v2025_v36 }
 0x3b8   : > { %v3679_v39 = vpop.xlane.xlu1 %2013 }
 0x3b9   : > { %3046 = vpow2.f32 %v2035_v38  ;;  %v2026_v23 = vsub.f32 %v2002_v2, %v3679_v39 }
 0x3bb   : > { %v3043_v41 = vpop.eup %3042  ;;  %v2037_v37 = vmul.f32 1.442695, %v2026_v23 }
 0x3bc   : > { %2047 = vadd.xlane.f32.xlu0 %v3043_v41  ;;  %v3682_v42 = vpop.xlane.xlu0 %2015 }
 0x3bd   : > { %3048 = vpow2.f32 %v2037_v37  ;;  %v2027_v43 = vsub.f32 %v2003_v12, %v3682_v42 }
 0x3bf   : > { %v3045_v48 = vpop.eup %3044  ;;  %v2039_v49 = vmul.f32 1.442695, %v2027_v43 }
 0x3c0   : > { %v3685_v50 = vpop.xlane.xlu1 %2017  ;;  %2049 = vadd.xlane.f32.xlu1 %v3045_v48 }
 0x3c1   : > { %3050 = vpow2.f32 %v2039_v49  ;;  %v2028_v51 = vsub.f32 %v2004_v21, %v3685_v50 }
 0x3c3   : > { %v3047_v52 = vpop.eup %3046  ;;  %v2041_v54 = vmul.f32 1.442695, %v2028_v51 }
 0x3c4   : > { %2051 = vadd.xlane.f32.xlu0 %v3047_v52  ;;  %v3688_v55 = vpop.xlane.xlu0 %2019 }
 0x3c5   : > { %3052 = vpow2.f32 %v2041_v54  ;;  %v2029_v56 = vsub.f32 %v2005_v27, %v3688_v55 }
 0x3c7   : > { %v3049_v57 = vpop.eup %3048  ;;  %v2043_v58 = vmul.f32 1.442695, %v2029_v56 }
 0x3c8   : > { %v3691_v59 = vpop.xlane.xlu1 %2021  ;;  %2053 = vadd.xlane.f32.xlu1 %v3049_v57 }
 0x3c9   : > { %3054 = vpow2.f32 %v2043_v58  ;;  %v2030_v60 = vsub.f32 %v2006_v29, %v3691_v59 }
 0x3cb   : > { %v3051_v61 = vpop.eup %3050  ;;  %v2045_v63 = vmul.f32 1.442695, %v2030_v60 }
 0x3cc   : > { %2055 = vadd.xlane.f32.xlu0 %v3051_v61 }
 0x3cd   : > { %3056 = vpow2.f32 %v2045_v63 }
 0x3cf   : > { %v3053_v0 = vpop.eup %3052 }
 0x3d0   : > { %2057 = vadd.xlane.f32.xlu1 %v3053_v0 }
 0x3d3   : > { %v3055_v1 = vpop.eup %3054 }
 0x3d4   : > { %2059 = vadd.xlane.f32.xlu0 %v3055_v1 }
 0x3d7   : > { %v3057_v2 = vpop.eup %3056 }
 0x3d8   : > { %2061 = vadd.xlane.f32.xlu1 %v3057_v2 }
 0x449   : > { %v2048_v3 = vpop.xlane.xlu0 %2047 }
 0x44a   : > { %3058 = vlog2.f32 %v2048_v3 }
 0x44d   : > { %v2050_v4 = vpop.xlane.xlu1 %2049 }
 0x44e   : > { %3060 = vlog2.f32 %v2050_v4 }
 0x451   : > { %v2052_v5 = vpop.xlane.xlu0 %2051 }
 0x452   : > { %3062 = vlog2.f32 %v2052_v5 }
 0x454   : > { %v3059_v6 = vpop.eup %3058 }
 0x455   : > { %v2064_v9 = vmul.f32 0.6931472, %v3059_v6  ;;  %v2054_v10 = vpop.xlane.xlu1 %2053 }
 0x456   : > { %3064 = vlog2.f32 %v2054_v10 }
 0x457   : > { %v2079_v11 = vadd.f32 %v2064_v9, %v2008_v30 }
 0x458   : > { %v3061_v12 = vpop.eup %3060 }
 0x459   : > { %v2087_v13 = vsub.f32 %v3622_v32, %v2079_v11  ;;  %v2066_v14 = vmul.f32 0.6931472, %v3061_v12  ;;  %v2056_v15 = vpop.xlane.xlu0 %2055 }
 0x45a   : > { %3066 = vlog2.f32 %v2056_v15 }
 0x45b   : > { %2095 = vst [vmem:[%s3698_s17] sm:$0xff] %v2087_v13  ;;  %v2080_v16 = vadd.f32 %v2066_v14, %v3673_v33 }
 0x45c   : > { %v3063_v18 = vpop.eup %3062 }
 0x45d   : > { %v2088_v19 = vsub.f32 %v3631_v40, %v2080_v16  ;;  %v2068_v20 = vmul.f32 0.6931472, %v3063_v18  ;;  %v2058_v21 = vpop.xlane.xlu1 %2057 }
 0x45e   : > { %3068 = vlog2.f32 %v2058_v21 }
 0x45f   : > { %2096 = vst [vmem:[%s3698_s17 + $0x8] sm:$0xff] %v2088_v19  ;;  %v2081_v32 = vadd.f32 %v2068_v20, %v3676_v35 }
 0x460   : > { %v3065_v44 = vpop.eup %3064 }
 0x461   : > { %v2089_v22 = vsub.f32 %v3637_v53, %v2081_v32  ;;  %v2070_v46 = vmul.f32 0.6931472, %v3065_v44  ;;  %v2060_v47 = vpop.xlane.xlu0 %2059 }
 0x462   : > { %3070 = vlog2.f32 %v2060_v47 }
 0x463   : > { %2097 = vst [vmem:[%s3698_s17 + $0x10] sm:$0xff] %v2089_v22  ;;  %v2082_v25 = vadd.f32 %v2070_v46, %v3679_v39 }
 0x464   : > { %v3067_v26 = vpop.eup %3066 }
 0x465   : > { %v2090_v40 = vsub.f32 %v3643_v62, %v2082_v25  ;;  %v2072_v27 = vmul.f32 0.6931472, %v3067_v26  ;;  %v2062_v29 = vpop.xlane.xlu1 %2061 }
 0x466   : > { %3072 = vlog2.f32 %v2062_v29 }
 0x467   : > { %2098 = vst [vmem:[%s3698_s17 + $0x18] sm:$0xff] %v2090_v40  ;;  %v2083_v30 = vadd.f32 %v2072_v27, %v3682_v42 }
 0x468   : > { %v3069_v53 = vpop.eup %3068 }
 0x469   : > { %v2091_v31 = vsub.f32 %v3649_v7, %v2083_v30  ;;  %v2074_v8 = vmul.f32 0.6931472, %v3069_v53 }
 0x46b   : > { %2099 = vst [vmem:[%s3698_s17 + $0x20] sm:$0xff] %v2091_v31  ;;  %v2084_v33 = vadd.f32 %v2074_v8, %v3685_v50 }
 0x46c   : > { %v3071_v45 = vpop.eup %3070 }
 0x46d   : > { %v2092_v62 = vsub.f32 %v3655_v17, %v2084_v33  ;;  %v2076_v34 = vmul.f32 0.6931472, %v3071_v45 }
 0x46f   : > { %2100 = vst [vmem:[%s3698_s17 + $0x28] sm:$0xff] %v2092_v62  ;;  %v2085_v35 = vadd.f32 %v2076_v34, %v3688_v55 }
 0x470   : > { %v3073_v36 = vpop.eup %3072 }
 0x471   : > { %v2093_v38 = vsub.f32 %v3661_v24, %v2085_v35  ;;  %v2078_v39 = vmul.f32 0.6931472, %v3073_v36 }
 0x473   : > { %2101 = vst [vmem:[%s3698_s17 + $0x30] sm:$0xff] %v2093_v38  ;;  %v2086_v7 = vadd.f32 %v2078_v39, %v3691_v59 }
 0x475   : > { %v2094_v17 = vsub.f32 %v3667_v28, %v2086_v7 }
 0x477   : > { %2102 = vst [vmem:[%s3698_s17 + $0x38] sm:$0xff] %v2094_v17 }
 0x478   : > { %3199 = shalt.err (!%p3196_p1)
}
 0x479   : > { %s3200_s30 = scalar_lea.hbm %s3725_s12, 1024  ;;  %s3204_s13 = scalar_lea.hbm %s3779_s5, 2048 }
 0x47a   : > { %p3201_p0 = scmp.ne.s32.totalorder %s3725_s12, %s3200_s30  ;;  %p3205_p9 = scmp.lt.u32.totalorder %s3725_s12, %s3779_s5 }
 0x47b   : > { %p3206_p12 = scmp.lt.u32.totalorder %s3204_s13, %s3200_s30  ;;  %p3208_p2 = scmp.lt.u32.totalorder %s3200_s30, %s3725_s12 }
 0x47c   : > { %p3202_p6 = pnand %p3201_p0, %p3798_p3 }
 0x47d   : > { %p3207_p10 = por %p3206_p12, %p3205_p9 }
 0x47e   : > { %p3203_p5 = pneg %p3202_p6 }
 0x47f   : > { %p3209_p4 = por %p3208_p2, %p3207_p10 }
 0x481   : > { %p3210_p7 = pnand %p3209_p4, %p3203_p5 }
 0x483   : > { %3213 = shalt.err (!%p3210_p7)
}
 0x484   : > { %s3272_s16 = smov 128   ;;  %s3273_s17 = smov 8  }
 0x485   : > { %2971 = dma.vmem_to_hbm [thread:$0]  (%p3798_p3), %s3727_s26, 1024, %s3725_s12, %s3733_s9, %s3272_s16, %s3272_s16, %s3273_s17  }
 0x486 PF: > { %p2998_p8 = scmp.ge.s32.totalorder %s3260_s21, 2  ;;  %s2132_s25 = sand.u32 1, %s3248_s18  }
 0x487   : > { %p3799_p11 = scmp.ne.s32.totalorder %s3785_s29, 0  ;;  %s2133_s7 = scalar_lea.sflag [#allocation4], %s2132_s25 }
 0x489   : > { %p2987_p13 = pnand %p2998_p8, %p3799_p11 }
 0x48b   : > { %3243 = dma.done.wait (!%p2987_p13), %s2133_s7, 1024  }
 0x48c   : > { %3245 = vsyncadd (!%p2987_p13), %s2133_s7, 4294966272  ;;  %p18_p1 = scmp.ge.s32.totalorder %s3329_s24, 4   ;;  %s3800_s18 = smov %s3252_s19 }
 0x48d   : > { %s3801_s19 = smov %s3256_s20  ;;  %s3802_s20 = smov %s3340_s27 }
 0x48e   : > { %s3803_s21 = smov %s3329_s24  ;;  %20 = sbr.rel (!%p18_p1) target bundleno = 8 (0x8), region = 92 }
 0x495   :  { %2138 = vsyncpa [#allocation3], 1 }
 0x496   :  { %2140 = vsyncpa [#allocation3 + $0x1], 1 }
 0x497   :  { %2141 = vsyncpa [#allocation6], 1 }
 0x498   :  { %2142 = vsyncpa [#allocation9], 1 }
 0x499   :  { %2143 = vsyncpa [#allocation4], 1 }
 0x49a   :  { %2145 = vsyncpa [#allocation4 + $0x1], 1 }

</bundles_post_ra>
